<compile_context>
chip_gen: v7x
topology: tpu7x:2x2x1
jax: 0.10.0
libtpu: 0.0.40
codegen_flags: <defaults>
</compile_context>

<pallas_src>
import functools

import jax
import jax.numpy as jnp
from jax.experimental import pallas as pl
from jax.experimental.pallas import tpu as pltpu


# ---------------------------------------------------------------------------
# Kernel
# ---------------------------------------------------------------------------
def _expert_kernel(x_ref, w13_ref, w2t_ref, o_ref, acc_ref):
    """One (token tile i, inter_dim chunk j) step of the fused expert MLP."""
    j = pl.program_id(1)

    @pl.when(j == 0)
    def _():
        acc_ref[...] = jnp.zeros_like(acc_ref)

    x = x_ref[...]                                                    # (tm, dim) bf16

    # Fused up/gate projection: single MXU matmul against [W1^T | W3^T] chunk.
    h = jnp.dot(x, w13_ref[...], preferred_element_type=jnp.float32)  # (tm, 2*tn) f32
    tn = h.shape[-1] // 2
    # Round to bf16 exactly like F.linear's bf16 outputs in the torch path.
    h1 = h[:, :tn].astype(x.dtype)
    h3 = h[:, tn:].astype(x.dtype)

    # SiLU gate (EUP sigmoid in f32), bf16 product like torch bf16 arithmetic.
    h1f = h1.astype(jnp.float32)
    gated = (h1f * jax.nn.sigmoid(h1f)).astype(x.dtype) * h3          # (tm, tn) bf16

    # Partial down-projection, accumulated in f32 across inter_dim chunks.
    acc_ref[...] += jnp.dot(gated, w2t_ref[...],
                            preferred_element_type=jnp.float32)        # (tm, dim) f32

    @pl.when(j == pl.num_programs(1) - 1)
    def _():
        o_ref[...] = acc_ref[...].astype(o_ref.dtype)


# ---------------------------------------------------------------------------
# Planning / weight preparation (runs once, outside the jitted hot path)
# ---------------------------------------------------------------------------
def _vmem_capacity_bytes():
    try:
        return int(pltpu.get_tpu_info().vmem_capacity_bytes)
    except Exception:
        # Conservative fallback valid on every TPU generation (v7x has 64 MiB).
        return 64 * 1024 * 1024


def plan_expert_tiles(dim, inter_dim, *, tm=512):
    """Pick (tm, tn). tn == inter_dim means weights are fully VMEM-resident."""
    BF16 = 2
    budget = _vmem_capacity_bytes() - 16 * 1024 * 1024   # headroom for compiler scratch

    def act_bytes(tm_):
        # double-buffered x & out tiles (bf16) + resident f32 accumulator
        return 2 * (2 * tm_ * dim * BF16) + tm_ * dim * 4

    # Option A: weights fully resident (single-buffered), tn = inter_dim.
    resident_w = 3 * dim * inter_dim * BF16               # [W1^T|W3^T] + W2^T
    tm_res = max(128, tm)
    while tm_res > 128 and resident_w + act_bytes(tm_res) > budget:
        tm_res //= 2
    if resident_w + act_bytes(tm_res) <= budget:
        return tm_res, inter_dim

    # Option B: stream weights in tn-wide chunks (double-buffered by Pallas).
    tn = 512
    while tn > 128 and inter_dim % tn:
        tn //= 2
    assert inter_dim % tn == 0, "inter_dim must be a multiple of 128"

    def stream_w(tn_):
        return 2 * (2 * tn_ + tn_) * dim * BF16           # w13 chunk + w2t chunk, 2 bufs

    tm_s = max(128, tm)
    while tn > 256 and inter_dim % (tn // 2) == 0 and \
            stream_w(tn) + act_bytes(tm_s) > budget:
        tn //= 2
    while tm_s > 128 and stream_w(tn) + act_bytes(tm_s) > budget:
        tm_s //= 2
    return tm_s, tn


def prepare_expert_weights(w1, w2, w3, tn):
    """Pre-transpose and pre-chunk weights (one-time, outside the hot path).

    w1, w3: (inter_dim, dim)   w2: (dim, inter_dim), all bf16.
    Returns:
      w13: (inter_dim//tn, dim, 2*tn)  -- chunk j = [W1^T chunk j | W3^T chunk j],
                                          each chunk one contiguous HBM slab.
      w2t: (inter_dim, dim)            -- W2^T (rows already contiguous).
    """
    inter_dim, dim = w1.shape
    assert w3.shape == (inter_dim, dim) and w2.shape == (dim, inter_dim)
    assert inter_dim % tn == 0 and tn % 128 == 0
    n_chunks = inter_dim // tn
    w1c = jnp.transpose(w1.reshape(n_chunks, tn, dim), (0, 2, 1))   # (n, dim, tn)
    w3c = jnp.transpose(w3.reshape(n_chunks, tn, dim), (0, 2, 1))   # (n, dim, tn)
    w13 = jnp.concatenate([w1c, w3c], axis=-1)                      # (n, dim, 2*tn)
    w2t = jnp.asarray(w2.T)                                         # (inter_dim, dim)
    return w13, w2t


# ---------------------------------------------------------------------------
# Forward
# ---------------------------------------------------------------------------
@functools.partial(jax.jit, static_argnames=("tm",))
def expert_forward(x, w13, w2t, *, tm=None):
    """Fused expert forward.

    x:   (T, dim) bf16 activations.
    w13: (inter_dim//tn, dim, 2*tn) bf16 pre-chunked [W1^T | W3^T].
    w2t: (inter_dim, dim) bf16 pre-transposed W2.
    """
    T, dim = x.shape
    n_chunks, dim_w, two_tn = w13.shape
    tn = two_tn // 2
    inter_dim = n_chunks * tn
    assert dim_w == dim and w2t.shape == (inter_dim, dim)

    # Token tile: large target for weight-traffic amortization, clamped so
    # small batches don't over-pad.
    if tm is None:
        tm = 512
    tm = int(max(128, min(tm, 128 * pl.cdiv(T, 128))))

    # Pad ragged token counts to a multiple of the token tile.
    t_pad = pl.cdiv(T, tm) * tm
    if t_pad != T:
        x = jnp.pad(x, ((0, t_pad - T), (0, 0)))

    grid_m = t_pad // tm
    grid = (grid_m, n_chunks)            # token axis first, reduction axis last
    resident = (n_chunks == 1)           # weight block index constant over the grid

    if resident:
        # Weights DMA'd once for the whole call; single buffer saves VMEM.
        w13_spec = pl.BlockSpec((None, dim, 2 * tn), lambda i, j: (j, 0, 0),
                                pipeline_mode=pl.Buffered(1))
        w2_spec = pl.BlockSpec((tn, dim), lambda i, j: (j, 0),
                               pipeline_mode=pl.Buffered(1))
    else:
        w13_spec = pl.BlockSpec((None, dim, 2 * tn), lambda i, j: (j, 0, 0))
        w2_spec = pl.BlockSpec((tn, dim), lambda i, j: (j, 0))

    # VMEM limit: physical capacity minus headroom (correct on v7x's 64 MiB).
    cap = _vmem_capacity_bytes()
    vmem_limit = int(max(32 * 1024 * 1024,
                         min(cap - 8 * 1024 * 1024, 128 * 1024 * 1024)))

    weight_bytes = 3 * dim * inter_dim * 2
    cost = pl.CostEstimate(
        flops=6 * t_pad * dim * inter_dim,                 # three matmuls, 2*M*N*K each
        transcendentals=t_pad * inter_dim,                 # sigmoid
        bytes_accessed=(2 * t_pad * dim * 2                # x in + out (bf16)
                        + weight_bytes * (1 if resident else grid_m)),
    )

    # NOTE(v7x): with 2 TCs and the token axis "parallel", each core re-streams
    # weights; amortized by the large tm. For tiny decode batches grid_m may be
    # 1 and one core idles — acceptable for this kernel.
    out = pl.pallas_call(
        _expert_kernel,
        out_shape=jax.ShapeDtypeStruct((t_pad, dim), x.dtype),
        grid_spec=pltpu.PrefetchScalarGridSpec(
            num_scalar_prefetch=0,
            grid=grid,
            in_specs=[
                pl.BlockSpec((tm, dim), lambda i, j: (i, 0)),   # x tile (constant over j)
                w13_spec,                                       # [W1^T|W3^T] chunk
                w2_spec,                                        # W2^T chunk
            ],
            out_specs=pl.BlockSpec((tm, dim), lambda i, j: (i, 0)),
            scratch_shapes=[pltpu.VMEM((tm, dim), jnp.float32)],
        ),
        compiler_params=pltpu.CompilerParams(
            dimension_semantics=("parallel", "arbitrary"),
            vmem_limit_bytes=vmem_limit,
        ),
        cost_estimate=cost,
    )(x, w13, w2t)

    return out[:T] if t_pad != T else out


# ---------------------------------------------------------------------------
# Reference (pure JAX, matches the PyTorch bf16 Linear path)
# ---------------------------------------------------------------------------
def _reference(x, w1, w2, w3):
    h1 = jnp.dot(x, w1.T, preferred_element_type=jnp.float32).astype(x.dtype)
    h3 = jnp.dot(x, w3.T, preferred_element_type=jnp.float32).astype(x.dtype)
    h1f = h1.astype(jnp.float32)
    g = (h1f * jax.nn.sigmoid(h1f)).astype(x.dtype) * h3
    return jnp.dot(g, w2.T, preferred_element_type=jnp.float32).astype(x.dtype)


# TODO(synk): the fp8 branch of the torch module (act_quant / fp8_gemm /
# weight_dequant) is dead code for Linear.dtype == bfloat16 and is not ported.

if __name__ == "__main__":
    # Small shapes consistent with the expert MLP: T tokens of width `dim`,
    # hidden width `inter_dim`.
    T, dim, inter_dim = 256, 256, 512
    key = jax.random.PRNGKey(0)
    kx, k1, k2, k3 = jax.random.split(key, 4)

    x = jax.random.normal(kx, (T, dim), dtype=jnp.float32).astype(jnp.bfloat16)
    # Deterministic init mirroring nn.Parameter(randn(out, in) * in**-0.5), bf16.
    w1 = (jax.random.normal(k1, (inter_dim, dim), dtype=jnp.float32) * dim ** -0.5).astype(jnp.bfloat16)
    w2 = (jax.random.normal(k2, (dim, inter_dim), dtype=jnp.float32) * inter_dim ** -0.5).astype(jnp.bfloat16)
    w3 = (jax.random.normal(k3, (inter_dim, dim), dtype=jnp.float32) * dim ** -0.5).astype(jnp.bfloat16)

    ref = _reference(x, w1, w2, w3)

    # (a) Auto plan: tiny weights fit VMEM -> resident mode (tn = inter_dim,
    #     single-buffered weight specs).
    tm_p, tn_p = plan_expert_tiles(dim, inter_dim)
    w13_r, w2t_r = prepare_expert_weights(w1, w2, w3, tn_p)
    out = jax.block_until_ready(expert_forward(x, w13_r, w2t_r, tm=tm_p))
    assert out.shape == (T, dim) and out.dtype == jnp.bfloat16
    assert jnp.allclose(out.astype(jnp.float32), ref.astype(jnp.float32),
                        rtol=2e-2, atol=2e-2), "mismatch vs reference (resident)"

    # (b) Explicit streaming config: exercises the multi-chunk reduction path
    #     (grid = (2, 2), f32 accumulator across j).
    w13_s, w2t_s = prepare_expert_weights(w1, w2, w3, 256)
    out_s = jax.block_until_ready(expert_forward(x, w13_s, w2t_s, tm=128))
    assert jnp.allclose(out_s.astype(jnp.float32), ref.astype(jnp.float32),
                        rtol=2e-2, atol=2e-2), "mismatch vs reference (streaming)"

    # (c) Ragged token count exercises the padding path.
    T2 = 72
    out_r = jax.block_until_ready(expert_forward(x[:T2], w13_s, w2t_s, tm=128))
    ref_r = _reference(x[:T2], w1, w2, w3)
    assert out_r.shape == (T2, dim)
    assert jnp.allclose(out_r.astype(jnp.float32), ref_r.astype(jnp.float32),
                        rtol=2e-2, atol=2e-2), "mismatch vs reference (ragged)"

    print("KERNEL_OK")
</pallas_src>

<mosaic_0001>
module attributes {stable_mosaic.version = 11 : i64} {
  func.func @_expert_kernel(%arg0: i32, %arg1: i32, %arg2: memref<256x256xbf16, #tpu.memory_space<vmem>>, %arg3: memref<1x256x1024xbf16, #tpu.memory_space<vmem>>, %arg4: memref<512x256xbf16, #tpu.memory_space<vmem>>, %arg5: memref<256x256xbf16, #tpu.memory_space<vmem>>, %arg6: memref<256x256xf32, #tpu.memory_space<vmem>>) attributes {dimension_semantics = [#tpu.dimension_semantics<parallel>, #tpu.dimension_semantics<arbitrary>], iteration_bounds = array<i64: 1, 1>, scalar_prefetch = 0 : i64, scratch_operands = 1 : i64, tpu.core_type = #tpu.core_type<tc>, window_params = [{transform_indices = @transform_0, window_bounds = array<i64: 256, 256>}, {pipeline_mode = #tpu.pipeline_mode<synchronous>, transform_indices = @transform_1, window_bounds = array<i64: 1, 256, 1024>}, {pipeline_mode = #tpu.pipeline_mode<synchronous>, transform_indices = @transform_2, window_bounds = array<i64: 512, 256>}, {transform_indices = @transform_3, window_bounds = array<i64: 256, 256>}]} {
    %c0_i32 = arith.constant 0 : i32
    %0 = arith.cmpi eq, %arg1, %c0_i32 : i32
    %1 = arith.extui %0 : i1 to i32
    %c0_i32_0 = arith.constant 0 : i32
    %2 = arith.cmpi ne, %1, %c0_i32_0 : i32
    scf.if %2 {
      %cst_15 = arith.constant 0.000000e+00 : f32
      %28 = vector.broadcast %cst_15 : f32 to vector<256x256xf32>
      %c0_16 = arith.constant 0 : index
      %c0_17 = arith.constant 0 : index
      %29 = vector.load %arg6[%c0_16, %c0_17] : memref<256x256xf32, #tpu.memory_space<vmem>>, vector<256x256xf32>
      tpu.vector_store %arg6[%c0_16, %c0_17], %28 {strides = array<i32>} : memref<256x256xf32, #tpu.memory_space<vmem>>, vector<256x256xf32>,
    } else {
    }
    %c0 = arith.constant 0 : index
    %c0_1 = arith.constant 0 : index
    %3 = vector.load %arg2[%c0, %c0_1] : memref<256x256xbf16, #tpu.memory_space<vmem>>, vector<256x256xbf16>
    %c0_2 = arith.constant 0 : index
    %c0_3 = arith.constant 0 : index
    %c0_4 = arith.constant 0 : index
    %4 = vector.load %arg3[%c0_2, %c0_3, %c0_4] : memref<1x256x1024xbf16, #tpu.memory_space<vmem>>, vector<1x256x1024xbf16>
    %5 = vector.shape_cast %4 : vector<1x256x1024xbf16> to vector<256x1024xbf16>
    %cst = arith.constant dense<0.000000e+00> : vector<256x1024xf32>
    %6 = tpu.matmul %3, %5, %cst {dimension_numbers = #tpu.dot_dimension_numbers<[1], [0], [0], [1], [0, 0, 1, 1], [], []>} : vector<256x256xbf16>, vector<256x1024xbf16>, vector<256x1024xf32> -> vector<256x1024xf32>
    %7 = vector.extract_strided_slice %6 {offsets = [0, 0], sizes = [256, 512], strides = [1, 1]} : vector<256x1024xf32> to vector<256x512xf32>
    %8 = arith.truncf %7 : vector<256x512xf32> to vector<256x512xbf16>
    %9 = vector.extract_strided_slice %6 {offsets = [0, 512], sizes = [256, 512], strides = [1, 1]} : vector<256x1024xf32> to vector<256x512xf32>
    %10 = arith.truncf %9 : vector<256x512xf32> to vector<256x512xbf16>
    %11 = arith.extf %8 : vector<256x512xbf16> to vector<256x512xf32>
    %12 = arith.negf %11 : vector<256x512xf32>
    %13 = math.exp %12 : vector<256x512xf32>
    %cst_5 = arith.constant 1.000000e+00 : f32
    %14 = vector.broadcast %cst_5 : f32 to vector<256x512xf32>
    %15 = arith.addf %14, %13 : vector<256x512xf32>
    %16 = arith.divf %14, %15 : vector<256x512xf32>
    %17 = arith.mulf %11, %16 : vector<256x512xf32>
    %18 = arith.truncf %17 : vector<256x512xf32> to vector<256x512xbf16>
    %19 = arith.mulf %18, %10 : vector<256x512xbf16>
    %c0_6 = arith.constant 0 : index
    %c0_7 = arith.constant 0 : index
    %20 = vector.load %arg6[%c0_6, %c0_7] : memref<256x256xf32, #tpu.memory_space<vmem>>, vector<256x256xf32>
    %c0_8 = arith.constant 0 : index
    %c0_9 = arith.constant 0 : index
    %21 = vector.load %arg4[%c0_8, %c0_9] : memref<512x256xbf16, #tpu.memory_space<vmem>>, vector<512x256xbf16>
    %cst_10 = arith.constant dense<0.000000e+00> : vector<256x256xf32>
    %22 = tpu.matmul %19, %21, %cst_10 {dimension_numbers = #tpu.dot_dimension_numbers<[1], [0], [0], [1], [0, 0, 1, 1], [], []>} : vector<256x512xbf16>, vector<512x256xbf16>, vector<256x256xf32> -> vector<256x256xf32>
    %23 = arith.addf %20, %22 : vector<256x256xf32>
    %c0_11 = arith.constant 0 : index
    %c0_12 = arith.constant 0 : index
    %24 = vector.load %arg6[%c0_11, %c0_12] : memref<256x256xf32, #tpu.memory_space<vmem>>, vector<256x256xf32>
    tpu.vector_store %arg6[%c0_11, %c0_12], %23 {strides = array<i32>} : memref<256x256xf32, #tpu.memory_space<vmem>>, vector<256x256xf32>,
    %c0_i32_13 = arith.constant 0 : i32
    %25 = arith.cmpi eq, %arg1, %c0_i32_13 : i32
    %26 = arith.extui %25 : i1 to i32
    %c0_i32_14 = arith.constant 0 : i32
    %27 = arith.cmpi ne, %26, %c0_i32_14 : i32
    scf.if %27 {
      %c0_15 = arith.constant 0 : index
      %c0_16 = arith.constant 0 : index
      %28 = vector.load %arg6[%c0_15, %c0_16] : memref<256x256xf32, #tpu.memory_space<vmem>>, vector<256x256xf32>
      %29 = arith.truncf %28 : vector<256x256xf32> to vector<256x256xbf16>
      %c0_17 = arith.constant 0 : index
      %c0_18 = arith.constant 0 : index
      %30 = vector.load %arg5[%c0_17, %c0_18] : memref<256x256xbf16, #tpu.memory_space<vmem>>, vector<256x256xbf16>
      tpu.vector_store %arg5[%c0_17, %c0_18], %29 {strides = array<i32>} : memref<256x256xbf16, #tpu.memory_space<vmem>>, vector<256x256xbf16>,
    } else {
    }
    return
  }
  func.func @transform_0(%arg0: i32, %arg1: i32) -> (i32, i32) {
    %c0_i32 = arith.constant 0 : i32
    %c0_i32_0 = arith.constant 0 : i32
    return %arg0, %c0_i32 : i32, i32
  }
  func.func @transform_1(%arg0: i32, %arg1: i32) -> (i32, i32, i32) {
    %c0_i32 = arith.constant 0 : i32
    %c0_i32_0 = arith.constant 0 : i32
    %c0_i32_1 = arith.constant 0 : i32
    return %arg1, %c0_i32, %c0_i32_0 : i32, i32, i32
  }
  func.func @transform_2(%arg0: i32, %arg1: i32) -> (i32, i32) {
    %c0_i32 = arith.constant 0 : i32
    %c0_i32_0 = arith.constant 0 : i32
    return %arg1, %c0_i32 : i32, i32
  }
  func.func @transform_3(%arg0: i32, %arg1: i32) -> (i32, i32) {
    %c0_i32 = arith.constant 0 : i32
    %c0_i32_0 = arith.constant 0 : i32
    return %arg0, %c0_i32 : i32, i32
  }
}

</mosaic_0001>

<bundles_post_ra>
// kernel: expert_forward.1
= control target key start
LH: loop header
LB: loop body
LE: loop exit
PB: predicated region body
PF: predicated region fallthrough
CT: control target
= control target key end

     0   :  { %8 = vsyncpa [#allocation4], 0  ;;  %s7007_s0 = inlined_call_operand.hbm [shape: bf16[256,256], index: 0, kind: input, shape index: {}]   ;;  %s7008_s1 = inlined_call_operand.hbm [shape: bf16[1,256,1024], index: 1, kind: input, shape index: {}]   ;;  %s7009_s2 = inlined_call_operand.hbm [shape: bf16[512,256], index: 2, kind: input, shape index: {}]   ;;  %s7010_s3 = inlined_call_operand.hbm [shape: bf16[256,256], index: 3, kind: output, shape index: {}]  }
   0x1   :  { %9 = vsyncpa [#allocation7], 0 }
   0x2   :  { %10 = vsyncpa [#allocation5], 0  ;;  %s5677_s12 = smov [#allocation6]   ;;  %s5583_s16 = scalar_lea.hbm %s7008_s1, 16384 }
   0x3   :  { %s28_s13 = sshll.u32 %s5677_s12, 4  ;;  %p5584_p0 = scmp.ne.s32.totalorder %s7008_s1, %s5583_s16  ;;  %s29_s13 = int_to_ptr.vmem [resolvable:$true] %s28_s13 }
   0x4   :  { %p5587_p1 = scmp.lt.u32.totalorder %s5583_s16, %s7008_s1 }
   0x6   :  { %p5589_p2 = pnand %p5587_p1, %p5584_p0 }
   0x8   :  { %5592 = shalt.err (!%p5589_p2)
}
   0x9   :  { %s5593_s21 = scalar_lea.vmem %s29_s13, 16384  ;;  %p5598_p4 = scmp.lt.s32.totalorder %s29_s13, %s29_s13 }
   0xa   :  { %p5594_p3 = scmp.ne.s32.totalorder %s29_s13, %s5593_s21  ;;  %p5599_p5 = scmp.lt.s32.totalorder %s5593_s21, %s5593_s21 }
   0xc   :  { %p5600_p6 = por %p5599_p5, %p5598_p4 }
   0xe   :  { %p5601_p7 = pnand %p5600_p6, %p5594_p3 }
  0x10   :  { %5604 = shalt.err (!%p5601_p7)
}
  0x11   :  { %s5678_s22 = smov 512   ;;  %s5679_s23 = smov 32  }
  0x12   :  { %34 = dma.hbm_to_vmem [thread:$0]  %s7008_s1, 16384, %s29_s13, [#allocation7], %s5678_s22, %s5678_s22, %s5679_s23  }
  0x13   :  { %s5680_s26 = smov [#allocation3]   ;;  %s5605_s30 = scalar_lea.hbm %s7007_s0, 4096 }
  0x14   :  { %s16_s27 = sshll.u32 %s5680_s26, 4  ;;  %p5606_p8 = scmp.ne.s32.totalorder %s7007_s0, %s5605_s30  ;;  %s17_s27 = int_to_ptr.vmem [resolvable:$true] %s16_s27 }
  0x15   :  { %p5609_p9 = scmp.lt.u32.totalorder %s5605_s30, %s7007_s0 }
  0x17   :  { %p5611_p10 = pnand %p5609_p9, %p5606_p8 }
  0x19   :  { %5614 = shalt.err (!%p5611_p10)
}
  0x1a   :  { %s5615_s8 = scalar_lea.vmem %s17_s27, 4096  ;;  %p5620_p12 = scmp.lt.s32.totalorder %s17_s27, %s17_s27 }
  0x1b   :  { %p5616_p11 = scmp.ne.s32.totalorder %s17_s27, %s5615_s8  ;;  %p5621_p13 = scmp.lt.s32.totalorder %s5615_s8, %s5615_s8 }
  0x1d   :  { %p5622_p0 = por %p5621_p13, %p5620_p12 }
  0x1f   :  { %p5623_p1 = pnand %p5622_p0, %p5616_p11 }
  0x21   :  { %5626 = shalt.err (!%p5623_p1)
}
  0x22   :  { %s5681_s1 = smov 128   ;;  %s5682_s9 = smov 8  }
  0x23   :  { %22 = dma.hbm_to_vmem [thread:$0]  %s7007_s0, 4096, %s17_s27, [#allocation4], %s5681_s1, %s5681_s1, %s5682_s9  }
  0x24   :  { %s5683_s12 = smov [#allocation8]   ;;  %s5627_s16 = scalar_lea.hbm %s7009_s2, 8192 }
  0x25   :  { %s40_s13 = sshll.u32 %s5683_s12, 4  ;;  %p5628_p2 = scmp.ne.s32.totalorder %s7009_s2, %s5627_s16  ;;  %s41_s13 = int_to_ptr.vmem [resolvable:$true] %s40_s13 }
  0x26   :  { %p5631_p3 = scmp.lt.u32.totalorder %s5627_s16, %s7009_s2 }
  0x28   :  { %p5633_p4 = pnand %p5631_p3, %p5628_p2 }
  0x2a   :  { %5636 = shalt.err (!%p5633_p4)
}
  0x2b   :  { %s5637_s21 = scalar_lea.vmem %s41_s13, 8192  ;;  %p5642_p6 = scmp.lt.s32.totalorder %s41_s13, %s41_s13 }
  0x2c   :  { %p5638_p5 = scmp.ne.s32.totalorder %s41_s13, %s5637_s21  ;;  %p5643_p7 = scmp.lt.s32.totalorder %s5637_s21, %s5637_s21 }
  0x2e   :  { %p5644_p8 = por %p5643_p7, %p5642_p6 }
  0x30   :  { %p5645_p9 = pnand %p5644_p8, %p5638_p5 }
  0x32   :  { %5648 = shalt.err (!%p5645_p9)
}
  0x33   :  { %46 = dma.hbm_to_vmem [thread:$0]  %s7009_s2, 8192, %s41_s13, [#allocation7], %s5681_s1, %s5681_s1, %s5682_s9  }
  0x34   :  { %5671 = dma.done.wait [#allocation4], 4096  }
  0x35   :  { %5672 = vsyncadd [#allocation4], 4294963200 }
  0x36   :  { %5673 = dma.done.wait [#allocation7], 24576  }
  0x37   :  { %5674 = vsyncadd [#allocation7], 4294942720  ;;  %v156_v0 = vld [vmem:[#allocation6] sm:$0xff]  ;;  %v158_v13 = vld [vmem:[#allocation6 + $0x10] sm:$0xff]  ;;  %s5684_s2 = smov [#allocation9]  }
  0x38   :  { %v160_v1 = vld [vmem:[#allocation6 + $0x20] sm:$0xff]  ;;  %v162_v14 = vld [vmem:[#allocation6 + $0x30] sm:$0xff]  ;;  %s4394_s23 = sshll.u32 %s5684_s2, 4  ;;  %s4395_s23 = int_to_ptr.vmem [resolvable:$true] %s4394_s23 }
  0x39   :  { %v164_v2 = vld [vmem:[#allocation6 + $0x40] sm:$0xff]  ;;  %v4440_v3 = vcombine.high %v156_v0, %v160_v1  ;;  %v4439_v4 = vcombine.low %v156_v0, %v160_v1  ;;  %v4444_v15 = vcombine.high %v158_v13, %v162_v14  ;;  %v4443_v16 = vcombine.low %v158_v13, %v162_v14  ;;  %v166_v17 = vld [vmem:[#allocation6 + $0x50] sm:$0xff]  ;;  %s5649_s24 = scalar_lea.vmem %s4395_s23, 4096  ;;  %p5654_p11 = scmp.lt.s32.totalorder %s4395_s23, %s4395_s23 }
  0x3a   :  { %v168_v5 = vld [vmem:[#allocation6 + $0x60] sm:$0xff]  ;;  %v170_v18 = vld [vmem:[#allocation6 + $0x70] sm:$0xff]  ;;  %p5650_p10 = scmp.ne.s32.totalorder %s4395_s23, %s5649_s24  ;;  %p5655_p12 = scmp.lt.s32.totalorder %s5649_s24, %s5649_s24 }
  0x3b   :  { %v4448_v6 = vcombine.high %v164_v2, %v168_v5  ;;  %v172_v7 = vld [vmem:[#allocation6 + $0x80] sm:$0xff]  ;;  %1084 = vmatprep.subr.bf16.mxu1 %v4440_v3  ;;  %v4447_v9 = vcombine.low %v164_v2, %v168_v5  ;;  %v4452_v20 = vcombine.high %v166_v17, %v170_v18  ;;  %v174_v21 = vld [vmem:[#allocation6 + $0x90] sm:$0xff]  ;;  %1470 = vmatprep.subr.bf16.mxu0 %v4444_v15 }
  0x3c   :  { %v176_v8 = vld [vmem:[#allocation6 + $0xa0] sm:$0xff]  ;;  %1085 = vmatpush1.bf16.msra.mxu1 %v4439_v4  ;;  %v178_v23 = vld [vmem:[#allocation6 + $0xb0] sm:$0xff]  ;;  %1471 = vmatpush1.bf16.msra.mxu0 %v4443_v16  ;;  %v4451_v26 = vcombine.low %v166_v17, %v170_v18  ;;  %p5656_p13 = por %p5655_p12, %p5654_p11 }
  0x3d   :  { %1086 = vmatprep.subr.bf16.mxu1 %v4448_v6  ;;  %v4456_v10 = vcombine.high %v172_v7, %v176_v8  ;;  %v180_v11 = vld [vmem:[#allocation6 + $0xc0] sm:$0xff]  ;;  %v4455_v19 = vcombine.low %v172_v7, %v176_v8  ;;  %1472 = vmatprep.subr.bf16.mxu0 %v4452_v20  ;;  %v4460_v27 = vcombine.high %v174_v21, %v178_v23  ;;  %v182_v29 = vld [vmem:[#allocation6 + $0xd0] sm:$0xff] }
  0x3e   :  { %v184_v12 = vld [vmem:[#allocation6 + $0xe0] sm:$0xff]  ;;  %v186_v30 = vld [vmem:[#allocation6 + $0xf0] sm:$0xff]  ;;  %v4459_v34 = vcombine.low %v174_v21, %v178_v23  ;;  %p5657_p0 = pnand %p5656_p13, %p5650_p10 }
  0x3f   :  { %v4464_v22 = vcombine.high %v180_v11, %v184_v12  ;;  %v188_v24 = vld [vmem:[#allocation6 + $0x100] sm:$0xff]  ;;  %v4463_v28 = vcombine.low %v180_v11, %v184_v12  ;;  %v4468_v35 = vcombine.high %v182_v29, %v186_v30  ;;  %v190_v36 = vld [vmem:[#allocation6 + $0x110] sm:$0xff]  ;;  %v4467_v43 = vcombine.low %v182_v29, %v186_v30 }
  0x40   :  { %1087 = vmatpush1.bf16.msra.mxu1 %v4447_v9  ;;  %v192_v25 = vld [vmem:[#allocation6 + $0x120] sm:$0xff]  ;;  %1473 = vmatpush1.bf16.msra.mxu0 %v4451_v26  ;;  %v194_v37 = vld [vmem:[#allocation6 + $0x130] sm:$0xff] }
  0x41   :  { %1088 = vmatprep.subr.bf16.mxu1 %v4456_v10  ;;  %v4472_v31 = vcombine.high %v188_v24, %v192_v25  ;;  %v196_v32 = vld [vmem:[#allocation6 + $0x140] sm:$0xff]  ;;  %1474 = vmatprep.subr.bf16.mxu0 %v4460_v27  ;;  %v4471_v38 = vcombine.low %v188_v24, %v192_v25  ;;  %v4476_v44 = vcombine.high %v190_v36, %v194_v37  ;;  %v198_v46 = vld [vmem:[#allocation6 + $0x150] sm:$0xff] }
  0x42   :  { %v200_v33 = vld [vmem:[#allocation6 + $0x160] sm:$0xff]  ;;  %v202_v47 = vld [vmem:[#allocation6 + $0x170] sm:$0xff]  ;;  %v4475_v51 = vcombine.low %v190_v36, %v194_v37 }
  0x43   :  { %v5747_v39 = vld [vmem:[#allocation3 + $0x4] ss:$8 sps:$4 sm:$0xff]   ;;  %v4480_v40 = vcombine.high %v196_v32, %v200_v33  ;;  %v4479_v45 = vcombine.low %v196_v32, %v200_v33  ;;  %v4484_v52 = vcombine.high %v198_v46, %v202_v47  ;;  %v206_v54 = vld [vmem:[#allocation6 + $0x190] sm:$0xff]  ;;  %v4483_v59 = vcombine.low %v198_v46, %v202_v47 }
  0x44   :  { %1089 = vmatpush1.bf16.msra.mxu1 %v4455_v19  ;;  %v204_v41 = vld [vmem:[#allocation6 + $0x180] sm:$0xff]  ;;  %1475 = vmatpush1.bf16.msra.mxu0 %v4459_v34  ;;  %v210_v55 = vld [vmem:[#allocation6 + $0x1b0] sm:$0xff] }
  0x45   :  { %1090 = vmatprep.subr.bf16.mxu1 %v4464_v22  ;;  %v208_v42 = vld [vmem:[#allocation6 + $0x1a0] sm:$0xff]  ;;  %1116 = vmatprep.mubr.bf16.mxu1 %v5747_v39  ;;  %v4492_v60 = vcombine.high %v206_v54, %v210_v55  ;;  %v214_v62 = vld [vmem:[#allocation6 + $0x1d0] sm:$0xff]  ;;  %v4491_v3 = vcombine.low %v206_v54, %v210_v55 }
  0x46   :  { %1476 = vmatprep.subr.bf16.mxu0 %v4468_v35  ;;  %1502 = vmatprep.mubr.bf16.mxu0 %v5747_v39  ;;  %v4488_v48 = vcombine.high %v204_v41, %v208_v42  ;;  %v212_v49 = vld [vmem:[#allocation6 + $0x1c0] sm:$0xff]  ;;  %v4487_v53 = vcombine.low %v204_v41, %v208_v42  ;;  %v218_v63 = vld [vmem:[#allocation6 + $0x1f0] sm:$0xff] }
  0x47   :  { %v216_v50 = vld [vmem:[#allocation6 + $0x1e0] sm:$0xff]  ;;  %v4500_v4 = vcombine.high %v214_v62, %v218_v63  ;;  %v222_v6 = vld [vmem:[#allocation6 + $0x210] sm:$0xff]  ;;  %v4499_v11 = vcombine.low %v214_v62, %v218_v63 }
  0x48   :  { %1091 = vmatpush1.bf16.msra.mxu1 %v4463_v28  ;;  %1477 = vmatpush1.bf16.msra.mxu0 %v4467_v43  ;;  %v4496_v56 = vcombine.high %v212_v49, %v216_v50  ;;  %v220_v57 = vld [vmem:[#allocation6 + $0x200] sm:$0xff]  ;;  %v4495_v61 = vcombine.low %v212_v49, %v216_v50  ;;  %v226_v7 = vld [vmem:[#allocation6 + $0x230] sm:$0xff] }
  0x49   :  { %1092 = vmatprep.subr.bf16.mxu1 %v4472_v31  ;;  %1478 = vmatprep.subr.bf16.mxu0 %v4476_v44  ;;  %v224_v58 = vld [vmem:[#allocation6 + $0x220] sm:$0xff]  ;;  %v4508_v12 = vcombine.high %v222_v6, %v226_v7  ;;  %v230_v14 = vld [vmem:[#allocation6 + $0x250] sm:$0xff]  ;;  %v4507_v19 = vcombine.low %v222_v6, %v226_v7 }
  0x4a   :  { %v4504_v0 = vcombine.high %v220_v57, %v224_v58  ;;  %v228_v1 = vld [vmem:[#allocation6 + $0x240] sm:$0xff]  ;;  %v4503_v5 = vcombine.low %v220_v57, %v224_v58  ;;  %v234_v15 = vld [vmem:[#allocation6 + $0x270] sm:$0xff]  ;;  %v157_v57 = vld [vmem:[#allocation6 + $0x8] sm:$0xff] }
  0x4b   :  { %v232_v2 = vld [vmem:[#allocation6 + $0x260] sm:$0xff]  ;;  %v4516_v20 = vcombine.high %v230_v14, %v234_v15  ;;  %v238_v22 = vld [vmem:[#allocation6 + $0x290] sm:$0xff]  ;;  %v4515_v27 = vcombine.low %v230_v14, %v234_v15  ;;  %v161_v58 = vld [vmem:[#allocation6 + $0x28] sm:$0xff] }
  0x4c   :  { %1093 = vmatpush1.bf16.msra.mxu1 %v4471_v38  ;;  %1479 = vmatpush1.bf16.msra.mxu0 %v4475_v51  ;;  %v4512_v8 = vcombine.high %v228_v1, %v232_v2  ;;  %v236_v9 = vld [vmem:[#allocation6 + $0x280] sm:$0xff]  ;;  %v4511_v13 = vcombine.low %v228_v1, %v232_v2  ;;  %v242_v23 = vld [vmem:[#allocation6 + $0x2b0] sm:$0xff]  ;;  %v165_v1 = vld [vmem:[#allocation6 + $0x48] sm:$0xff] }
  0x4d   :  { %1094 = vmatprep.subr.bf16.mxu1 %v4480_v40  ;;  %1480 = vmatprep.subr.bf16.mxu0 %v4484_v52  ;;  %v240_v10 = vld [vmem:[#allocation6 + $0x2a0] sm:$0xff]  ;;  %v4524_v28 = vcombine.high %v238_v22, %v242_v23  ;;  %v246_v30 = vld [vmem:[#allocation6 + $0x2d0] sm:$0xff]  ;;  %v4523_v35 = vcombine.low %v238_v22, %v242_v23  ;;  %v169_v2 = vld [vmem:[#allocation6 + $0x68] sm:$0xff] }
  0x4e   :  { %v4520_v16 = vcombine.high %v236_v9, %v240_v10  ;;  %v244_v17 = vld [vmem:[#allocation6 + $0x2c0] sm:$0xff]  ;;  %v4519_v21 = vcombine.low %v236_v9, %v240_v10  ;;  %v250_v31 = vld [vmem:[#allocation6 + $0x2f0] sm:$0xff]  ;;  %v173_v9 = vld [vmem:[#allocation6 + $0x88] sm:$0xff]  ;;  %v4449_v15 = vcombine.low %v165_v1, %v169_v2 }
  0x4f   :  { %v248_v18 = vld [vmem:[#allocation6 + $0x2e0] sm:$0xff]  ;;  %v4532_v36 = vcombine.high %v246_v30, %v250_v31  ;;  %v254_v38 = vld [vmem:[#allocation6 + $0x310] sm:$0xff]  ;;  %v4531_v44 = vcombine.low %v246_v30, %v250_v31  ;;  %v177_v10 = vld [vmem:[#allocation6 + $0xa8] sm:$0xff] }
  0x50   :  { %1095 = vmatpush1.bf16.msra.mxu1 %v4479_v45  ;;  %1481 = vmatpush1.bf16.msra.mxu0 %v4483_v59  ;;  %v4528_v24 = vcombine.high %v244_v17, %v248_v18  ;;  %v252_v25 = vld [vmem:[#allocation6 + $0x300] sm:$0xff]  ;;  %v4527_v29 = vcombine.low %v244_v17, %v248_v18  ;;  %v258_v40 = vld [vmem:[#allocation6 + $0x330] sm:$0xff]  ;;  %v5758_v14 = vld [vmem:[#allocation6 + $0x38] sm:$0xff]  ;;  %v4457_v22 = vcombine.low %v173_v9, %v177_v10 }
  0x51   :  { %1096 = vmatprep.subr.bf16.mxu1 %v4488_v48  ;;  %1482 = vmatprep.subr.bf16.mxu0 %v4492_v60  ;;  %v256_v26 = vld [vmem:[#allocation6 + $0x320] sm:$0xff]  ;;  %v4540_v45 = vcombine.high %v254_v38, %v258_v40  ;;  %v262_v49 = vld [vmem:[#allocation6 + $0x350] sm:$0xff]  ;;  %v4539_v52 = vcombine.low %v254_v38, %v258_v40  ;;  %v185_v17 = vld [vmem:[#allocation6 + $0xe8] sm:$0xff] }
  0x52   :  { %v4536_v32 = vcombine.high %v252_v25, %v256_v26  ;;  %v260_v33 = vld [vmem:[#allocation6 + $0x340] sm:$0xff]  ;;  %v4535_v37 = vcombine.low %v252_v25, %v256_v26  ;;  %v266_v50 = vld [vmem:[#allocation6 + $0x370] sm:$0xff]  ;;  %v189_v23 = vld [vmem:[#allocation6 + $0x108] sm:$0xff] }
  0x53   :  { %v264_v34 = vld [vmem:[#allocation6 + $0x360] sm:$0xff]  ;;  %v274_v54 = vld [vmem:[#allocation6 + $0x3b0] sm:$0xff]  ;;  %v4548_v55 = vcombine.high %v262_v49, %v266_v50  ;;  %v4547_v60 = vcombine.low %v262_v49, %v266_v50  ;;  %v213_v38 = vld [vmem:[#allocation6 + $0x1c8] sm:$0xff] }
  0x54   :  { %1097 = vmatpush1.bf16.msra.mxu1 %v4487_v53  ;;  %1483 = vmatpush1.bf16.msra.mxu0 %v4491_v3  ;;  %v4544_v41 = vcombine.high %v260_v33, %v264_v34  ;;  %v268_v42 = vld [vmem:[#allocation6 + $0x380] sm:$0xff]  ;;  %v4543_v46 = vcombine.low %v260_v33, %v264_v34  ;;  %v270_v53 = vld [vmem:[#allocation6 + $0x390] sm:$0xff]  ;;  %v205_v34 = vld [vmem:[#allocation6 + $0x188] sm:$0xff] }
  0x55   :  { %1098 = vmatprep.subr.bf16.mxu1 %v4496_v56  ;;  %1484 = vmatprep.subr.bf16.mxu0 %v4500_v4  ;;  %v272_v43 = vld [vmem:[#allocation6 + $0x3a0] sm:$0xff]  ;;  %v278_v62 = vld [vmem:[#allocation6 + $0x3d0] sm:$0xff]  ;;  %v4442_v4 = vcombine.high %v157_v57, %v161_v58  ;;  %v4555_v6 = vcombine.low %v270_v53, %v274_v54  ;;  %v217_v40 = vld [vmem:[#allocation6 + $0x1e8] sm:$0xff] }
  0x56   :  { %v276_v47 = vld [vmem:[#allocation6 + $0x3c0] sm:$0xff]  ;;  %v4552_v51 = vcombine.high %v268_v42, %v272_v43  ;;  %v4551_v56 = vcombine.low %v268_v42, %v272_v43  ;;  %v282_v63 = vld [vmem:[#allocation6 + $0x3f0] sm:$0xff]  ;;  %v229_v49 = vld [vmem:[#allocation6 + $0x248] sm:$0xff] }
  0x57   :  { %v280_v48 = vld [vmem:[#allocation6 + $0x3e0] sm:$0xff]  ;;  %v4564_v7 = vcombine.high %v278_v62, %v282_v63  ;;  %v5773_v31 = vld [vmem:[#allocation3 + $0x34] ss:$8 sps:$4 sm:$0xff]   ;;  %v233_v50 = vld [vmem:[#allocation6 + $0x268] sm:$0xff] }
  0x58   :  { %1099 = vmatpush1.bf16.msra.mxu1 %v4495_v61  ;;  %1485 = vmatpush1.bf16.msra.mxu0 %v4499_v11  ;;  %v4560_v59 = vcombine.high %v276_v47, %v280_v48  ;;  %v4556_v61 = vcombine.high %v270_v53, %v274_v54  ;;  %v5751_v3 = vld [vmem:[#allocation3] ss:$8 sps:$4 sm:$0xff]   ;;  %v4450_v11 = vcombine.high %v165_v1, %v169_v2  ;;  %v5781_v42 = vld [vmem:[#allocation3 + $0x44] ss:$8 sps:$4 sm:$0xff]  }
  0x59   :  { %1100 = vmatprep.subr.bf16.mxu1 %v4504_v0  ;;  %1486 = vmatprep.subr.bf16.mxu0 %v4508_v12  ;;  %v4559_v0 = vcombine.low %v276_v47, %v280_v48  ;;  %v4563_v12 = vcombine.low %v278_v62, %v282_v63  ;;  %v5771_v30 = vld [vmem:[#allocation3 + $0x20] ss:$8 sps:$4 sm:$0xff]   ;;  %v4497_v47 = vcombine.low %v213_v38, %v217_v40  ;;  %v5797_v62 = vld [vmem:[#allocation3 + $0x64] ss:$8 sps:$4 sm:$0xff]  }
  0x5a   :  { %v4514_v54 = vcombine.high %v229_v49, %v233_v50  ;;  %v253_v1 = vld [vmem:[#allocation6 + $0x308] sm:$0xff] }
  0x5b   :  { %v257_v2 = vld [vmem:[#allocation6 + $0x328] sm:$0xff] }
  0x5c   :  { %1101 = vmatpush1.bf16.msra.mxu1 %v4503_v5  ;;  %1487 = vmatpush1.bf16.msra.mxu0 %v4507_v19  ;;  %v5753_v5 = vld [vmem:[#allocation3 + $0x14] ss:$8 sps:$4 sm:$0xff]   ;;  %v5763_v19 = vld [vmem:[#allocation3 + $0x10] ss:$8 sps:$4 sm:$0xff]  }
  0x5d   :  { %1102 = vmatprep.subr.bf16.mxu1 %v4512_v8  ;;  %1488 = vmatprep.subr.bf16.mxu0 %v4516_v20  ;;  %v4441_v8 = vcombine.low %v157_v57, %v161_v58  ;;  %v4458_v20 = vcombine.high %v173_v9, %v177_v10  ;;  %v4513_v57 = vcombine.low %v229_v49, %v233_v50  ;;  %v5803_v9 = vld [vmem:[#allocation3 + $0x60] ss:$8 sps:$4 sm:$0xff]   ;;  %v5805_v10 = vld [vmem:[#allocation3 + $0x74] ss:$8 sps:$4 sm:$0xff]  }
  0x5e   :  { %v5837_v49 = vld [vmem:[#allocation3 + $0xa0] ss:$8 sps:$4 sm:$0xff]   ;;  %v5839_v50 = vld [vmem:[#allocation3 + $0xb4] ss:$8 sps:$4 sm:$0xff]  }
  0x60   :  { %1103 = vmatpush1.bf16.msra.mxu1 %v4511_v13  ;;  %1489 = vmatpush1.bf16.msra.mxu0 %v4515_v27  ;;  %v5756_v13 = vld [vmem:[#allocation6 + $0x18] sm:$0xff] }
  0x61   :  { %1104 = vmatprep.subr.bf16.mxu1 %v4520_v16  ;;  %1490 = vmatprep.subr.bf16.mxu0 %v4524_v28  ;;  %v181_v16 = vld [vmem:[#allocation6 + $0xc8] sm:$0xff]  ;;  %v4445_v18 = vcombine.low %v5756_v13, %v5758_v14 }
  0x62   :  { %v4466_v25 = vcombine.high %v181_v16, %v185_v17  ;;  %v4465_v26 = vcombine.low %v181_v16, %v185_v17  ;;  %v197_v28 = vld [vmem:[#allocation6 + $0x148] sm:$0xff] }
  0x63   :  { %v273_v16 = vld [vmem:[#allocation6 + $0x3a8] sm:$0xff] }
  0x64   :  { %1105 = vmatpush1.bf16.msra.mxu1 %v4519_v21  ;;  %1491 = vmatpush1.bf16.msra.mxu0 %v4523_v35  ;;  %v5765_v21 = vld [vmem:[#allocation3 + $0x24] ss:$8 sps:$4 sm:$0xff]  }
  0x65   :  { %1106 = vmatprep.subr.bf16.mxu1 %v4528_v24  ;;  %1492 = vmatprep.subr.bf16.mxu0 %v4532_v36  ;;  %v193_v24 = vld [vmem:[#allocation6 + $0x128] sm:$0xff] }
  0x66   :  { %v4474_v27 = vcombine.high %v189_v23, %v193_v24  ;;  %v209_v35 = vld [vmem:[#allocation6 + $0x1a8] sm:$0xff] }
  0x67   :  { %v4489_v43 = vcombine.low %v205_v34, %v209_v35 }
  0x68   :  { %1107 = vmatpush1.bf16.msra.mxu1 %v4527_v29  ;;  %1493 = vmatpush1.bf16.msra.mxu0 %v4531_v44  ;;  %v201_v29 = vld [vmem:[#allocation6 + $0x168] sm:$0xff]  ;;  %v4498_v44 = vcombine.high %v213_v38, %v217_v40 }
  0x69   :  { %1108 = vmatprep.subr.bf16.mxu1 %v4536_v32  ;;  %1494 = vmatprep.subr.bf16.mxu0 %v4540_v45  ;;  %v4473_v32 = vcombine.low %v189_v23, %v193_v24  ;;  %v4482_v33 = vcombine.high %v197_v28, %v201_v29  ;;  %v4481_v36 = vcombine.low %v197_v28, %v201_v29  ;;  %v221_v45 = vld [vmem:[#allocation6 + $0x208] sm:$0xff]  ;;  %v5811_v24 = vld [vmem:[#allocation3 + $0x70] ss:$8 sps:$4 sm:$0xff]  }
  0x6a   :  { %v281_v23 = vld [vmem:[#allocation6 + $0x3e8] sm:$0xff] }
  0x6b   :  { %v4943_v28 = vld [vmem:[#allocation8] ss:$8 sps:$4 sm:$0xff]   ;;  %v4951_v40 = vld [vmem:[#allocation8 + $0x24] ss:$8 sps:$4 sm:$0xff]  }
  0x6c   :  { %1109 = vmatpush1.bf16.msra.mxu1 %v4535_v37  ;;  %1495 = vmatpush1.bf16.msra.mxu0 %v4539_v52  ;;  %v4490_v37 = vcombine.high %v205_v34, %v209_v35  ;;  %v5789_v52 = vld [vmem:[#allocation3 + $0x54] ss:$8 sps:$4 sm:$0xff]   ;;  %v5821_v34 = vld [vmem:[#allocation3 + $0x80] ss:$8 sps:$4 sm:$0xff]  }
  0x6d   :  { %1110 = vmatprep.subr.bf16.mxu1 %v4544_v41  ;;  %1496 = vmatprep.subr.bf16.mxu0 %v4548_v55  ;;  %v5779_v41 = vld [vmem:[#allocation3 + $0x30] ss:$8 sps:$4 sm:$0xff]   ;;  %v237_v55 = vld [vmem:[#allocation6 + $0x288] sm:$0xff]  ;;  %v5823_v35 = vld [vmem:[#allocation3 + $0x94] ss:$8 sps:$4 sm:$0xff]  }
  0x6e   :  { %v4949_v38 = vld [vmem:[#allocation8 + $0x20] ss:$8 sps:$4 sm:$0xff]  }
  0x70   :  { %1111 = vmatpush1.bf16.msra.mxu1 %v4543_v46  ;;  %1497 = vmatpush1.bf16.msra.mxu0 %v4547_v60  ;;  %v225_v46 = vld [vmem:[#allocation6 + $0x228] sm:$0xff] }
  0x71   :  { %1112 = vmatprep.subr.bf16.mxu1 %v4552_v51  ;;  %1498 = vmatprep.subr.bf16.mxu0 %v4556_v61  ;;  %v4506_v48 = vcombine.high %v221_v45, %v225_v46  ;;  %v5787_v51 = vld [vmem:[#allocation3 + $0x40] ss:$8 sps:$4 sm:$0xff]   ;;  %v4505_v53 = vcombine.low %v221_v45, %v225_v46  ;;  %v5795_v61 = vld [vmem:[#allocation3 + $0x50] ss:$8 sps:$4 sm:$0xff]   ;;  %v4954_v45 = vld [vmem:[#allocation8 + $0x34] ss:$8 sps:$4 sm:$0xff]  }
  0x72   :  { %v249_v60 = vld [vmem:[#allocation6 + $0x2e8] sm:$0xff]  ;;  %v4952_v46 = vld [vmem:[#allocation8 + $0x30] ss:$8 sps:$4 sm:$0xff]  }
  0x74   :  { %1113 = vmatpush1.bf16.msra.mxu1 %v4551_v56  ;;  %1499 = vmatpush1.bf16.msra.mxu0 %v4555_v6  ;;  %v241_v56 = vld [vmem:[#allocation6 + $0x2a8] sm:$0xff]  ;;  %v4538_v6 = vcombine.high %v253_v1, %v257_v2 }
  0x75   :  { %1114 = vmatprep.subr.bf16.mxu1 %v4560_v59  ;;  %1500 = vmatprep.subr.bf16.mxu0 %v4564_v7  ;;  %v4522_v58 = vcombine.high %v237_v55, %v241_v56  ;;  %v245_v59 = vld [vmem:[#allocation6 + $0x2c8] sm:$0xff]  ;;  %v4521_v63 = vcombine.low %v237_v55, %v241_v56 }
  0x76   :  { %v261_v7 = vld [vmem:[#allocation6 + $0x348] sm:$0xff] }
  0x77   :  { %v4963_v55 = vld [vmem:[#allocation8 + $0x64] ss:$8 sps:$4 sm:$0xff]   ;;  %v4961_v56 = vld [vmem:[#allocation8 + $0x60] ss:$8 sps:$4 sm:$0xff]  }
  0x78   :  { %1115 = vmatpush1.bf16.msra.mxu1 %v4559_v0  ;;  %1501 = vmatpush1.bf16.msra.mxu0 %v4563_v12  ;;  %v4530_v0 = vcombine.high %v245_v59, %v249_v60 }
  0x79   :  { %1277 = vmatprep.subr.bf16.mxu1 %v4442_v4  ;;  %v4529_v4 = vcombine.low %v245_v59, %v249_v60  ;;  %v4966_v59 = vld [vmem:[#allocation8 + $0x74] ss:$8 sps:$4 sm:$0xff]   ;;  %v4964_v60 = vld [vmem:[#allocation8 + $0x70] ss:$8 sps:$4 sm:$0xff]  }
  0x7b   :  { %1117 = vmatmul.mubr.bf16.vlgmr.msra.gmra.mrb[0].mxu1 %v5751_v3  ;;  %1503 = vmatmul.mubr.bf16.vlgmr.msra.gmra.mrb[0].mxu0 %v5751_v3 }
  0x7c   :  { %1278 = vmatpush1.bf16.msra.mxu1 %v4441_v8  ;;  %1126 = vmatprep.mubr.bf16.mxu1 %v5753_v5  ;;  %v265_v8 = vld [vmem:[#allocation6 + $0x368] sm:$0xff] }
  0x7d   :  { %1279 = vmatprep.subr.bf16.mxu1 %v4450_v11  ;;  %1512 = vmatprep.mubr.bf16.mxu0 %v5753_v5  ;;  %v4537_v11 = vcombine.low %v253_v1, %v257_v2  ;;  %v4546_v12 = vcombine.high %v261_v7, %v265_v8  ;;  %v4545_v17 = vcombine.low %v261_v7, %v265_v8  ;;  %v5855_v1 = vld [vmem:[#allocation3 + $0xd4] ss:$8 sps:$4 sm:$0xff]   ;;  %v4967_v2 = vld [vmem:[#allocation8 + $0x80] ss:$8 sps:$4 sm:$0xff]   ;;  %v5861_v7 = vld [vmem:[#allocation3 + $0xd0] ss:$8 sps:$4 sm:$0xff]  }
  0x7e   :  { %v4975_v8 = vld [vmem:[#allocation8 + $0xa4] ss:$8 sps:$4 sm:$0xff]  }
  0x80   :  { %1280 = vmatpush1.bf16.msra.mxu1 %v4449_v15  ;;  %v269_v15 = vld [vmem:[#allocation6 + $0x388] sm:$0xff] }
  0x81   :  { %1281 = vmatprep.subr.bf16.mxu1 %v4458_v20  ;;  %v4554_v20 = vcombine.high %v269_v15, %v273_v16 }
  0x83   :  { %1127 = vmatmul.mubr.bf16.gmra.mrb[4].mxu1 %v5763_v19  ;;  %1513 = vmatmul.mubr.bf16.gmra.mrb[4].mxu0 %v5763_v19 }
  0x84   :  { %1136 = vmatprep.mubr.bf16.mxu1 %v5765_v21  ;;  %1282 = vmatpush1.bf16.msra.mxu1 %v4457_v22  ;;  %v277_v22 = vld [vmem:[#allocation6 + $0x3c8] sm:$0xff] }
  0x85   :  { %1283 = vmatprep.subr.bf16.mxu1 %v4466_v25  ;;  %1522 = vmatprep.mubr.bf16.mxu0 %v5765_v21  ;;  %v5813_v25 = vld [vmem:[#allocation3 + $0x84] ss:$8 sps:$4 sm:$0xff]   ;;  %v4561_v29 = vcombine.low %v277_v22, %v281_v23 }
  0x88   :  { %1284 = vmatpush1.bf16.msra.mxu1 %v4465_v26  ;;  %v4553_v26 = vcombine.low %v269_v15, %v273_v16  ;;  %v4978_v15 = vld [vmem:[#allocation8 + $0xb4] ss:$8 sps:$4 sm:$0xff]   ;;  %v4976_v16 = vld [vmem:[#allocation8 + $0xb0] ss:$8 sps:$4 sm:$0xff]  }
  0x89   :  { %1285 = vmatprep.subr.bf16.mxu1 %v4474_v27  ;;  %v4562_v27 = vcombine.high %v277_v22, %v281_v23  ;;  %v4981_v22 = vld [vmem:[#allocation8 + $0xc4] ss:$8 sps:$4 sm:$0xff]   ;;  %v4979_v23 = vld [vmem:[#allocation8 + $0xc0] ss:$8 sps:$4 sm:$0xff]  }
  0x8b   :  { %1137 = vmatmul.mubr.bf16.gmra.mrb[8].mxu1 %v5771_v30  ;;  %1523 = vmatmul.mubr.bf16.gmra.mrb[8].mxu0 %v5771_v30 }
  0x8c   :  { %1146 = vmatprep.mubr.bf16.mxu1 %v5773_v31  ;;  %1286 = vmatpush1.bf16.msra.mxu1 %v4473_v32  ;;  %v4945_v32 = vld [vmem:[#allocation8 + $0x4] ss:$8 sps:$4 sm:$0xff]  }
  0x8d   :  { %1287 = vmatprep.subr.bf16.mxu1 %v4482_v33  ;;  %1532 = vmatprep.mubr.bf16.mxu0 %v5773_v31  ;;  %v4446_v33 = vcombine.high %v5756_v13, %v5758_v14  ;;  %v203_v14 = vld [vmem:[#allocation6 + $0x178] sm:$0xff] }
  0x8e   :  { %3584 = vmatprep.subr.bf16.mxu0 %v4945_v32  ;;  %v4985_v32 = vld [vmem:[#allocation8 + $0xe0] ss:$8 sps:$4 sm:$0xff]  }
  0x8f   :  { %3585 = vmatpush1.bf16.msra.mxu0 %v4943_v28  ;;  %v5877_v28 = vld [vmem:[#allocation3 + $0xf0] ss:$8 sps:$4 sm:$0xff]  }
  0x90   :  { %1288 = vmatpush1.bf16.msra.mxu1 %v4481_v36  ;;  %v4948_v36 = vld [vmem:[#allocation8 + $0x14] ss:$8 sps:$4 sm:$0xff]  }
  0x91   :  { %1289 = vmatprep.subr.bf16.mxu1 %v4490_v37  ;;  %v4946_v37 = vld [vmem:[#allocation8 + $0x10] ss:$8 sps:$4 sm:$0xff]   ;;  %3586 = vmatprep.subr.bf16.mxu0 %v4948_v36 }
  0x92   :  { %v171_v36 = vld [vmem:[#allocation6 + $0x78] sm:$0xff] }
  0x93   :  { %1147 = vmatmul.mubr.bf16.gmra.mrb[12].mxu1 %v5779_v41  ;;  %1533 = vmatmul.mubr.bf16.gmra.mrb[12].mxu0 %v5779_v41 }
  0x94   :  { %1156 = vmatprep.mubr.bf16.mxu1 %v5781_v42  ;;  %1290 = vmatpush1.bf16.msra.mxu1 %v4489_v43  ;;  %v5829_v43 = vld [vmem:[#allocation3 + $0x90] ss:$8 sps:$4 sm:$0xff]  }
  0x95   :  { %1291 = vmatprep.subr.bf16.mxu1 %v4498_v44  ;;  %1542 = vmatprep.mubr.bf16.mxu0 %v5781_v42  ;;  %v5831_v44 = vld [vmem:[#allocation3 + $0xa4] ss:$8 sps:$4 sm:$0xff]  }
  0x96   :  { %3587 = vmatpush1.bf16.msra.mxu0 %v4946_v37  ;;  %v4990_v37 = vld [vmem:[#allocation8 + $0xf4] ss:$8 sps:$4 sm:$0xff]  }
  0x97   :  { %3588 = vmatprep.subr.bf16.mxu0 %v4951_v40 }
  0x98   :  { %1292 = vmatpush1.bf16.msra.mxu1 %v4497_v47  ;;  %v4955_v47 = vld [vmem:[#allocation8 + $0x40] ss:$8 sps:$4 sm:$0xff]  }
  0x99   :  { %1293 = vmatprep.subr.bf16.mxu1 %v4506_v48  ;;  %v4957_v48 = vld [vmem:[#allocation8 + $0x44] ss:$8 sps:$4 sm:$0xff]  }
  0x9a   :  { %3589 = vmatpush1.bf16.msra.mxu0 %v4949_v38  ;;  %v4988_v38 = vld [vmem:[#allocation8 + $0xf0] ss:$8 sps:$4 sm:$0xff]  }
  0x9b   :  { %1157 = vmatmul.mubr.bf16.gmra.mrb[16].mxu1 %v5787_v51  ;;  %1543 = vmatmul.mubr.bf16.gmra.mrb[16].mxu0 %v5787_v51 }
  0x9c   :  { %1166 = vmatprep.mubr.bf16.mxu1 %v5789_v52  ;;  %1294 = vmatpush1.bf16.msra.mxu1 %v4505_v53  ;;  %v4960_v53 = vld [vmem:[#allocation8 + $0x54] ss:$8 sps:$4 sm:$0xff]  }
  0x9d   :  { %1295 = vmatprep.subr.bf16.mxu1 %v4514_v54  ;;  %1552 = vmatprep.mubr.bf16.mxu0 %v5789_v52  ;;  %v4958_v54 = vld [vmem:[#allocation8 + $0x50] ss:$8 sps:$4 sm:$0xff]  }
  0x9e   :  { %3590 = vmatprep.subr.bf16.mxu0 %v4954_v45  ;;  %v175_v45 = vld [vmem:[#allocation6 + $0x98] sm:$0xff] }
  0x9f   :  { %3591 = vmatpush1.bf16.msra.mxu0 %v4952_v46  ;;  %v179_v46 = vld [vmem:[#allocation6 + $0xb8] sm:$0xff] }
  0xa0   :  { %1296 = vmatpush1.bf16.msra.mxu1 %v4513_v57  ;;  %3592 = vmatprep.subr.bf16.mxu0 %v4957_v48  ;;  %v5845_v57 = vld [vmem:[#allocation3 + $0xb0] ss:$8 sps:$4 sm:$0xff]  }
  0xa1   :  { %1297 = vmatprep.subr.bf16.mxu1 %v4522_v58  ;;  %v5847_v58 = vld [vmem:[#allocation3 + $0xc4] ss:$8 sps:$4 sm:$0xff]   ;;  %v183_v48 = vld [vmem:[#allocation6 + $0xd8] sm:$0xff] }
  0xa3   :  { %1167 = vmatmul.mubr.bf16.gmra.mrb[20].mxu1 %v5795_v61  ;;  %1553 = vmatmul.mubr.bf16.gmra.mrb[20].mxu0 %v5795_v61 }
  0xa4   :  { %1176 = vmatprep.mubr.bf16.mxu1 %v5797_v62  ;;  %1298 = vmatpush1.bf16.msra.mxu1 %v4521_v63  ;;  %v5853_v63 = vld [vmem:[#allocation3 + $0xc0] ss:$8 sps:$4 sm:$0xff]  }
  0xa5   :  { %1299 = vmatprep.subr.bf16.mxu1 %v4530_v0  ;;  %1562 = vmatprep.mubr.bf16.mxu0 %v5797_v62  ;;  %v4969_v0 = vld [vmem:[#allocation8 + $0x84] ss:$8 sps:$4 sm:$0xff]  }
  0xa6   :  { %3593 = vmatpush1.bf16.msra.mxu0 %v4955_v47  ;;  %v4462_v47 = vcombine.high %v175_v45, %v179_v46 }
  0xa7   :  { %3594 = vmatprep.subr.bf16.mxu0 %v4960_v53  ;;  %v187_v53 = vld [vmem:[#allocation6 + $0xf8] sm:$0xff] }
  0xa8   :  { %1300 = vmatpush1.bf16.msra.mxu1 %v4529_v4  ;;  %v4972_v4 = vld [vmem:[#allocation8 + $0x94] ss:$8 sps:$4 sm:$0xff]  }
  0xa9   :  { %1301 = vmatprep.subr.bf16.mxu1 %v4538_v6  ;;  %v4970_v6 = vld [vmem:[#allocation8 + $0x90] ss:$8 sps:$4 sm:$0xff]  }
  0xaa   :  { %3595 = vmatpush1.bf16.msra.mxu0 %v4958_v54  ;;  %v4461_v54 = vcombine.low %v175_v45, %v179_v46  ;;  %v259_v45 = vld [vmem:[#allocation6 + $0x338] sm:$0xff] }
  0xab   :  { %1177 = vmatmul.mubr.bf16.gmra.mrb[24].mxu1 %v5803_v9  ;;  %1563 = vmatmul.mubr.bf16.gmra.mrb[24].mxu0 %v5803_v9  ;;  %v263_v46 = vld [vmem:[#allocation6 + $0x358] sm:$0xff] }
  0xac   :  { %1186 = vmatprep.mubr.bf16.mxu1 %v5805_v10  ;;  %1302 = vmatpush1.bf16.msra.mxu1 %v4537_v11  ;;  %v5863_v11 = vld [vmem:[#allocation3 + $0xe4] ss:$8 sps:$4 sm:$0xff]  }
  0xad   :  { %1303 = vmatprep.subr.bf16.mxu1 %v4546_v12  ;;  %1572 = vmatprep.mubr.bf16.mxu0 %v5805_v10  ;;  %v4973_v12 = vld [vmem:[#allocation8 + $0xa0] ss:$8 sps:$4 sm:$0xff]  }
  0xae   :  { %3596 = vmatprep.subr.bf16.mxu0 %v4963_v55  ;;  %v4470_v55 = vcombine.high %v183_v48, %v187_v53 }
  0xaf   :  { %3597 = vmatpush1.bf16.msra.mxu0 %v4961_v56  ;;  %v191_v56 = vld [vmem:[#allocation6 + $0x118] sm:$0xff] }
  0xb0   :  { %1304 = vmatpush1.bf16.msra.mxu1 %v4545_v17  ;;  %3598 = vmatprep.subr.bf16.mxu0 %v4966_v59  ;;  %v5869_v17 = vld [vmem:[#allocation3 + $0xe0] ss:$8 sps:$4 sm:$0xff]   ;;  %v195_v59 = vld [vmem:[#allocation6 + $0x138] sm:$0xff] }
  0xb1   :  { %1305 = vmatprep.subr.bf16.mxu1 %v4554_v20  ;;  %v5871_v20 = vld [vmem:[#allocation3 + $0xf4] ss:$8 sps:$4 sm:$0xff]   ;;  %v4478_v13 = vcombine.high %v191_v56, %v195_v59 }
  0xb3   :  { %1187 = vmatmul.mubr.bf16.gmra.mrb[28].mxu1 %v5811_v24  ;;  %1573 = vmatmul.mubr.bf16.gmra.mrb[28].mxu0 %v5811_v24 }
  0xb4   :  { %1196 = vmatprep.mubr.bf16.mxu1 %v5813_v25  ;;  %1306 = vmatpush1.bf16.msra.mxu1 %v4553_v26  ;;  %v4984_v26 = vld [vmem:[#allocation8 + $0xd4] ss:$8 sps:$4 sm:$0xff]  }
  0xb5   :  { %1307 = vmatprep.subr.bf16.mxu1 %v4562_v27  ;;  %1582 = vmatprep.mubr.bf16.mxu0 %v5813_v25  ;;  %v4982_v27 = vld [vmem:[#allocation8 + $0xd0] ss:$8 sps:$4 sm:$0xff]  }
  0xb6   :  { %3599 = vmatpush1.bf16.msra.mxu0 %v4964_v60 }
  0xb7   :  { %3600 = vmatprep.subr.bf16.mxu0 %v4969_v0  ;;  %v207_v0 = vld [vmem:[#allocation6 + $0x198] sm:$0xff] }
  0xb8   :  { %1308 = vmatpush1.bf16.msra.mxu1 %v4561_v29  ;;  %v4987_v29 = vld [vmem:[#allocation8 + $0xe4] ss:$8 sps:$4 sm:$0xff]  }
  0xb9   :  { %1663 = vmatprep.subr.bf16.mxu1 %v4446_v33  ;;  %v167_v33 = vld [vmem:[#allocation6 + $0x58] sm:$0xff] }
  0xba   :  { %3601 = vmatpush1.bf16.msra.mxu0 %v4967_v2  ;;  %v4454_v40 = vcombine.high %v167_v33, %v171_v36  ;;  %v211_v2 = vld [vmem:[#allocation6 + $0x1b8] sm:$0xff] }
  0xbb   :  { %1197 = vmatmul.mubr.bf16.gmra.mrb[32].mxu1 %v5821_v34  ;;  %1583 = vmatmul.mubr.bf16.gmra.mrb[32].mxu0 %v5821_v34 }
  0xbc   :  { %1206 = vmatprep.mubr.bf16.mxu1 %v5823_v35  ;;  %1592 = vmatprep.mubr.bf16.mxu0 %v5823_v35 }
  0xbd   :  { %3602 = vmatprep.subr.bf16.mxu0 %v4972_v4  ;;  %v215_v4 = vld [vmem:[#allocation6 + $0x1d8] sm:$0xff] }
  0xbe   :  { %3603 = vmatpush1.bf16.msra.mxu0 %v4970_v6  ;;  %v219_v6 = vld [vmem:[#allocation6 + $0x1f8] sm:$0xff] }
  0xbf   :  { %3604 = vmatprep.subr.bf16.mxu0 %v4975_v8  ;;  %v4493_v8 = vcombine.low %v207_v0, %v211_v2 }
  0xc2   :  { %3605 = vmatpush1.bf16.msra.mxu0 %v4973_v12  ;;  %v4502_v12 = vcombine.high %v215_v4, %v219_v6 }
  0xc3   :  { %1207 = vmatmul.mubr.bf16.gmra.mrb[36].mxu1 %v5829_v43  ;;  %1593 = vmatmul.mubr.bf16.gmra.mrb[36].mxu0 %v5829_v43 }
  0xc4   :  { %1216 = vmatprep.mubr.bf16.mxu1 %v5831_v44  ;;  %1602 = vmatprep.mubr.bf16.mxu0 %v5831_v44 }
  0xc5   :  { %3606 = vmatprep.subr.bf16.mxu0 %v4978_v15  ;;  %v223_v15 = vld [vmem:[#allocation6 + $0x218] sm:$0xff] }
  0xc6   :  { %3607 = vmatpush1.bf16.msra.mxu0 %v4976_v16  ;;  %v227_v16 = vld [vmem:[#allocation6 + $0x238] sm:$0xff] }
  0xc7   :  { %3608 = vmatprep.subr.bf16.mxu0 %v4981_v22  ;;  %v231_v22 = vld [vmem:[#allocation6 + $0x258] sm:$0xff] }
  0xca   :  { %3609 = vmatpush1.bf16.msra.mxu0 %v4979_v23  ;;  %v235_v23 = vld [vmem:[#allocation6 + $0x278] sm:$0xff] }
  0xcb   :  { %1217 = vmatmul.mubr.bf16.gmra.mrb[40].mxu1 %v5837_v49  ;;  %1603 = vmatmul.mubr.bf16.gmra.mrb[40].mxu0 %v5837_v49 }
  0xcc   :  { %1226 = vmatprep.mubr.bf16.mxu1 %v5839_v50  ;;  %1612 = vmatprep.mubr.bf16.mxu0 %v5839_v50 }
  0xcd   :  { %3610 = vmatprep.subr.bf16.mxu0 %v4984_v26  ;;  %v4509_v26 = vcombine.low %v223_v15, %v227_v16 }
  0xce   :  { %3611 = vmatpush1.bf16.msra.mxu0 %v4982_v27  ;;  %v4518_v27 = vcombine.high %v231_v22, %v235_v23 }
  0xcf   :  { %3612 = vmatprep.subr.bf16.mxu0 %v4987_v29  ;;  %v239_v29 = vld [vmem:[#allocation6 + $0x298] sm:$0xff] }
  0xd2   :  { %3613 = vmatpush1.bf16.msra.mxu0 %v4985_v32  ;;  %v243_v32 = vld [vmem:[#allocation6 + $0x2b8] sm:$0xff] }
  0xd3   :  { %1227 = vmatmul.mubr.bf16.gmra.mrb[44].mxu1 %v5845_v57  ;;  %1613 = vmatmul.mubr.bf16.gmra.mrb[44].mxu0 %v5845_v57 }
  0xd4   :  { %1236 = vmatprep.mubr.bf16.mxu1 %v5847_v58  ;;  %1622 = vmatprep.mubr.bf16.mxu0 %v5847_v58 }
  0xd5   :  { %3614 = vmatprep.subr.bf16.mxu0 %v4990_v37  ;;  %v4525_v37 = vcombine.low %v239_v29, %v243_v32 }
  0xd6   :  { %3615 = vmatpush1.bf16.msra.mxu0 %v4988_v38 }
  0xdb   :  { %1237 = vmatmul.mubr.bf16.gmra.mrb[48].mxu1 %v5853_v63  ;;  %1623 = vmatmul.mubr.bf16.gmra.mrb[48].mxu0 %v5853_v63 }
  0xdc   :  { %1246 = vmatprep.mubr.bf16.mxu1 %v5855_v1  ;;  %1632 = vmatprep.mubr.bf16.mxu0 %v5855_v1 }
  0xe3   :  { %1247 = vmatmul.mubr.bf16.gmra.mrb[52].mxu1 %v5861_v7  ;;  %1633 = vmatmul.mubr.bf16.gmra.mrb[52].mxu0 %v5861_v7 }
  0xe4   :  { %1256 = vmatprep.mubr.bf16.mxu1 %v5863_v11  ;;  %1642 = vmatprep.mubr.bf16.mxu0 %v5863_v11 }
  0xeb   :  { %1257 = vmatmul.mubr.bf16.gmra.mrb[56].mxu1 %v5869_v17  ;;  %1643 = vmatmul.mubr.bf16.gmra.mrb[56].mxu0 %v5869_v17 }
  0xec   :  { %1266 = vmatprep.mubr.bf16.mxu1 %v5871_v20  ;;  %1652 = vmatprep.mubr.bf16.mxu0 %v5871_v20 }
  0xf3   :  { %1267 = vmatmul.mubr.bf16.gmra.mrb[60].mxu1 %v5877_v28  ;;  %1653 = vmatmul.mubr.bf16.gmra.mrb[60].mxu0 %v5877_v28 }
  0xf4   :  { %1309 = vmatprep.mubr.bf16.mxu1 %v5747_v39  ;;  %v4453_v39 = vcombine.low %v167_v33, %v171_v36  ;;  %v247_v33 = vld [vmem:[#allocation6 + $0x2d8] sm:$0xff] }
  0xf5   :  { %v251_v36 = vld [vmem:[#allocation6 + $0x2f8] sm:$0xff] }
  0xf6   :  { %v4534_v38 = vcombine.high %v247_v33, %v251_v36 }
  0xfb   :  { %1310 = vmatmul.mubr.bf16.vlgmr.msra.gmra.mrb[64].mxu1 %v5751_v3  ;;  %v4469_v3 = vcombine.low %v183_v48, %v187_v53  ;;  %v271_v53 = vld [vmem:[#allocation6 + $0x398] sm:$0xff] }
  0xfc   :  { %1664 = vmatpush1.bf16.msra.mxu1 %v4445_v18  ;;  %1319 = vmatprep.mubr.bf16.mxu1 %v5753_v5  ;;  %v199_v5 = vld [vmem:[#allocation6 + $0x158] sm:$0xff]  ;;  %v4477_v18 = vcombine.low %v191_v56, %v195_v59 }
  0xfd   :  { %1665 = vmatprep.subr.bf16.mxu1 %v4454_v40  ;;  %v4486_v60 = vcombine.high %v199_v5, %v203_v14  ;;  %v255_v40 = vld [vmem:[#allocation6 + $0x318] sm:$0xff] }
  0xfe   :  { %v283_v56 = vld [vmem:[#allocation6 + $0x3f8] sm:$0xff] }
 0x100   :  { %1666 = vmatpush1.bf16.msra.mxu1 %v4453_v39  ;;  %v267_v39 = vld [vmem:[#allocation6 + $0x378] sm:$0xff] }
 0x101   :  { %1667 = vmatprep.subr.bf16.mxu1 %v4462_v47  ;;  %v4541_v47 = vcombine.low %v255_v40, %v259_v45  ;;  %v4550_v48 = vcombine.high %v263_v46, %v267_v39 }
 0x103   :  { %1320 = vmatmul.mubr.bf16.gmra.mrb[68].mxu1 %v5763_v19  ;;  %v4485_v19 = vcombine.low %v199_v5, %v203_v14 }
 0x104   :  { %1329 = vmatprep.mubr.bf16.mxu1 %v5765_v21  ;;  %1668 = vmatpush1.bf16.msra.mxu1 %v4461_v54  ;;  %v4494_v21 = vcombine.high %v207_v0, %v211_v2  ;;  %v275_v54 = vld [vmem:[#allocation6 + $0x3b8] sm:$0xff] }
 0x105   :  { %1669 = vmatprep.subr.bf16.mxu1 %v4470_v55  ;;  %v279_v55 = vld [vmem:[#allocation6 + $0x3d8] sm:$0xff]  ;;  %v4557_v59 = vcombine.low %v271_v53, %v275_v54 }
 0x108   :  { %1670 = vmatpush1.bf16.msra.mxu1 %v4469_v3  ;;  %v4566_v3 = vcombine.high %v279_v55, %v283_v56 }
 0x109   :  { %1671 = vmatprep.subr.bf16.mxu1 %v4478_v13  ;;  %v4565_v13 = vcombine.low %v279_v55, %v283_v56 }
 0x10b   :  { %1330 = vmatmul.mubr.bf16.gmra.mrb[72].mxu1 %v5771_v30  ;;  %v4501_v30 = vcombine.low %v215_v4, %v219_v6 }
 0x10c   :  { %1339 = vmatprep.mubr.bf16.mxu1 %v5773_v31  ;;  %1672 = vmatpush1.bf16.msra.mxu1 %v4477_v18  ;;  %v4510_v31 = vcombine.high %v223_v15, %v227_v16 }
 0x10d   :  { %1673 = vmatprep.subr.bf16.mxu1 %v4486_v60 }
 0x110   :  { %1674 = vmatpush1.bf16.msra.mxu1 %v4485_v19 }
 0x111   :  { %1675 = vmatprep.subr.bf16.mxu1 %v4494_v21 }
 0x113   :  { %1340 = vmatmul.mubr.bf16.gmra.mrb[76].mxu1 %v5779_v41  ;;  %v4517_v41 = vcombine.low %v231_v22, %v235_v23 }
 0x114   :  { %1349 = vmatprep.mubr.bf16.mxu1 %v5781_v42  ;;  %1676 = vmatpush1.bf16.msra.mxu1 %v4493_v8  ;;  %v4526_v42 = vcombine.high %v239_v29, %v243_v32 }
 0x115   :  { %1677 = vmatprep.subr.bf16.mxu1 %v4502_v12 }
 0x118   :  { %1678 = vmatpush1.bf16.msra.mxu1 %v4501_v30 }
 0x119   :  { %1679 = vmatprep.subr.bf16.mxu1 %v4510_v31 }
 0x11b   :  { %1350 = vmatmul.mubr.bf16.gmra.mrb[80].mxu1 %v5787_v51  ;;  %v4533_v51 = vcombine.low %v247_v33, %v251_v36 }
 0x11c   :  { %1359 = vmatprep.mubr.bf16.mxu1 %v5789_v52  ;;  %1680 = vmatpush1.bf16.msra.mxu1 %v4509_v26  ;;  %v4542_v52 = vcombine.high %v255_v40, %v259_v45 }
 0x11d   :  { %1681 = vmatprep.subr.bf16.mxu1 %v4518_v27 }
 0x120   :  { %1682 = vmatpush1.bf16.msra.mxu1 %v4517_v41 }
 0x121   :  { %1683 = vmatprep.subr.bf16.mxu1 %v4526_v42 }
 0x123   :  { %1360 = vmatmul.mubr.bf16.gmra.mrb[84].mxu1 %v5795_v61  ;;  %v4549_v61 = vcombine.low %v263_v46, %v267_v39 }
 0x124   :  { %1369 = vmatprep.mubr.bf16.mxu1 %v5797_v62  ;;  %1684 = vmatpush1.bf16.msra.mxu1 %v4525_v37  ;;  %v4558_v62 = vcombine.high %v271_v53, %v275_v54 }
 0x125   :  { %1685 = vmatprep.subr.bf16.mxu1 %v4534_v38 }
 0x128   :  { %1686 = vmatpush1.bf16.msra.mxu1 %v4533_v51 }
 0x129   :  { %1687 = vmatprep.subr.bf16.mxu1 %v4542_v52 }
 0x12b   :  { %1370 = vmatmul.mubr.bf16.gmra.mrb[88].mxu1 %v5803_v9 }
 0x12c   :  { %1379 = vmatprep.mubr.bf16.mxu1 %v5805_v10  ;;  %1688 = vmatpush1.bf16.msra.mxu1 %v4541_v47 }
 0x12d   :  { %1689 = vmatprep.subr.bf16.mxu1 %v4550_v48 }
 0x130   :  { %1690 = vmatpush1.bf16.msra.mxu1 %v4549_v61 }
 0x131   :  { %1691 = vmatprep.subr.bf16.mxu1 %v4558_v62 }
 0x133   :  { %1380 = vmatmul.mubr.bf16.gmra.mrb[92].mxu1 %v5811_v24 }
 0x134   :  { %1389 = vmatprep.mubr.bf16.mxu1 %v5813_v25  ;;  %1692 = vmatpush1.bf16.msra.mxu1 %v4557_v59 }
 0x135   :  { %1693 = vmatprep.subr.bf16.mxu1 %v4566_v3 }
 0x138   :  { %1694 = vmatpush1.bf16.msra.mxu1 %v4565_v13 }
 0x13b   :  { %1390 = vmatmul.mubr.bf16.gmra.mrb[96].mxu1 %v5821_v34 }
 0x13c   :  { %1399 = vmatprep.mubr.bf16.mxu1 %v5823_v35 }
 0x143   :  { %1400 = vmatmul.mubr.bf16.gmra.mrb[100].mxu1 %v5829_v43 }
 0x144   :  { %1409 = vmatprep.mubr.bf16.mxu1 %v5831_v44 }
 0x14b   :  { %1410 = vmatmul.mubr.bf16.gmra.mrb[104].mxu1 %v5837_v49 }
 0x14c   :  { %1419 = vmatprep.mubr.bf16.mxu1 %v5839_v50 }
 0x14e   :  { %v1118_v9 = vpop.f32.mrb[0].mxu1  ;;  %v5919_v49 = vpop.f32.mrb[0].mxu0 }
 0x14f   :  { %v1120_v10 = vpop.f32.mrb[1].mxu1  ;;  %v5925_v60 = vpop.f32.mrb[1].mxu0 }
 0x150   :  { %v1122_v24 = vpop.f32.mrb[2].mxu1  ;;  %v5931_v19 = vpop.f32.mrb[2].mxu0 }
 0x151   :  { %v5909_v25 = vpack.c.bf16 %v1122_v24, %v1118_v9  ;;  %v1124_v5 = vpop.f32.mrb[3].mxu1  ;;  %v1920_v21 = vpack.c.bf16 %v5931_v19, %v5919_v49  ;;  %v5935_v4 = vpop.f32.mrb[3].mxu0 }
 0x152   :  { %v5911_v14 = vpack.c.bf16 %v1124_v5, %v1120_v10  ;;  %v1921_v8 = vpack.c.bf16 %v5935_v4, %v5925_v60 }
 0x153   :  { %v1984_v34 = vunpack.c.l.bf16 %v5909_v25  ;;  %v1988_v35 = vunpack.c.h.bf16 %v5909_v25  ;;  %1420 = vmatmul.mubr.bf16.gmra.mrb[108].mxu1 %v5845_v57 }
 0x154   :  { %v1985_v43 = vunpack.c.l.bf16 %v5911_v14  ;;  %v1989_v44 = vunpack.c.h.bf16 %v5911_v14  ;;  %1429 = vmatprep.mubr.bf16.mxu1 %v5847_v58 }
 0x155   :  { %v4567_v50 = vmul.f32 -1.442695, %v1984_v34  ;;  %v4571_v18 = vmul.f32 -1.442695, %v1988_v35 }
 0x156   :  { %v4568_v0 = vmul.f32 -1.442695, %v1985_v43  ;;  %v4572_v57 = vmul.f32 -1.442695, %v1989_v44  ;;  %v1128_v2 = vpop.f32.mrb[4].mxu1  ;;  %v5949_v26 = vpop.f32.mrb[4].mxu0 }
 0x157   :  { %5039 = vpow2.f32 %v4567_v50  ;;  %v1130_v58 = vpop.f32.mrb[5].mxu1  ;;  %v5955_v32 = vpop.f32.mrb[5].mxu0 }
 0x158   :  { %5041 = vpow2.f32 %v4571_v18  ;;  %v1132_v6 = vpop.f32.mrb[6].mxu1  ;;  %v5961_v33 = vpop.f32.mrb[6].mxu0 }
 0x159   :  { %5043 = vpow2.f32 %v4568_v0  ;;  %v5939_v12 = vpack.c.bf16 %v1132_v6, %v1128_v2  ;;  %v1134_v15 = vpop.f32.mrb[7].mxu1  ;;  %v1924_v36 = vpack.c.bf16 %v5961_v33, %v5949_v26  ;;  %v5965_v37 = vpop.f32.mrb[7].mxu0 }
 0x15a   :  { %5045 = vpow2.f32 %v4572_v57  ;;  %v5941_v16 = vpack.c.bf16 %v1134_v15, %v1130_v58  ;;  %v1925_v40 = vpack.c.bf16 %v5965_v37, %v5955_v32 }
 0x15b   :  { %v1992_v30 = vunpack.c.l.bf16 %v5939_v12  ;;  %v1996_v31 = vunpack.c.h.bf16 %v5939_v12  ;;  %1430 = vmatmul.mubr.bf16.gmra.mrb[112].mxu1 %v5853_v63 }
 0x15c   :  { %v1993_v22 = vunpack.c.l.bf16 %v5941_v16  ;;  %v1997_v23 = vunpack.c.h.bf16 %v5941_v16  ;;  %1439 = vmatprep.mubr.bf16.mxu1 %v5855_v1 }
 0x15d   :  { %v4575_v27 = vmul.f32 -1.442695, %v1992_v30  ;;  %v4579_v29 = vmul.f32 -1.442695, %v1996_v31 }
 0x15e   :  { %v4576_v41 = vmul.f32 -1.442695, %v1993_v22  ;;  %v4580_v63 = vmul.f32 -1.442695, %v1997_v23  ;;  %v1138_v42 = vpop.f32.mrb[8].mxu1  ;;  %v5979_v3 = vpop.f32.mrb[8].mxu0 }
 0x15f   :  { %5047 = vpow2.f32 %v4575_v27  ;;  %v1140_v1 = vpop.f32.mrb[9].mxu1 }
 0x160   :  { %5049 = vpow2.f32 %v4579_v29  ;;  %v1142_v38 = vpop.f32.mrb[10].mxu1 }
 0x161   :  { %v5040_v45 = vpop.eup %5039  ;;  %5051 = vpow2.f32 %v4576_v41  ;;  %v5969_v51 = vpack.c.bf16 %v1142_v38, %v1138_v42  ;;  %v1144_v52 = vpop.f32.mrb[11].mxu1 }
 0x162   :  { %v5042_v46 = vpop.eup %5041  ;;  %v2496_v39 = vadd.f32 1.0, %v5040_v45  ;;  %5053 = vpow2.f32 %v4580_v63  ;;  %v5971_v47 = vpack.c.bf16 %v1144_v52, %v1140_v1 }
 0x163   :  { %v5044_v48 = vpop.eup %5043  ;;  %v2500_v53 = vadd.f32 1.0, %v5042_v46  ;;  %v2000_v54 = vunpack.c.l.bf16 %v5969_v51  ;;  %v2004_v61 = vunpack.c.h.bf16 %v5969_v51  ;;  %1440 = vmatmul.mubr.bf16.gmra.mrb[116].mxu1 %v5861_v7  ;;  %v5985_v7 = vpop.f32.mrb[9].mxu0 }
 0x164   :  { %v5046_v62 = vpop.eup %5045  ;;  %5055 = vrcp.f32 %v2496_v39  ;;  %v2497_v55 = vadd.f32 1.0, %v5044_v48  ;;  %v2001_v56 = vunpack.c.l.bf16 %v5971_v47  ;;  %v2005_v59 = vunpack.c.h.bf16 %v5971_v47  ;;  %1449 = vmatprep.mubr.bf16.mxu1 %v5863_v11  ;;  %v5989_v50 = vpop.f32.mrb[10].mxu0 }
 0x165   :  { %5057 = vrcp.f32 %v2500_v53  ;;  %v2501_v13 = vadd.f32 1.0, %v5046_v62  ;;  %v4583_v9 = vmul.f32 -1.442695, %v2000_v54  ;;  %v4587_v10 = vmul.f32 -1.442695, %v2004_v61  ;;  %v5995_v57 = vpop.f32.mrb[11].mxu0 }
 0x166   :  { %5059 = vrcp.f32 %v2497_v55  ;;  %v4584_v24 = vmul.f32 -1.442695, %v2001_v56  ;;  %v1148_v5 = vpop.f32.mrb[12].mxu1  ;;  %v4588_v11 = vmul.f32 -1.442695, %v2005_v59  ;;  %v1928_v0 = vpack.c.bf16 %v5989_v50, %v5979_v3  ;;  %v6009_v53 = vpop.f32.mrb[12].mxu0 }
 0x167   :  { %5061 = vrcp.f32 %v2501_v13  ;;  %v1150_v18 = vpop.f32.mrb[13].mxu1  ;;  %v1929_v58 = vpack.c.bf16 %v5995_v57, %v5985_v7 }
 0x168   :  { %5063 = vpow2.f32 %v4583_v9  ;;  %v1152_v2 = vpop.f32.mrb[14].mxu1 }
 0x169   :  { %v5048_v6 = vpop.eup %5047  ;;  %5065 = vpow2.f32 %v4587_v10  ;;  %v5999_v15 = vpack.c.bf16 %v1152_v2, %v1148_v5  ;;  %v1154_v27 = vpop.f32.mrb[15].mxu1 }
 0x16a   :  { %v5050_v29 = vpop.eup %5049  ;;  %v2504_v41 = vadd.f32 1.0, %v5048_v6  ;;  %5067 = vpow2.f32 %v4584_v24  ;;  %v6001_v63 = vpack.c.bf16 %v1154_v27, %v1150_v18 }
 0x16b   :  { %v5052_v42 = vpop.eup %5051  ;;  %v2508_v1 = vadd.f32 1.0, %v5050_v29  ;;  %5069 = vpow2.f32 %v4588_v11  ;;  %v2008_v38 = vunpack.c.l.bf16 %v5999_v15  ;;  %v2012_v45 = vunpack.c.h.bf16 %v5999_v15  ;;  %1450 = vmatmul.mubr.bf16.gmra.mrb[120].mxu1 %v5869_v17  ;;  %v6015_v17 = vpop.f32.mrb[13].mxu0 }
 0x16c   :  { %v5054_v52 = vpop.eup %5053  ;;  %5071 = vrcp.f32 %v2504_v41  ;;  %v2505_v46 = vadd.f32 1.0, %v5052_v42  ;;  %v2009_v39 = vunpack.c.l.bf16 %v6001_v63  ;;  %v7011_v48 = vunpack.c.h.bf16 %v6001_v63  ;;  %1459 = vmatprep.mubr.bf16.mxu1 %v5871_v20  ;;  %v6019_v5 = vpop.f32.mrb[14].mxu0 }
 0x16d   :  { %5073 = vrcp.f32 %v2508_v1  ;;  %v2509_v62 = vadd.f32 1.0, %v5054_v52  ;;  %v4591_v55 = vmul.f32 -1.442695, %v2008_v38  ;;  %v4595_v13 = vmul.f32 -1.442695, %v2012_v45  ;;  %v6027_v27 = vpop.f32.mrb[15].mxu0 }
 0x16e   :  { %v5056_v9 = vpop.eup %5055  ;;  %5075 = vrcp.f32 %v2505_v46  ;;  %v4592_v10 = vmul.f32 -1.442695, %v2009_v39  ;;  %v1158_v24 = vpop.f32.mrb[16].mxu1  ;;  %v4596_v18 = vmul.f32 -1.442695, %v7011_v48  ;;  %v7051_v15 = vunpack.c.h.bf16 %v6001_v63 }
 0x16f   :  { %v5058_v20 = vpop.eup %5057  ;;  %v2880_v11 = vmul.f32 %v5056_v9, %v1984_v34  ;;  %5077 = vrcp.f32 %v2509_v62  ;;  %v1160_v2 = vpop.f32.mrb[17].mxu1 }
 0x170   :  { %v5060_v29 = vpop.eup %5059  ;;  %v2884_v41 = vmul.f32 %v5058_v20, %v1988_v35  ;;  %5079 = vpow2.f32 %v4591_v55  ;;  %v1162_v42 = vpop.f32.mrb[18].mxu1 }
 0x171   :  { %v5062_v34 = vpop.eup %5061  ;;  %v2881_v52 = vmul.f32 %v5060_v29, %v1985_v43  ;;  %5081 = vpow2.f32 %v4595_v13  ;;  %v6035_v46 = vpack.c.bf16 %v1162_v42, %v1158_v24  ;;  %v1164_v62 = vpop.f32.mrb[19].mxu1  ;;  %v5551_v24 = vld [vmem:[#allocation3 + $0x4] ss:$8 sps:$4 sm:$0xff]  }
 0x172   :  { %v5064_v9 = vpop.eup %5063  ;;  %v2885_v6 = vmul.f32 %v5062_v34, %v1989_v44  ;;  %5083 = vpow2.f32 %v4592_v10  ;;  %v3008_v25 = vpack.c.bf16 %v2884_v41, %v2880_v11  ;;  %v6039_v35 = vpack.c.bf16 %v1164_v62, %v1160_v2  ;;  %v6049_v11 = vpop.f32.mrb[16].mxu0 }
 0x173   :  { %v5066_v55 = vpop.eup %5065  ;;  %v2512_v20 = vadd.f32 1.0, %v5064_v9  ;;  %5085 = vpow2.f32 %v4596_v18  ;;  %v2016_v1 = vunpack.c.l.bf16 %v6035_v46  ;;  %v7014_v48 = vunpack.c.h.bf16 %v6035_v46  ;;  %1460 = vmatmul.mubr.bf16.gmra.mrb[124].mxu1 %v5877_v28  ;;  %v6053_v29 = vpop.f32.mrb[17].mxu0 }
 0x174   :  { %v5068_v43 = vpop.eup %5067  ;;  %v2516_v13 = vadd.f32 1.0, %v5066_v55  ;;  %v3072_v14 = vmul.bf16 %v3008_v25, %v1920_v21  ;;  %v7013_v44 = vunpack.c.l.bf16 %v6039_v35  ;;  %v7012_v10 = vunpack.c.h.bf16 %v6039_v35  ;;  %1695 = vmatprep.mubr.bf16.mxu1 %v5551_v24  ;;  %v6061_v55 = vpop.f32.mrb[18].mxu0 }
 0x175   :  { %v5070_v18 = vpop.eup %5069  ;;  %5087 = vrcp.f32 %v2512_v20  ;;  %v2513_v2 = vadd.f32 1.0, %v5068_v43  ;;  %v4599_v28 = vmul.f32 -1.442695, %v2016_v1  ;;  %v4603_v19 = vmul.f32 -1.442695, %v7014_v48 }
 0x176   :  { %v5072_v41 = vpop.eup %5071  ;;  %5089 = vrcp.f32 %v2516_v13  ;;  %v2517_v49 = vadd.f32 1.0, %v5070_v18  ;;  %v1168_v21 = vpop.f32.mrb[20].mxu1  ;;  %v4600_v62 = vmul.f32 -1.442695, %v7013_v44  ;;  %v3009_v9 = vpack.c.bf16 %v2885_v6, %v2881_v52 }
 0x177   :  { %v5074_v42 = vpop.eup %5073  ;;  %v2888_v34 = vmul.f32 %v5072_v41, %v1992_v30  ;;  %5091 = vrcp.f32 %v2513_v2  ;;  %v1170_v25 = vpop.f32.mrb[21].mxu1  ;;  %v4604_v13 = vmul.f32 -1.442695, %v7012_v10  ;;  %v4993_v2 = vld [vmem:[#allocation8 + $0x104] ss:$8 sps:$4 sm:$0xff]  }
 0x178   :  { %v5076_v20 = vpop.eup %5075  ;;  %v2892_v43 = vmul.f32 %v5074_v42, %v1996_v31  ;;  %5093 = vrcp.f32 %v2517_v49  ;;  %v1172_v24 = vpop.f32.mrb[22].mxu1  ;;  %v3073_v12 = vmul.bf16 %v3009_v9, %v1921_v8  ;;  %v4991_v49 = vld [vmem:[#allocation8 + $0x100] ss:$8 sps:$4 sm:$0xff]   ;;  %3777 = vmatprep.subr.bf16.mxu0 %v4993_v2 }
 0x179   :  { %v6069_v18 = vpop.f32.mrb[19].mxu0  ;;  %v5078_v41 = vpop.eup %5077  ;;  %v2889_v6 = vmul.f32 %v5076_v20, %v1993_v22  ;;  %5095 = vpow2.f32 %v4599_v28  ;;  %v6076_v31 = vpack.c.bf16 %v1172_v24, %v1168_v21  ;;  %v5552_v8 = vld [vmem:[#allocation3] ss:$8 sps:$4 sm:$0xff]  }
 0x17a   :  { %v1174_v52 = vpop.f32.mrb[23].mxu1  ;;  %v5080_v42 = vpop.eup %5079  ;;  %v2893_v30 = vmul.f32 %v5078_v41, %v1997_v23  ;;  %5097 = vpow2.f32 %v4603_v19  ;;  %v3012_v10 = vpack.c.bf16 %v2892_v43, %v2888_v34  ;;  %3616 = vmatprep.mubr.bf16.mxu0 %v3073_v12  ;;  %v5553_v19 = vld [vmem:[#allocation3 + $0x14] ss:$8 sps:$4 sm:$0xff]   ;;  %v1937_v2 = vpack.c.bf16 %v6069_v18, %v6053_v29 }
 0x17b   :  { %v6080_v44 = vpack.c.bf16 %v1174_v52, %v1170_v25  ;;  %v5082_v48 = vpop.eup %5081  ;;  %v2520_v22 = vadd.f32 1.0, %v5080_v42  ;;  %5099 = vpow2.f32 %v4600_v62  ;;  %v2024_v60 = vunpack.c.l.bf16 %v6076_v31  ;;  %1696 = vmatmul.mubr.bf16.vlgmr.msra.gmra.mrb[128].mxu1 %v5552_v8  ;;  %3617 = vmatmul.mubr.bf16.vlgmr.msra.gmra.mrb[64].mxu0 %v3072_v14  ;;  %v6088_v34 = vpop.f32.mrb[20].mxu0 }
 0x17c   :  { %v2028_v4 = vunpack.c.h.bf16 %v6076_v31  ;;  %v5084_v28 = vpop.eup %5083  ;;  %v2524_v21 = vadd.f32 1.0, %v5082_v48  ;;  %5101 = vpow2.f32 %v4604_v13  ;;  %v3076_v16 = vmul.bf16 %v3012_v10, %v1924_v36  ;;  %1705 = vmatprep.mubr.bf16.mxu1 %v5553_v19  ;;  %v6094_v14 = vpop.f32.mrb[21].mxu0  ;;  %3778 = vmatpush1.bf16.msra.mxu0 %v4991_v49  ;;  %v4996_v19 = vld [vmem:[#allocation8 + $0x114] ss:$8 sps:$4 sm:$0xff]  }
 0x17d   :  { %v2025_v23 = vunpack.c.l.bf16 %v6080_v44  ;;  %v5086_v62 = vpop.eup %5085  ;;  %5103 = vrcp.f32 %v2520_v22  ;;  %v2521_v9 = vadd.f32 1.0, %v5084_v28  ;;  %v4607_v25 = vmul.f32 -1.442695, %v2024_v60  ;;  %v6099_v20 = vpop.f32.mrb[22].mxu0  ;;  %3779 = vmatprep.subr.bf16.mxu0 %v4996_v19 }
 0x17e   :  { %v4611_v48 = vmul.f32 -1.442695, %v2028_v4  ;;  %5105 = vrcp.f32 %v2524_v21  ;;  %v2525_v26 = vadd.f32 1.0, %v5086_v62  ;;  %v2029_v33 = vunpack.c.h.bf16 %v6080_v44  ;;  %v1178_v10 = vpop.f32.mrb[24].mxu1  ;;  %v6105_v12 = vpop.f32.mrb[23].mxu0 }
 0x17f   :  { %v4608_v36 = vmul.f32 -1.442695, %v2025_v23  ;;  %v5088_v43 = vpop.eup %5087  ;;  %5107 = vrcp.f32 %v2521_v9  ;;  %v3013_v13 = vpack.c.bf16 %v2893_v30, %v2889_v6  ;;  %v1180_v24 = vpop.f32.mrb[25].mxu1  ;;  %v1940_v41 = vpack.c.bf16 %v6099_v20, %v6088_v34 }
 0x180   :  { %v5090_v52 = vpop.eup %5089  ;;  %v2896_v49 = vmul.f32 %v5088_v43, %v2000_v54  ;;  %5109 = vrcp.f32 %v2525_v26  ;;  %v4612_v42 = vmul.f32 -1.442695, %v2029_v33  ;;  %v1182_v22 = vpop.f32.mrb[26].mxu1  ;;  %v4994_v43 = vld [vmem:[#allocation8 + $0x110] ss:$8 sps:$4 sm:$0xff]  }
 0x181   :  { %v5092_v6 = vpop.eup %5091  ;;  %v2900_v8 = vmul.f32 %v5090_v52, %v2004_v61  ;;  %5111 = vpow2.f32 %v4607_v25  ;;  %v3077_v28 = vmul.bf16 %v3013_v13, %v1925_v40  ;;  %v6118_v21 = vpack.c.bf16 %v1182_v22, %v1178_v10  ;;  %v1184_v54 = vpop.f32.mrb[27].mxu1  ;;  %v5554_v40 = vld [vmem:[#allocation3 + $0x10] ss:$8 sps:$4 sm:$0xff]   ;;  %v5555_v10 = vld [vmem:[#allocation3 + $0x24] ss:$8 sps:$4 sm:$0xff]   ;;  %3780 = vmatpush1.bf16.msra.mxu0 %v4994_v43 }
 0x182   :  { %v5094_v62 = vpop.eup %5093  ;;  %v2897_v9 = vmul.f32 %v5092_v6, %v2001_v56  ;;  %5113 = vpow2.f32 %v4611_v48  ;;  %v6122_v26 = vpack.c.bf16 %v1184_v54, %v1180_v24  ;;  %v6129_v13 = vpop.f32.mrb[24].mxu0 }
 0x183   :  { %v5096_v30 = vpop.eup %5095  ;;  %v2901_v51 = vmul.f32 %v5094_v62, %v2005_v59  ;;  %5115 = vpow2.f32 %v4608_v36  ;;  %3626 = vmatprep.mubr.bf16.mxu0 %v3077_v28  ;;  %v2032_v32 = vunpack.c.l.bf16 %v6118_v21  ;;  %v2036_v37 = vunpack.c.h.bf16 %v6118_v21  ;;  %1706 = vmatmul.mubr.bf16.gmra.mrb[132].mxu1 %v5554_v40  ;;  %v6136_v22 = vpop.f32.mrb[25].mxu0  ;;  %v5563_v21 = vld [vmem:[#allocation3 + $0x64] ss:$8 sps:$4 sm:$0xff]  }
 0x184   :  { %v5098_v61 = vpop.eup %5097  ;;  %v2528_v25 = vadd.f32 1.0, %v5096_v30  ;;  %5117 = vpow2.f32 %v4612_v42  ;;  %3627 = vmatmul.mubr.bf16.gmra.mrb[68].mxu0 %v3076_v16  ;;  %v3016_v56 = vpack.c.bf16 %v2900_v8, %v2896_v49  ;;  %v2033_v48 = vunpack.c.l.bf16 %v6122_v26  ;;  %1715 = vmatprep.mubr.bf16.mxu1 %v5555_v10  ;;  %v6143_v8 = vpop.f32.mrb[26].mxu0 }
 0x185   :  { %v5100_v47 = vpop.eup %5099  ;;  %v2532_v59 = vadd.f32 1.0, %v5098_v61  ;;  %v4615_v36 = vmul.f32 -1.442695, %v2032_v32  ;;  %v4619_v24 = vmul.f32 -1.442695, %v2036_v37  ;;  %v2037_v52 = vunpack.c.h.bf16 %v6122_v26  ;;  %v6147_v61 = vpop.f32.mrb[27].mxu0 }
 0x186   :  { %v5102_v16 = vpop.eup %5101  ;;  %5119 = vrcp.f32 %v2528_v25  ;;  %v2529_v49 = vadd.f32 1.0, %v5100_v47  ;;  %v3080_v42 = vmul.bf16 %v3016_v56, %v1928_v0  ;;  %v4616_v30 = vmul.f32 -1.442695, %v2033_v48  ;;  %v1188_v6 = vpop.f32.mrb[28].mxu1  ;;  %v4999_v47 = vld [vmem:[#allocation8 + $0x124] ss:$8 sps:$4 sm:$0xff]  }
 0x187   :  { %v5104_v28 = vpop.eup %5103  ;;  %5121 = vrcp.f32 %v2532_v59  ;;  %v2533_v54 = vadd.f32 1.0, %v5102_v16  ;;  %v4620_v19 = vmul.f32 -1.442695, %v2037_v52  ;;  %v3017_v62 = vpack.c.bf16 %v2901_v51, %v2897_v9  ;;  %v1190_v40 = vpop.f32.mrb[29].mxu1  ;;  %3781 = vmatprep.subr.bf16.mxu0 %v4999_v47 }
 0x188   :  { %v5106_v25 = vpop.eup %5105  ;;  %v2904_v3 = vmul.f32 %v5104_v28, %v2008_v38  ;;  %5123 = vrcp.f32 %v2529_v49  ;;  %v1192_v50 = vpop.f32.mrb[30].mxu1  ;;  %v1944_v0 = vpack.c.bf16 %v6143_v8, %v6129_v13  ;;  %v4997_v28 = vld [vmem:[#allocation8 + $0x120] ss:$8 sps:$4 sm:$0xff]  }
 0x189   :  { %v5108_v56 = vpop.eup %5107  ;;  %v2908_v10 = vmul.f32 %v5106_v25, %v2012_v45  ;;  %5125 = vrcp.f32 %v2533_v54  ;;  %v3081_v9 = vmul.bf16 %v3017_v62, %v1929_v58  ;;  %v6160_v51 = vpack.c.bf16 %v1192_v50, %v1188_v6  ;;  %v1194_v38 = vpop.f32.mrb[31].mxu1  ;;  %v5556_v58 = vld [vmem:[#allocation3 + $0x20] ss:$8 sps:$4 sm:$0xff]   ;;  %v5557_v62 = vld [vmem:[#allocation3 + $0x34] ss:$8 sps:$4 sm:$0xff]   ;;  %3782 = vmatpush1.bf16.msra.mxu0 %v4997_v28 }
 0x18a   :  { %v5110_v59 = vpop.eup %5109  ;;  %v2905_v16 = vmul.f32 %v5108_v56, %v2009_v39  ;;  %5127 = vpow2.f32 %v4615_v36  ;;  %v6164_v49 = vpack.c.bf16 %v1194_v38, %v1190_v40  ;;  %v6171_v40 = vpop.f32.mrb[28].mxu0 }
 0x18b   :  { %v5112_v43 = vpop.eup %5111  ;;  %v2909_v45 = vmul.f32 %v5110_v59, %v7051_v15  ;;  %5129 = vpow2.f32 %v4619_v24  ;;  %3636 = vmatprep.mubr.bf16.mxu0 %v3081_v9  ;;  %v2040_v7 = vunpack.c.l.bf16 %v6160_v51  ;;  %v2044_v57 = vunpack.c.h.bf16 %v6160_v51  ;;  %1716 = vmatmul.mubr.bf16.gmra.mrb[136].mxu1 %v5556_v58  ;;  %v6177_v56 = vpop.f32.mrb[29].mxu0  ;;  %v5565_v51 = vld [vmem:[#allocation3 + $0x74] ss:$8 sps:$4 sm:$0xff]  }
 0x18c   :  { %v5114_v6 = vpop.eup %5113  ;;  %v2536_v54 = vadd.f32 1.0, %v5112_v43  ;;  %5131 = vpow2.f32 %v4616_v30  ;;  %3637 = vmatmul.mubr.bf16.gmra.mrb[72].mxu0 %v3080_v42  ;;  %v3020_v39 = vpack.c.bf16 %v2908_v10, %v2904_v3  ;;  %v7016_v36 = vunpack.c.l.bf16 %v6164_v49  ;;  %1725 = vmatprep.mubr.bf16.mxu1 %v5557_v62 }
 0x18d   :  { %v5116_v63 = vpop.eup %5115  ;;  %v2540_v24 = vadd.f32 1.0, %v5114_v6  ;;  %5133 = vpow2.f32 %v4620_v19  ;;  %v4623_v25 = vmul.f32 -1.442695, %v2040_v7  ;;  %v4627_v50 = vmul.f32 -1.442695, %v2044_v57  ;;  %v6183_v19 = vpop.f32.mrb[30].mxu0 }
 0x18e   :  { %v5118_v42 = vpop.eup %5117  ;;  %5135 = vrcp.f32 %v2536_v54  ;;  %v2537_v30 = vadd.f32 1.0, %v5116_v63  ;;  %v7052_v3 = vpack.c.bf16 %v6019_v5, %v6009_v53  ;;  %v7015_v10 = vunpack.c.h.bf16 %v6164_v49  ;;  %v1198_v9 = vpop.f32.mrb[32].mxu1 }
 0x18f   :  { %5137 = vrcp.f32 %v2540_v24  ;;  %v2541_v38 = vadd.f32 1.0, %v5118_v42  ;;  %v4624_v59 = vmul.f32 -1.442695, %v7016_v36  ;;  %v3021_v15 = vpack.c.bf16 %v2909_v45, %v2905_v16  ;;  %v1200_v47 = vpop.f32.mrb[33].mxu1  ;;  %v6187_v58 = vpop.f32.mrb[31].mxu0 }
 0x190   :  { %v3084_v43 = vmul.bf16 %v3020_v39, %v7052_v3  ;;  %v5120_v6 = vpop.eup %5119  ;;  %5139 = vrcp.f32 %v2537_v30  ;;  %v4628_v53 = vmul.f32 -1.442695, %v7015_v10  ;;  %v1202_v5 = vpop.f32.mrb[34].mxu1  ;;  %v5002_v39 = vld [vmem:[#allocation8 + $0x134] ss:$8 sps:$4 sm:$0xff]   ;;  %v7053_v45 = vpack.c.bf16 %v6027_v27, %v6015_v17 }
 0x191   :  { %v5122_v62 = vpop.eup %5121  ;;  %v2912_v16 = vmul.f32 %v5120_v6, %v2016_v1  ;;  %5141 = vrcp.f32 %v2541_v38  ;;  %v6200_v24 = vpack.c.bf16 %v1202_v5, %v1198_v9  ;;  %v1204_v42 = vpop.f32.mrb[35].mxu1  ;;  %v5000_v30 = vld [vmem:[#allocation8 + $0x130] ss:$8 sps:$4 sm:$0xff]   ;;  %v7054_v54 = vunpack.c.h.bf16 %v6035_v46  ;;  %3783 = vmatprep.subr.bf16.mxu0 %v5002_v39  ;;  %v5559_v5 = vld [vmem:[#allocation3 + $0x44] ss:$8 sps:$4 sm:$0xff]  }
 0x192   :  { %v3085_v63 = vmul.bf16 %v3021_v15, %v7053_v45  ;;  %v5124_v3 = vpop.eup %5123  ;;  %5143 = vpow2.f32 %v4623_v25  ;;  %v6204_v28 = vpack.c.bf16 %v1204_v42, %v1200_v47  ;;  %v7055_v1 = vunpack.c.l.bf16 %v6039_v35  ;;  %v5558_v9 = vld [vmem:[#allocation3 + $0x30] ss:$8 sps:$4 sm:$0xff]   ;;  %3784 = vmatpush1.bf16.msra.mxu0 %v5000_v30 }
 0x193   :  { %v2916_v10 = vmul.f32 %v5122_v62, %v7054_v54  ;;  %v5126_v36 = vpop.eup %5125  ;;  %5145 = vpow2.f32 %v4627_v50  ;;  %v2048_v17 = vunpack.c.l.bf16 %v6200_v24  ;;  %v2052_v27 = vunpack.c.h.bf16 %v6200_v24  ;;  %1726 = vmatmul.mubr.bf16.gmra.mrb[140].mxu1 %v5558_v9  ;;  %v6213_v54 = vpop.f32.mrb[32].mxu0 }
 0x194   :  { %v2913_v38 = vmul.f32 %v5124_v3, %v7055_v1  ;;  %3646 = vmatprep.mubr.bf16.mxu0 %v3085_v63  ;;  %v5128_v15 = vpop.eup %5127  ;;  %v7056_v46 = vunpack.c.h.bf16 %v6039_v35  ;;  %5147 = vpow2.f32 %v4624_v59  ;;  %v7017_v47 = vunpack.c.l.bf16 %v6204_v28  ;;  %1735 = vmatprep.mubr.bf16.mxu1 %v5559_v5  ;;  %v6217_v45 = vpop.f32.mrb[33].mxu0 }
 0x195   :  { %3647 = vmatmul.mubr.bf16.gmra.mrb[76].mxu0 %v3084_v43  ;;  %v3024_v25 = vpack.c.bf16 %v2916_v10, %v2912_v16  ;;  %v5130_v50 = vpop.eup %5129  ;;  %v2544_v39 = vadd.f32 1.0, %v5128_v15  ;;  %5149 = vpow2.f32 %v4628_v53  ;;  %v4631_v62 = vmul.f32 -1.442695, %v2048_v17  ;;  %v6225_v42 = vpop.f32.mrb[34].mxu0 }
 0x196   :  { %v2917_v6 = vmul.f32 %v5126_v36, %v7056_v46  ;;  %v5132_v35 = vpop.eup %5131  ;;  %v2548_v36 = vadd.f32 1.0, %v5130_v50  ;;  %v4635_v43 = vmul.f32 -1.442695, %v2052_v27  ;;  %v7057_v10 = vpack.c.bf16 %v6061_v55, %v6049_v11  ;;  %v1208_v63 = vpop.f32.mrb[36].mxu1  ;;  %v5005_v50 = vld [vmem:[#allocation8 + $0x144] ss:$8 sps:$4 sm:$0xff]  }
 0x197   :  { %v2053_v16 = vunpack.c.h.bf16 %v6204_v28  ;;  %v5134_v53 = vpop.eup %5133  ;;  %5151 = vrcp.f32 %v2544_v39  ;;  %v2545_v3 = vadd.f32 1.0, %v5132_v35  ;;  %v1210_v9 = vpop.f32.mrb[37].mxu1  ;;  %v4632_v11 = vmul.f32 -1.442695, %v7017_v47  ;;  %3785 = vmatprep.subr.bf16.mxu0 %v5005_v50 }
 0x198   :  { %v3088_v59 = vmul.bf16 %v3024_v25, %v7057_v10  ;;  %v3025_v1 = vpack.c.bf16 %v2917_v6, %v2913_v38  ;;  %v6229_v15 = vpop.f32.mrb[35].mxu0  ;;  %v5136_v46 = vpop.eup %5135  ;;  %5153 = vrcp.f32 %v2548_v36  ;;  %v2549_v5 = vadd.f32 1.0, %v5134_v53  ;;  %v5003_v10 = vld [vmem:[#allocation8 + $0x140] ss:$8 sps:$4 sm:$0xff]  }
 0x199   :  { %v1212_v55 = vpop.f32.mrb[38].mxu1  ;;  %v5138_v39 = vpop.eup %5137  ;;  %v2920_v38 = vmul.f32 %v5136_v46, %v2024_v60  ;;  %5155 = vrcp.f32 %v2545_v3  ;;  %v4636_v25 = vmul.f32 -1.442695, %v2053_v16  ;;  %3786 = vmatpush1.bf16.msra.mxu0 %v5003_v10 }
 0x19a   :  { %v3089_v6 = vmul.bf16 %v3025_v1, %v1937_v2  ;;  %v6240_v35 = vpack.c.bf16 %v1212_v55, %v1208_v63  ;;  %v1214_v36 = vpop.f32.mrb[39].mxu1  ;;  %v5140_v53 = vpop.eup %5139  ;;  %v2924_v30 = vmul.f32 %v5138_v39, %v2028_v4  ;;  %5157 = vrcp.f32 %v2549_v5  ;;  %v5560_v63 = vld [vmem:[#allocation3 + $0x40] ss:$8 sps:$4 sm:$0xff]  }
 0x19b   :  { %v6246_v47 = vpack.c.bf16 %v1214_v36, %v1210_v9  ;;  %v5142_v60 = vpop.eup %5141  ;;  %v2921_v29 = vmul.f32 %v5140_v53, %v2025_v23  ;;  %5159 = vpow2.f32 %v4631_v62  ;;  %1736 = vmatmul.mubr.bf16.gmra.mrb[144].mxu1 %v5560_v63  ;;  %v5561_v9 = vld [vmem:[#allocation3 + $0x54] ss:$8 sps:$4 sm:$0xff]   ;;  %v6255_v23 = vpop.f32.mrb[36].mxu0  ;;  %v7058_v63 = vpack.c.bf16 %v6105_v12, %v6094_v14 }
 0x19c   :  { %3656 = vmatprep.mubr.bf16.mxu0 %v3089_v6  ;;  %v2056_v18 = vunpack.c.l.bf16 %v6240_v35  ;;  %v2060_v2 = vunpack.c.h.bf16 %v6240_v35  ;;  %v5144_v31 = vpop.eup %5143  ;;  %v2925_v4 = vmul.f32 %v5142_v60, %v2029_v33  ;;  %5161 = vpow2.f32 %v4635_v43  ;;  %1745 = vmatprep.mubr.bf16.mxu1 %v5561_v9  ;;  %v6259_v55 = vpop.f32.mrb[37].mxu0  ;;  %v5008_v53 = vld [vmem:[#allocation8 + $0x154] ss:$8 sps:$4 sm:$0xff]   ;;  %v5006_v9 = vld [vmem:[#allocation8 + $0x150] ss:$8 sps:$4 sm:$0xff]  }
 0x19d   :  { %3657 = vmatmul.mubr.bf16.gmra.mrb[80].mxu0 %v3088_v59  ;;  %v3028_v3 = vpack.c.bf16 %v2924_v30, %v2920_v38  ;;  %v2057_v1 = vunpack.c.l.bf16 %v6246_v47  ;;  %v5146_v62 = vpop.eup %5145  ;;  %v2552_v46 = vadd.f32 1.0, %v5144_v31  ;;  %5163 = vpow2.f32 %v4632_v11  ;;  %v6265_v50 = vpop.f32.mrb[38].mxu0  ;;  %3787 = vmatprep.subr.bf16.mxu0 %v5008_v53 }
 0x19e   :  { %v4639_v5 = vmul.f32 -1.442695, %v2056_v18  ;;  %v5148_v44 = vpop.eup %5147  ;;  %v2556_v33 = vadd.f32 1.0, %v5146_v62  ;;  %5165 = vpow2.f32 %v4636_v25  ;;  %v2061_v59 = vunpack.c.h.bf16 %v6246_v47  ;;  %v1218_v30 = vpop.f32.mrb[40].mxu1  ;;  %3788 = vmatpush1.bf16.msra.mxu0 %v5006_v9 }
 0x19f   :  { %v3092_v43 = vmul.bf16 %v3028_v3, %v1940_v41  ;;  %v5150_v39 = vpop.eup %5149  ;;  %5167 = vrcp.f32 %v2552_v46  ;;  %v2553_v11 = vadd.f32 1.0, %v5148_v44  ;;  %v4643_v38 = vmul.f32 -1.442695, %v2060_v2  ;;  %v1220_v36 = vpop.f32.mrb[41].mxu1 }
 0x1a0   :  { %v3029_v6 = vpack.c.bf16 %v2925_v4, %v2921_v29  ;;  %v6269_v10 = vpop.f32.mrb[39].mxu0  ;;  %5169 = vrcp.f32 %v2556_v33  ;;  %v2557_v25 = vadd.f32 1.0, %v5150_v39  ;;  %v4640_v34 = vmul.f32 -1.442695, %v2057_v1  ;;  %v1222_v20 = vpop.f32.mrb[42].mxu1 }
 0x1a1   :  { %v1956_v41 = vpack.c.bf16 %v6265_v50, %v6255_v23  ;;  %v5152_v60 = vpop.eup %5151  ;;  %5171 = vrcp.f32 %v2553_v11  ;;  %v6278_v29 = vpack.c.bf16 %v1222_v20, %v1218_v30  ;;  %v1224_v4 = vpop.f32.mrb[43].mxu1  ;;  %v1957_v3 = vpack.c.bf16 %v6269_v10, %v6259_v55  ;;  %v5562_v11 = vld [vmem:[#allocation3 + $0x50] ss:$8 sps:$4 sm:$0xff]   ;;  %v5571_v10 = vld [vmem:[#allocation3 + $0xa4] ss:$8 sps:$4 sm:$0xff]  }
 0x1a2   :  { %v3093_v31 = vmul.bf16 %v3029_v6, %v7058_v63  ;;  %v5154_v62 = vpop.eup %5153  ;;  %v2928_v46 = vmul.f32 %v5152_v60, %v2032_v32  ;;  %5173 = vrcp.f32 %v2557_v25  ;;  %v4644_v44 = vmul.f32 -1.442695, %v2061_v59 }
 0x1a3   :  { %v6286_v33 = vpack.c.bf16 %v1224_v4, %v1220_v36  ;;  %v5156_v14 = vpop.eup %5155  ;;  %v2932_v12 = vmul.f32 %v5154_v62, %v2036_v37  ;;  %5175 = vpow2.f32 %v4639_v5  ;;  %v2064_v30 = vunpack.c.l.bf16 %v6278_v29  ;;  %1746 = vmatmul.mubr.bf16.gmra.mrb[148].mxu1 %v5562_v11  ;;  %v6296_v37 = vpop.f32.mrb[40].mxu0 }
 0x1a4   :  { %3666 = vmatprep.mubr.bf16.mxu0 %v3093_v31  ;;  %v2068_v39 = vunpack.c.h.bf16 %v6278_v29  ;;  %v5158_v32 = vpop.eup %5157  ;;  %v2929_v6 = vmul.f32 %v5156_v14, %v2033_v48  ;;  %5177 = vpow2.f32 %v4643_v38  ;;  %1755 = vmatprep.mubr.bf16.mxu1 %v5563_v21 }
 0x1a5   :  { %3667 = vmatmul.mubr.bf16.gmra.mrb[84].mxu0 %v3092_v43  ;;  %v7019_v36 = vunpack.c.l.bf16 %v6286_v33  ;;  %v7018_v25 = vunpack.c.h.bf16 %v6286_v33  ;;  %v5160_v5 = vpop.eup %5159  ;;  %v2933_v20 = vmul.f32 %v5158_v32, %v2037_v52  ;;  %5179 = vpow2.f32 %v4640_v34  ;;  %v6304_v43 = vpop.f32.mrb[41].mxu0 }
 0x1a6   :  { %v4647_v53 = vmul.f32 -1.442695, %v2064_v30  ;;  %v4651_v48 = vmul.f32 -1.442695, %v2068_v39  ;;  %v5162_v38 = vpop.eup %5161  ;;  %v2560_v60 = vadd.f32 1.0, %v5160_v5  ;;  %5181 = vpow2.f32 %v4644_v44  ;;  %v1228_v4 = vpop.f32.mrb[44].mxu1 }
 0x1a7   :  { %v3032_v63 = vpack.c.bf16 %v2932_v12, %v2928_v46  ;;  %v4648_v31 = vmul.f32 -1.442695, %v7019_v36  ;;  %v6308_v26 = vpop.f32.mrb[42].mxu0  ;;  %v5164_v52 = vpop.eup %5163  ;;  %v2564_v34 = vadd.f32 1.0, %v5162_v38  ;;  %v4652_v62 = vmul.f32 -1.442695, %v7018_v25 }
 0x1a8   :  { %5183 = vpow2.f32 %v4647_v53  ;;  %v3033_v14 = vpack.c.bf16 %v2933_v20, %v2929_v6  ;;  %v1230_v11 = vpop.f32.mrb[45].mxu1  ;;  %v6312_v32 = vpop.f32.mrb[43].mxu0  ;;  %v2561_v44 = vadd.f32 1.0, %v5164_v52  ;;  %v1960_v21 = vpack.c.bf16 %v6308_v26, %v6296_v37  ;;  %v5011_v5 = vld [vmem:[#allocation8 + $0x164] ss:$8 sps:$4 sm:$0xff]  }
 0x1a9   :  { %v5166_v9 = vpop.eup %5165  ;;  %5185 = vrcp.f32 %v2560_v60  ;;  %v3096_v46 = vmul.bf16 %v3032_v63, %v1944_v0  ;;  %v1232_v12 = vpop.f32.mrb[46].mxu1  ;;  %v7059_v6 = vpack.c.bf16 %v6147_v61, %v6136_v22  ;;  %v5009_v52 = vld [vmem:[#allocation8 + $0x160] ss:$8 sps:$4 sm:$0xff]   ;;  %3789 = vmatprep.subr.bf16.mxu0 %v5011_v5  ;;  %v7069_v37 = vpack.c.bf16 %v6312_v32, %v6304_v43 }
 0x1aa   :  { %v5168_v53 = vpop.eup %5167  ;;  %5187 = vrcp.f32 %v2564_v34  ;;  %v2565_v38 = vadd.f32 1.0, %v5166_v9  ;;  %v6322_v25 = vpack.c.bf16 %v1232_v12, %v1228_v4  ;;  %v1234_v60 = vpop.f32.mrb[47].mxu1  ;;  %v5564_v34 = vld [vmem:[#allocation3 + $0x60] ss:$8 sps:$4 sm:$0xff]   ;;  %v7061_v12 = vunpack.c.h.bf16 %v6164_v49  ;;  %3790 = vmatpush1.bf16.msra.mxu0 %v5009_v52 }
 0x1ab   :  { %v3097_v20 = vmul.bf16 %v3033_v14, %v7059_v6  ;;  %v5170_v36 = vpop.eup %5169  ;;  %v2936_v13 = vmul.f32 %v5168_v53, %v2040_v7  ;;  %5189 = vrcp.f32 %v2561_v44  ;;  %v6326_v8 = vpack.c.bf16 %v1234_v60, %v1230_v11  ;;  %1756 = vmatmul.mubr.bf16.gmra.mrb[152].mxu1 %v5564_v34 }
 0x1ac   :  { %v5172_v63 = vpop.eup %5171  ;;  %v2940_v22 = vmul.f32 %v5170_v36, %v2044_v57  ;;  %5191 = vrcp.f32 %v2565_v38  ;;  %v2072_v61 = vunpack.c.l.bf16 %v6322_v25  ;;  %v7021_v4 = vunpack.c.h.bf16 %v6322_v25  ;;  %1765 = vmatprep.mubr.bf16.mxu1 %v5565_v51  ;;  %v6338_v57 = vpop.f32.mrb[44].mxu0 }
 0x1ad   :  { %3676 = vmatprep.mubr.bf16.mxu0 %v3097_v20  ;;  %v5174_v7 = vpop.eup %5173  ;;  %v7060_v14 = vunpack.c.l.bf16 %v6164_v49  ;;  %5193 = vpow2.f32 %v4651_v48  ;;  %v7020_v9 = vunpack.c.l.bf16 %v6326_v8  ;;  %v7022_v44 = vunpack.c.h.bf16 %v6326_v8 }
 0x1ae   :  { %3677 = vmatmul.mubr.bf16.gmra.mrb[88].mxu0 %v3096_v46  ;;  %v5176_v36 = vpop.eup %5175  ;;  %v2941_v5 = vmul.f32 %v5174_v7, %v7061_v12  ;;  %5195 = vpow2.f32 %v4648_v31  ;;  %v4655_v53 = vmul.f32 -1.442695, %v2072_v61  ;;  %v4659_v48 = vmul.f32 -1.442695, %v7021_v4  ;;  %v6346_v46 = vpop.f32.mrb[45].mxu0 }
 0x1af   :  { %v2937_v11 = vmul.f32 %v5172_v63, %v7060_v14  ;;  %v5178_v38 = vpop.eup %5177  ;;  %v2568_v6 = vadd.f32 1.0, %v5176_v36  ;;  %5197 = vpow2.f32 %v4652_v62  ;;  %v3036_v20 = vpack.c.bf16 %v2940_v22, %v2936_v13  ;;  %v1238_v63 = vpop.f32.mrb[48].mxu1 }
 0x1b0   :  { %v4656_v60 = vmul.f32 -1.442695, %v7020_v9  ;;  %v6350_v49 = vpop.f32.mrb[46].mxu0  ;;  %v5180_v31 = vpop.eup %5179  ;;  %v2572_v34 = vadd.f32 1.0, %v5178_v38  ;;  %5199 = vpow2.f32 %v4655_v53  ;;  %v4660_v7 = vmul.f32 -1.442695, %v7022_v44 }
 0x1b1   :  { %v3037_v14 = vpack.c.bf16 %v2941_v5, %v2937_v11  ;;  %v1240_v51 = vpop.f32.mrb[49].mxu1  ;;  %v6354_v12 = vpop.f32.mrb[47].mxu0  ;;  %5201 = vrcp.f32 %v2568_v6  ;;  %v2569_v62 = vadd.f32 1.0, %v5180_v31  ;;  %v7062_v13 = vpack.c.bf16 %v6183_v19, %v6171_v40  ;;  %v5014_v38 = vld [vmem:[#allocation8 + $0x174] ss:$8 sps:$4 sm:$0xff]  }
 0x1b2   :  { %v5182_v52 = vpop.eup %5181  ;;  %v1242_v36 = vpop.f32.mrb[50].mxu1  ;;  %v1964_v9 = vpack.c.bf16 %v6350_v49, %v6338_v57  ;;  %5203 = vrcp.f32 %v2572_v34  ;;  %v7063_v11 = vpack.c.bf16 %v6187_v58, %v6177_v56  ;;  %v5012_v31 = vld [vmem:[#allocation8 + $0x170] ss:$8 sps:$4 sm:$0xff]   ;;  %3791 = vmatprep.subr.bf16.mxu0 %v5014_v38 }
 0x1b3   :  { %v3100_v22 = vmul.bf16 %v3036_v20, %v7062_v13  ;;  %v5184_v53 = vpop.eup %5183  ;;  %v2573_v4 = vadd.f32 1.0, %v5182_v52  ;;  %v6364_v44 = vpack.c.bf16 %v1242_v36, %v1238_v63  ;;  %v1244_v6 = vpop.f32.mrb[51].mxu1  ;;  %5205 = vrcp.f32 %v2569_v62  ;;  %v5566_v63 = vld [vmem:[#allocation3 + $0x70] ss:$8 sps:$4 sm:$0xff]   ;;  %v5567_v36 = vld [vmem:[#allocation3 + $0x84] ss:$8 sps:$4 sm:$0xff]   ;;  %3792 = vmatpush1.bf16.msra.mxu0 %v5012_v31 }
 0x1b4   :  { %v3101_v5 = vmul.bf16 %v3037_v14, %v7063_v11  ;;  %v5186_v0 = vpop.eup %5185  ;;  %v2576_v40 = vadd.f32 1.0, %v5184_v53  ;;  %v6366_v19 = vpack.c.bf16 %v1244_v6, %v1240_v51  ;;  %1766 = vmatmul.mubr.bf16.gmra.mrb[156].mxu1 %v5566_v63  ;;  %v5574_v49 = vld [vmem:[#allocation3 + $0xb0] ss:$8 sps:$4 sm:$0xff]  }
 0x1b5   :  { %v5188_v13 = vpop.eup %5187  ;;  %v2944_v34 = vmul.f32 %v5186_v0, %v2048_v17  ;;  %5207 = vrcp.f32 %v2573_v4  ;;  %v7026_v56 = vunpack.c.l.bf16 %v6364_v44  ;;  %v7025_v58 = vunpack.c.h.bf16 %v6364_v44  ;;  %1775 = vmatprep.mubr.bf16.mxu1 %v5567_v36  ;;  %v6378_v17 = vpop.f32.mrb[48].mxu0 }
 0x1b6   :  { %3686 = vmatprep.mubr.bf16.mxu0 %v3101_v5  ;;  %v5190_v14 = vpop.eup %5189  ;;  %v2948_v51 = vmul.f32 %v5188_v13, %v2052_v27  ;;  %5209 = vrcp.f32 %v2576_v40  ;;  %v7023_v52 = vunpack.c.l.bf16 %v6366_v19  ;;  %v7024_v62 = vunpack.c.h.bf16 %v6366_v19  ;;  %v6386_v27 = vpop.f32.mrb[49].mxu0 }
 0x1b7   :  { %3687 = vmatmul.mubr.bf16.gmra.mrb[92].mxu0 %v3100_v22  ;;  %v5192_v0 = vpop.eup %5191  ;;  %v7064_v4 = vunpack.c.l.bf16 %v6204_v28  ;;  %5211 = vpow2.f32 %v4659_v48  ;;  %v4663_v53 = vmul.f32 -1.442695, %v7026_v56  ;;  %v4667_v24 = vmul.f32 -1.442695, %v7025_v58  ;;  %v1248_v40 = vpop.f32.mrb[52].mxu1 }
 0x1b8   :  { %v5194_v22 = vpop.eup %5193  ;;  %v2949_v11 = vmul.f32 %v5192_v0, %v2053_v16  ;;  %5213 = vpow2.f32 %v4656_v60  ;;  %v3040_v5 = vpack.c.bf16 %v2948_v51, %v2944_v34  ;;  %v4664_v6 = vmul.f32 -1.442695, %v7023_v52  ;;  %v6392_v48 = vpop.f32.mrb[50].mxu0 }
 0x1b9   :  { %v2945_v38 = vmul.f32 %v5190_v14, %v7064_v4  ;;  %v5196_v13 = vpop.eup %5195  ;;  %v2580_v63 = vadd.f32 1.0, %v5194_v22  ;;  %5215 = vpow2.f32 %v4660_v7  ;;  %v4668_v14 = vmul.f32 -1.442695, %v7024_v62  ;;  %v1250_v36 = vpop.f32.mrb[53].mxu1  ;;  %v5015_v22 = vld [vmem:[#allocation8 + $0x180] ss:$8 sps:$4 sm:$0xff]  }
 0x1ba   :  { %v6398_v28 = vpop.f32.mrb[51].mxu0  ;;  %v5198_v16 = vpop.eup %5197  ;;  %v2577_v60 = vadd.f32 1.0, %v5196_v13  ;;  %5217 = vpow2.f32 %v4663_v53  ;;  %v7065_v34 = vpack.c.bf16 %v6225_v42, %v6213_v54  ;;  %v5017_v7 = vld [vmem:[#allocation8 + $0x184] ss:$8 sps:$4 sm:$0xff]   ;;  %v7066_v54 = vpack.c.bf16 %v6229_v15, %v6217_v45 }
 0x1bb   :  { %v3041_v0 = vpack.c.bf16 %v2949_v11, %v2945_v38  ;;  %v1252_v4 = vpop.f32.mrb[54].mxu1  ;;  %v5200_v52 = vpop.eup %5199  ;;  %5219 = vrcp.f32 %v2580_v63  ;;  %v2581_v62 = vadd.f32 1.0, %v5198_v16  ;;  %v1969_v31 = vpack.c.bf16 %v6398_v28, %v6386_v27  ;;  %3793 = vmatprep.subr.bf16.mxu0 %v5017_v7  ;;  %v5568_v63 = vld [vmem:[#allocation3 + $0x80] ss:$8 sps:$4 sm:$0xff]  }
 0x1bc   :  { %v3104_v51 = vmul.bf16 %v3040_v5, %v7065_v34  ;;  %v6403_v58 = vpack.c.bf16 %v1252_v4, %v1248_v40  ;;  %v1254_v20 = vpop.f32.mrb[55].mxu1  ;;  %v5202_v56 = vpop.eup %5201  ;;  %5221 = vrcp.f32 %v2577_v60  ;;  %v2584_v53 = vadd.f32 1.0, %v5200_v52  ;;  %1776 = vmatmul.mubr.bf16.gmra.mrb[160].mxu1 %v5568_v63  ;;  %3794 = vmatpush1.bf16.msra.mxu0 %v5015_v22 }
 0x1bd   :  { %v3105_v42 = vmul.bf16 %v3041_v0, %v7066_v54  ;;  %v6410_v38 = vpack.c.bf16 %v1254_v20, %v1250_v36  ;;  %v5204_v11 = vpop.eup %5203  ;;  %v2952_v5 = vmul.f32 %v5202_v56, %v2056_v18  ;;  %5223 = vrcp.f32 %v2581_v62  ;;  %v5569_v36 = vld [vmem:[#allocation3 + $0x94] ss:$8 sps:$4 sm:$0xff]   ;;  %v6420_v18 = vpop.f32.mrb[52].mxu0 }
 0x1be   :  { %v2088_v40 = vunpack.c.l.bf16 %v6403_v58  ;;  %v2092_v13 = vunpack.c.h.bf16 %v6403_v58  ;;  %v5206_v52 = vpop.eup %5205  ;;  %v2956_v45 = vmul.f32 %v5204_v11, %v2060_v2  ;;  %5225 = vrcp.f32 %v2584_v53  ;;  %1785 = vmatprep.mubr.bf16.mxu1 %v5569_v36  ;;  %v6428_v16 = vpop.f32.mrb[53].mxu0 }
 0x1bf   :  { %3696 = vmatprep.mubr.bf16.mxu0 %v3105_v42  ;;  %v2089_v15 = vunpack.c.l.bf16 %v6410_v38  ;;  %v2093_v20 = vunpack.c.h.bf16 %v6410_v38  ;;  %v5208_v56 = vpop.eup %5207  ;;  %v2953_v62 = vmul.f32 %v5206_v52, %v2057_v1  ;;  %5227 = vpow2.f32 %v4667_v24  ;;  %v1258_v1 = vpop.f32.mrb[56].mxu1 }
 0x1c0   :  { %3697 = vmatmul.mubr.bf16.gmra.mrb[96].mxu0 %v3104_v51  ;;  %v4671_v35 = vmul.f32 -1.442695, %v2088_v40  ;;  %v4675_v2 = vmul.f32 -1.442695, %v2092_v13  ;;  %v5210_v60 = vpop.eup %5209  ;;  %v2957_v34 = vmul.f32 %v5208_v56, %v2061_v59  ;;  %5229 = vpow2.f32 %v4664_v6  ;;  %v6434_v24 = vpop.f32.mrb[54].mxu0 }
 0x1c1   :  { %v3044_v0 = vpack.c.bf16 %v2956_v45, %v2952_v5  ;;  %v4672_v4 = vmul.f32 -1.442695, %v2089_v15  ;;  %v5212_v51 = vpop.eup %5211  ;;  %v6438_v22 = vmul.f32 %v5210_v60, %v2064_v30  ;;  %5231 = vpow2.f32 %v4668_v14  ;;  %v1260_v53 = vpop.f32.mrb[57].mxu1  ;;  %v5018_v6 = vld [vmem:[#allocation8 + $0x190] ss:$8 sps:$4 sm:$0xff]  }
 0x1c2   :  { %v4676_v7 = vmul.f32 -1.442695, %v2093_v20  ;;  %v1972_v47 = vpack.c.bf16 %v6434_v24, %v6420_v18  ;;  %v6444_v59 = vpop.f32.mrb[55].mxu0  ;;  %v5214_v54 = vpop.eup %5213  ;;  %v2588_v42 = vadd.f32 1.0, %v5212_v51  ;;  %5233 = vpow2.f32 %v4671_v35  ;;  %v5020_v14 = vld [vmem:[#allocation8 + $0x194] ss:$8 sps:$4 sm:$0xff]  }
 0x1c3   :  { %v3108_v11 = vmul.bf16 %v3044_v0, %v1956_v41  ;;  %v3045_v30 = vpack.c.bf16 %v2957_v34, %v2953_v62  ;;  %v1262_v5 = vpop.f32.mrb[58].mxu1  ;;  %v5216_v63 = vpop.eup %5215  ;;  %v2585_v52 = vadd.f32 1.0, %v5214_v54  ;;  %5235 = vpow2.f32 %v4675_v2  ;;  %3795 = vmatprep.subr.bf16.mxu0 %v5020_v14  ;;  %v5570_v34 = vld [vmem:[#allocation3 + $0x90] ss:$8 sps:$4 sm:$0xff]  }
 0x1c4   :  { %v6449_v45 = vpack.c.bf16 %v1262_v5, %v1258_v1  ;;  %v1264_v36 = vpop.f32.mrb[59].mxu1  ;;  %v1973_v56 = vpack.c.bf16 %v6444_v59, %v6428_v16  ;;  %v5218_v60 = vpop.eup %5217  ;;  %5237 = vrcp.f32 %v2588_v42  ;;  %v2589_v51 = vadd.f32 1.0, %v5216_v63  ;;  %1786 = vmatmul.mubr.bf16.gmra.mrb[164].mxu1 %v5570_v34  ;;  %3796 = vmatpush1.bf16.msra.mxu0 %v5018_v6 }
 0x1c5   :  { %v3109_v23 = vmul.bf16 %v3045_v30, %v1957_v3  ;;  %v6456_v50 = vpack.c.bf16 %v1264_v36, %v1260_v53  ;;  %v5220_v41 = vpop.eup %5219  ;;  %5239 = vrcp.f32 %v2585_v52  ;;  %v2592_v62 = vadd.f32 1.0, %v5218_v60  ;;  %1795 = vmatprep.mubr.bf16.mxu1 %v5571_v10  ;;  %v6463_v3 = vpop.f32.mrb[56].mxu0 }
 0x1c6   :  { %v2096_v35 = vunpack.c.l.bf16 %v6449_v45  ;;  %v2100_v2 = vunpack.c.h.bf16 %v6449_v45  ;;  %v5222_v0 = vpop.eup %5221  ;;  %v2964_v1 = vmul.f32 %v5220_v41, %v2068_v39  ;;  %5241 = vrcp.f32 %v2589_v51  ;;  %v6471_v39 = vpop.f32.mrb[57].mxu0 }
 0x1c7   :  { %3706 = vmatprep.mubr.bf16.mxu0 %v3109_v23  ;;  %v7027_v55 = vunpack.c.l.bf16 %v6456_v50  ;;  %v5224_v53 = vpop.eup %5223  ;;  %v7067_v54 = vunpack.c.l.bf16 %v6286_v33  ;;  %5243 = vrcp.f32 %v2592_v62  ;;  %v7068_v5 = vunpack.c.h.bf16 %v6286_v33  ;;  %v1268_v36 = vpop.f32.mrb[60].mxu1  ;;  %v5021_v62 = vld [vmem:[#allocation8 + $0x1a0] ss:$8 sps:$4 sm:$0xff]  }
 0x1c8   :  { %3707 = vmatmul.mubr.bf16.gmra.mrb[100].mxu0 %v3108_v11  ;;  %v4679_v6 = vmul.f32 -1.442695, %v2096_v35  ;;  %v4683_v29 = vmul.f32 -1.442695, %v2100_v2  ;;  %v5226_v30 = vpop.eup %5225  ;;  %5245 = vpow2.f32 %v4672_v4  ;;  %v3048_v63 = vpack.c.bf16 %v2964_v1, %v6438_v22  ;;  %v6477_v60 = vpop.f32.mrb[58].mxu0 }
 0x1c9   :  { %v2961_v42 = vmul.f32 %v5222_v0, %v7067_v54  ;;  %v2965_v14 = vmul.f32 %v5224_v53, %v7068_v5  ;;  %v7031_v52 = vunpack.c.h.bf16 %v6456_v50  ;;  %v5023_v11 = vld [vmem:[#allocation8 + $0x1a4] ss:$8 sps:$4 sm:$0xff]   ;;  %v5228_v51 = vpop.eup %5227  ;;  %v6481_v23 = vmul.f32 %v5226_v30, %v2072_v61  ;;  %v1270_v33 = vpop.f32.mrb[61].mxu1 }
 0x1ca   :  { %5247 = vpow2.f32 %v4676_v7  ;;  %v4680_v41 = vmul.f32 -1.442695, %v7027_v55  ;;  %v6487_v22 = vpop.f32.mrb[59].mxu0  ;;  %v5230_v34 = vpop.eup %5229  ;;  %v2596_v0 = vadd.f32 1.0, %v5228_v51  ;;  %v3112_v1 = vmul.bf16 %v3048_v63, %v1960_v21  ;;  %3797 = vmatprep.subr.bf16.mxu0 %v5023_v11  ;;  %v5572_v11 = vld [vmem:[#allocation3 + $0xa0] ss:$8 sps:$4 sm:$0xff]  }
 0x1cb   :  { %5249 = vpow2.f32 %v4679_v6  ;;  %v3049_v61 = vpack.c.bf16 %v2965_v14, %v2961_v42  ;;  %v1272_v10 = vpop.f32.mrb[62].mxu1  ;;  %v5232_v7 = vpop.eup %5231  ;;  %v2593_v53 = vadd.f32 1.0, %v5230_v34  ;;  %3798 = vmatpush1.bf16.msra.mxu0 %v5021_v62  ;;  %v5026_v42 = vld [vmem:[#allocation8 + $0x1b4] ss:$8 sps:$4 sm:$0xff]   ;;  %v5024_v51 = vld [vmem:[#allocation8 + $0x1b0] ss:$8 sps:$4 sm:$0xff]   ;;  %v7079_v45 = vpack.c.bf16 %v6477_v60, %v6463_v3 }
 0x1cc   :  { %5251 = vpow2.f32 %v4683_v29  ;;  %v6492_v54 = vpack.c.bf16 %v1272_v10, %v1268_v36  ;;  %v1274_v30 = vpop.f32.mrb[63].mxu1  ;;  %v5234_v55 = vpop.eup %5233  ;;  %v2597_v6 = vadd.f32 1.0, %v5232_v7  ;;  %1796 = vmatmul.mubr.bf16.gmra.mrb[168].mxu1 %v5572_v11  ;;  %v4684_v43 = vmul.f32 -1.442695, %v7031_v52  ;;  %3799 = vmatprep.subr.bf16.mxu0 %v5026_v42  ;;  %v5032_v52 = vld [vmem:[#allocation8 + $0x1d4] ss:$8 sps:$4 sm:$0xff]  }
 0x1cd   :  { %5253 = vrcp.f32 %v2596_v0  ;;  %v3113_v26 = vmul.bf16 %v3049_v61, %v7069_v37  ;;  %v6499_v21 = vpack.c.bf16 %v1274_v30, %v1270_v33  ;;  %v5236_v14 = vpop.eup %5235  ;;  %v2600_v29 = vadd.f32 1.0, %v5234_v55  ;;  %v5573_v33 = vld [vmem:[#allocation3 + $0xb4] ss:$8 sps:$4 sm:$0xff]   ;;  %v6506_v0 = vpop.f32.mrb[60].mxu0 }
 0x1ce   :  { %5255 = vrcp.f32 %v2593_v53  ;;  %v7029_v63 = vunpack.c.l.bf16 %v6492_v54  ;;  %v7028_v36 = vunpack.c.h.bf16 %v6492_v54  ;;  %v5238_v62 = vpop.eup %5237  ;;  %v2604_v34 = vadd.f32 1.0, %v5236_v14  ;;  %1805 = vmatprep.mubr.bf16.mxu1 %v5573_v33  ;;  %v6512_v53 = vpop.f32.mrb[61].mxu0 }
 0x1cf   :  { %5257 = vrcp.f32 %v2597_v6  ;;  %3716 = vmatprep.mubr.bf16.mxu0 %v3113_v26  ;;  %v7030_v32 = vunpack.c.l.bf16 %v6499_v21  ;;  %v5240_v55 = vpop.eup %5239  ;;  %v7070_v61 = vunpack.c.h.bf16 %v6322_v25  ;;  %v7071_v6 = vunpack.c.l.bf16 %v6326_v8  ;;  %v1311_v14 = vpop.f32.mrb[64].mxu1  ;;  %3800 = vmatpush1.bf16.msra.mxu0 %v5024_v51 }
 0x1d0   :  { %5259 = vrcp.f32 %v2600_v29  ;;  %3717 = vmatmul.mubr.bf16.gmra.mrb[104].mxu0 %v3112_v1  ;;  %v4687_v7 = vmul.f32 -1.442695, %v7029_v63  ;;  %v5242_v30 = vpop.eup %5241  ;;  %v4691_v26 = vmul.f32 -1.442695, %v7028_v36  ;;  %v6518_v11 = vpop.f32.mrb[62].mxu0  ;;  %v7072_v1 = vunpack.c.h.bf16 %v6326_v8 }
 0x1d1   :  { %v2972_v10 = vmul.f32 %v5238_v62, %v7070_v61  ;;  %v2969_v37 = vmul.f32 %v5240_v55, %v7071_v6  ;;  %5261 = vrcp.f32 %v2604_v34  ;;  %v5244_v25 = vpop.eup %5243  ;;  %v1313_v42 = vpop.f32.mrb[65].mxu1  ;;  %v5027_v34 = vld [vmem:[#allocation8 + $0x1c0] ss:$8 sps:$4 sm:$0xff]   ;;  %v5029_v61 = vld [vmem:[#allocation8 + $0x1c4] ss:$8 sps:$4 sm:$0xff]   ;;  %v2109_v5 = vunpack.c.h.bf16 %v6499_v21 }
 0x1d2   :  { %v2973_v29 = vmul.f32 %v5242_v30, %v7072_v1  ;;  %5263 = vpow2.f32 %v4680_v41  ;;  %v6525_v55 = vpop.f32.mrb[63].mxu0  ;;  %v5246_v6 = vpop.eup %5245  ;;  %v4688_v51 = vmul.f32 -1.442695, %v7030_v32  ;;  %3801 = vmatprep.subr.bf16.mxu0 %v5029_v61  ;;  %v7083_v60 = vunpack.c.h.bf16 %v6492_v54 }
 0x1d3   :  { %v3052_v62 = vpack.c.bf16 %v2972_v10, %v6481_v23  ;;  %5265 = vpow2.f32 %v4684_v43  ;;  %v1315_v8 = vpop.f32.mrb[66].mxu1  ;;  %v2601_v10 = vadd.f32 1.0, %v5246_v6  ;;  %3802 = vmatpush1.bf16.msra.mxu0 %v5027_v34  ;;  %v7073_v6 = vunpack.c.l.bf16 %v6364_v44 }
 0x1d4   :  { %v5248_v23 = vpop.eup %5247  ;;  %5267 = vpow2.f32 %v4687_v7  ;;  %v3053_v1 = vpack.c.bf16 %v2973_v29, %v2969_v37  ;;  %v1317_v33 = vpop.f32.mrb[67].mxu1  ;;  %v6535_v63 = vpack.c.bf16 %v1315_v8, %v1311_v14  ;;  %1806 = vmatmul.mubr.bf16.gmra.mrb[172].mxu1 %v5574_v49  ;;  %v5030_v37 = vld [vmem:[#allocation8 + $0x1d0] ss:$8 sps:$4 sm:$0xff]   ;;  %v4692_v29 = vmul.f32 -1.442695, %v2109_v5  ;;  %3803 = vmatprep.subr.bf16.mxu0 %v5032_v52 }
 0x1d5   :  { %v3116_v30 = vmul.bf16 %v3052_v62, %v1964_v9  ;;  %v5250_v43 = vpop.eup %5249  ;;  %v2605_v36 = vadd.f32 1.0, %v5248_v23  ;;  %5269 = vpow2.f32 %v4691_v26  ;;  %v6537_v32 = vpack.c.bf16 %v1317_v33, %v1313_v42  ;;  %v5575_v62 = vld [vmem:[#allocation3 + $0xc4] ss:$8 sps:$4 sm:$0xff]  }
 0x1d6   :  { %v5252_v41 = vpop.eup %5251  ;;  %v2976_v7 = vmul.f32 %v5244_v25, %v7073_v6  ;;  %5271 = vrcp.f32 %v2601_v10  ;;  %v2608_v4 = vadd.f32 1.0, %v5250_v43  ;;  %v7074_v9 = vpack.c.bf16 %v6354_v12, %v6346_v46  ;;  %1815 = vmatprep.mubr.bf16.mxu1 %v5575_v62  ;;  %v5033_v10 = vld [vmem:[#allocation8 + $0x1e0] ss:$8 sps:$4 sm:$0xff]   ;;  %v5035_v43 = vld [vmem:[#allocation8 + $0x1e4] ss:$8 sps:$4 sm:$0xff]  }
 0x1d7   :  { %v5254_v26 = vpop.eup %5253  ;;  %5273 = vrcp.f32 %v2605_v36  ;;  %v2612_v14 = vadd.f32 1.0, %v5252_v41  ;;  %v7075_v25 = vunpack.c.h.bf16 %v6364_v44  ;;  %v7076_v12 = vunpack.c.l.bf16 %v6366_v19  ;;  %v1321_v36 = vpop.f32.mrb[68].mxu1  ;;  %3804 = vmatpush1.bf16.msra.mxu0 %v5030_v37  ;;  %v5576_v62 = vld [vmem:[#allocation3 + $0xc0] ss:$8 sps:$4 sm:$0xff]  }
 0x1d8   :  { %v3117_v57 = vmul.bf16 %v3053_v1, %v7074_v9  ;;  %v5256_v42 = vpop.eup %5255  ;;  %5275 = vrcp.f32 %v2608_v4  ;;  %v7077_v8 = vunpack.c.h.bf16 %v6366_v19  ;;  %v1323_v52 = vpop.f32.mrb[69].mxu1  ;;  %v7078_v19 = vpack.c.bf16 %v6392_v48, %v6378_v17  ;;  %3805 = vmatprep.subr.bf16.mxu0 %v5035_v43  ;;  %v5036_v17 = vld [vmem:[#allocation8 + $0x1f0] ss:$8 sps:$4 sm:$0xff]   ;;  %v5579_v43 = vld [vmem:[#allocation3 + $0xe4] ss:$8 sps:$4 sm:$0xff]  }
 0x1d9   :  { %v2980_v33 = vmul.f32 %v5254_v26, %v7075_v25  ;;  %v5258_v46 = vpop.eup %5257  ;;  %v2977_v34 = vmul.f32 %v5256_v42, %v7076_v12  ;;  %5277 = vrcp.f32 %v2612_v14  ;;  %v1325_v1 = vpop.f32.mrb[70].mxu1  ;;  %v5577_v25 = vld [vmem:[#allocation3 + $0xd4] ss:$8 sps:$4 sm:$0xff]  }
 0x1da   :  { %3726 = vmatprep.mubr.bf16.mxu0 %v3117_v57  ;;  %v5260_v61 = vpop.eup %5259  ;;  %v2981_v41 = vmul.f32 %v5258_v46, %v7077_v8  ;;  %5279 = vpow2.f32 %v4688_v51  ;;  %v6559_v37 = vpack.c.bf16 %v1325_v1, %v1321_v36 }
 0x1db   :  { %3727 = vmatmul.mubr.bf16.gmra.mrb[108].mxu0 %v3116_v30  ;;  %v3056_v23 = vpack.c.bf16 %v2980_v33, %v2976_v7  ;;  %v5262_v44 = vpop.eup %5261  ;;  %v2984_v4 = vmul.f32 %v5260_v61, %v2088_v40  ;;  %5281 = vpow2.f32 %v4692_v29  ;;  %v1327_v7 = vpop.f32.mrb[71].mxu1  ;;  %v5038_v40 = vld [vmem:[#allocation8 + $0x1f4] ss:$8 sps:$4 sm:$0xff]  }
 0x1dc   :  { %v5264_v6 = vpop.eup %5263  ;;  %v2988_v30 = vmul.f32 %v5262_v44, %v2092_v13  ;;  %v3057_v51 = vpack.c.bf16 %v2981_v41, %v2977_v34  ;;  %v6561_v26 = vpack.c.bf16 %v1327_v7, %v1323_v52  ;;  %1816 = vmatmul.mubr.bf16.gmra.mrb[176].mxu1 %v5576_v62  ;;  %3806 = vmatpush1.bf16.msra.mxu0 %v5033_v10 }
 0x1dd   :  { %v3120_v9 = vmul.bf16 %v3056_v23, %v7078_v19  ;;  %v5266_v57 = vpop.eup %5265  ;;  %v2609_v49 = vadd.f32 1.0, %v5264_v6  ;;  %1825 = vmatprep.mubr.bf16.mxu1 %v5577_v25  ;;  %3807 = vmatprep.subr.bf16.mxu0 %v5038_v40  ;;  %v7082_v40 = vunpack.c.l.bf16 %v6492_v54  ;;  %v5581_v25 = vld [vmem:[#allocation3 + $0xf4] ss:$8 sps:$4 sm:$0xff]  }
 0x1de   :  { %v5268_v14 = vpop.eup %5267  ;;  %v2613_v29 = vadd.f32 1.0, %v5266_v57  ;;  %v3121_v58 = vmul.bf16 %v3057_v51, %v1969_v31  ;;  %v3060_v13 = vpack.c.bf16 %v2988_v30, %v2984_v4  ;;  %v1331_v12 = vpop.f32.mrb[72].mxu1  ;;  %v7081_v51 = vunpack.c.h.bf16 %v6456_v50 }
 0x1df   :  { %v5270_v48 = vpop.eup %5269  ;;  %5283 = vrcp.f32 %v2609_v49  ;;  %v2616_v42 = vadd.f32 1.0, %v5268_v14  ;;  %v1333_v61 = vpop.f32.mrb[73].mxu1 }
 0x1e0   :  { %v5272_v33 = vpop.eup %5271  ;;  %5285 = vrcp.f32 %v2613_v29  ;;  %v2620_v46 = vadd.f32 1.0, %v5270_v48  ;;  %3736 = vmatprep.mubr.bf16.mxu0 %v3121_v58  ;;  %v3124_v27 = vmul.bf16 %v3060_v13, %v1972_v47  ;;  %3808 = vmatpush1.bf16.msra.mxu0 %v5036_v17  ;;  %v1335_v18 = vpop.f32.mrb[74].mxu1  ;;  %v5580_v17 = vld [vmem:[#allocation3 + $0xe0] ss:$8 sps:$4 sm:$0xff]  }
 0x1e1   :  { %v5274_v31 = vpop.eup %5273  ;;  %v2985_v28 = vmul.f32 %v5272_v33, %v2089_v15  ;;  %5287 = vrcp.f32 %v2616_v42  ;;  %v1337_v23 = vpop.f32.mrb[75].mxu1  ;;  %v6577_v44 = vpack.c.bf16 %v1335_v18, %v1331_v12  ;;  %v5582_v18 = vld [vmem:[#allocation3 + $0xf0] ss:$8 sps:$4 sm:$0xff]  }
 0x1e2   :  { %v5276_v34 = vpop.eup %5275  ;;  %v2989_v36 = vmul.f32 %v5274_v31, %v2093_v20  ;;  %5289 = vrcp.f32 %v2620_v46  ;;  %v6579_v38 = vpack.c.bf16 %v1337_v23, %v1333_v61  ;;  %v7085_v46 = vpack.c.bf16 %v6518_v11, %v6506_v0 }
 0x1e3   :  { %3737 = vmatmul.mubr.bf16.gmra.mrb[112].mxu0 %v3120_v9  ;;  %v5278_v8 = vpop.eup %5277  ;;  %v2992_v41 = vmul.f32 %v5276_v34, %v2096_v35  ;;  %v5578_v35 = vld [vmem:[#allocation3 + $0xd0] ss:$8 sps:$4 sm:$0xff]   ;;  %v7080_v9 = vunpack.c.l.bf16 %v6456_v50  ;;  %v7084_v50 = vpack.c.bf16 %v6487_v22, %v6471_v39  ;;  %v7087_v0 = vpack.c.bf16 %v6525_v55, %v6512_v53 }
 0x1e4   :  { %v5280_v24 = vpop.eup %5279  ;;  %v2996_v47 = vmul.f32 %v5278_v8, %v2100_v2  ;;  %v3061_v15 = vpack.c.bf16 %v2989_v36, %v2985_v28  ;;  %1826 = vmatmul.mubr.bf16.gmra.mrb[180].mxu1 %v5578_v35  ;;  %v7086_v28 = vunpack.c.l.bf16 %v6499_v21 }
 0x1e5   :  { %v5282_v52 = vpop.eup %5281  ;;  %v2617_v10 = vadd.f32 1.0, %v5280_v24  ;;  %1835 = vmatprep.mubr.bf16.mxu1 %v5579_v43 }
 0x1e6   :  { %v2621_v20 = vadd.f32 1.0, %v5282_v52  ;;  %v3125_v4 = vmul.bf16 %v3061_v15, %v1973_v56  ;;  %v3064_v1 = vpack.c.bf16 %v2996_v47, %v2992_v41  ;;  %v1341_v30 = vpop.f32.mrb[76].mxu1 }
 0x1e7   :  { %5291 = vrcp.f32 %v2617_v10  ;;  %v1343_v59 = vpop.f32.mrb[77].mxu1 }
 0x1e8   :  { %5293 = vrcp.f32 %v2621_v20  ;;  %3746 = vmatprep.mubr.bf16.mxu0 %v3125_v4  ;;  %v3128_v2 = vmul.bf16 %v3064_v1, %v7079_v45  ;;  %v1345_v57 = vpop.f32.mrb[78].mxu1 }
 0x1e9   :  { %v5284_v6 = vpop.eup %5283  ;;  %v6593_v29 = vpack.c.bf16 %v1345_v57, %v1341_v30  ;;  %v1347_v3 = vpop.f32.mrb[79].mxu1 }
 0x1ea   :  { %v5286_v19 = vpop.eup %5285  ;;  %v2993_v16 = vmul.f32 %v5284_v6, %v7080_v9  ;;  %v6597_v62 = vpack.c.bf16 %v1347_v3, %v1343_v59  ;;  %v1986_v3 = vunpack.c.l.bf16 %v6535_v63 }
 0x1eb   :  { %3747 = vmatmul.mubr.bf16.gmra.mrb[116].mxu0 %v3124_v27  ;;  %v5288_v56 = vpop.eup %5287  ;;  %v2997_v7 = vmul.f32 %v5286_v19, %v7081_v51 }
 0x1ec   :  { %v5290_v49 = vpop.eup %5289  ;;  %v3000_v14 = vmul.f32 %v5288_v56, %v7082_v40  ;;  %1836 = vmatmul.mubr.bf16.gmra.mrb[184].mxu1 %v5580_v17  ;;  %v1990_v17 = vunpack.c.h.bf16 %v6535_v63 }
 0x1ed   :  { %v3004_v58 = vmul.f32 %v5290_v49, %v7083_v60  ;;  %v3065_v13 = vpack.c.bf16 %v2997_v7, %v2993_v16  ;;  %1845 = vmatprep.mubr.bf16.mxu1 %v5581_v25 }
 0x1ee   :  { %v1351_v54 = vpop.f32.mrb[80].mxu1 }
 0x1ef   :  { %v3129_v48 = vmul.bf16 %v3065_v13, %v7084_v50  ;;  %v3068_v42 = vpack.c.bf16 %v3004_v58, %v3000_v14  ;;  %v1353_v34 = vpop.f32.mrb[81].mxu1  ;;  %v4569_v58 = vmul.f32 -1.442695, %v1986_v3 }
 0x1f0   :  { %v1355_v22 = vpop.f32.mrb[82].mxu1 }
 0x1f1   :  { %v5292_v33 = vpop.eup %5291  ;;  %3756 = vmatprep.mubr.bf16.mxu0 %v3129_v48  ;;  %v3132_v27 = vmul.bf16 %v3068_v42, %v7085_v46  ;;  %v6609_v36 = vpack.c.bf16 %v1355_v22, %v1351_v54  ;;  %v1357_v61 = vpop.f32.mrb[83].mxu1  ;;  %v1987_v48 = vunpack.c.l.bf16 %v6537_v32  ;;  %5295 = vpow2.f32 %v4569_v58 }
 0x1f2   :  { %v5294_v31 = vpop.eup %5293  ;;  %v3001_v12 = vmul.f32 %v5292_v33, %v7086_v28  ;;  %v6611_v41 = vpack.c.bf16 %v1357_v61, %v1353_v34  ;;  %v4573_v46 = vmul.f32 -1.442695, %v1990_v17  ;;  %v1995_v22 = vunpack.c.l.bf16 %v6561_v26 }
 0x1f3   :  { %3757 = vmatmul.mubr.bf16.gmra.mrb[120].mxu0 %v3128_v2  ;;  %v3005_v39 = vmul.f32 %v5294_v31, %v2109_v5  ;;  %v4570_v54 = vmul.f32 -1.442695, %v1987_v48  ;;  %v1994_v31 = vunpack.c.l.bf16 %v6559_v37  ;;  %v7036_v58 = vunpack.c.l.bf16 %v6593_v29 }
 0x1f4   :  { %1846 = vmatmul.mubr.bf16.gmra.mrb[188].mxu1 %v5582_v18  ;;  %5297 = vpow2.f32 %v4573_v46 }
 0x1f5   :  { %v3069_v8 = vpack.c.bf16 %v3005_v39, %v3001_v12  ;;  %v1998_v12 = vunpack.c.h.bf16 %v6559_v37  ;;  %5299 = vpow2.f32 %v4570_v54 }
 0x1f6   :  { %v1361_v24 = vpop.f32.mrb[84].mxu1 }
 0x1f7   :  { %v3133_v11 = vmul.bf16 %v3069_v8, %v7087_v0  ;;  %v1363_v47 = vpop.f32.mrb[85].mxu1  ;;  %v4577_v8 = vmul.f32 -1.442695, %v1994_v31 }
 0x1f8   :  { %v1365_v15 = vpop.f32.mrb[86].mxu1 }
 0x1f9   :  { %3766 = vmatprep.mubr.bf16.mxu0 %v3133_v11  ;;  %v6616_v21 = vpack.c.bf16 %v1365_v15, %v1361_v24  ;;  %v1367_v5 = vpop.f32.mrb[87].mxu1  ;;  %v4581_v24 = vmul.f32 -1.442695, %v1998_v12 }
 0x1fa   :  { %v6618_v23 = vpack.c.bf16 %v1367_v5, %v1363_v47  ;;  %v4578_v47 = vmul.f32 -1.442695, %v1995_v22  ;;  %v1999_v5 = vunpack.c.h.bf16 %v6561_v26 }
 0x1fb   :  { %3767 = vmatmul.mubr.bf16.gmra.mrb[124].mxu0 %v3132_v27  ;;  %v1991_v27 = vunpack.c.h.bf16 %v6537_v32  ;;  %v5296_v15 = vpop.eup %5295 }
 0x1fd   :  { %v4574_v39 = vmul.f32 -1.442695, %v1991_v27 }
 0x1fe   :  { %v1371_v52 = vpop.f32.mrb[88].mxu1 }
 0x1ff   :  { %v1373_v10 = vpop.f32.mrb[89].mxu1  ;;  %5301 = vpow2.f32 %v4574_v39 }
 0x200   :  { %v1375_v20 = vpop.f32.mrb[90].mxu1  ;;  %5303 = vpow2.f32 %v4577_v8 }
 0x201   :  { %v6620_v4 = vpack.c.bf16 %v1375_v20, %v1371_v52  ;;  %v1377_v1 = vpop.f32.mrb[91].mxu1  ;;  %v7043_v52 = vunpack.c.l.bf16 %v6577_v44  ;;  %5305 = vpow2.f32 %v4581_v24  ;;  %v7042_v20 = vunpack.c.h.bf16 %v6577_v44 }
 0x202   :  { %v6622_v35 = vpack.c.bf16 %v1377_v1, %v1373_v10  ;;  %5307 = vpow2.f32 %v4578_v47 }
 0x206   :  { %v1381_v53 = vpop.f32.mrb[92].mxu1 }
 0x207   :  { %v1383_v55 = vpop.f32.mrb[93].mxu1 }
 0x208   :  { %v1385_v43 = vpop.f32.mrb[94].mxu1 }
 0x209   :  { %v6624_v45 = vpack.c.bf16 %v1385_v43, %v1381_v53  ;;  %v1387_v2 = vpop.f32.mrb[95].mxu1  ;;  %v2498_v53 = vadd.f32 1.0, %v5296_v15 }
 0x20a   :  { %v6626_v6 = vpack.c.bf16 %v1387_v2, %v1383_v55  ;;  %v7040_v55 = vunpack.c.l.bf16 %v6579_v38  ;;  %v4582_v2 = vmul.f32 -1.442695, %v1999_v5 }
 0x20b   :  { %5309 = vrcp.f32 %v2498_v53  ;;  %v7033_v53 = vunpack.c.l.bf16 %v6597_v62 }
 0x20c   :  { %5311 = vpow2.f32 %v4582_v2 }
 0x20e   :  { %v1391_v30 = vpop.f32.mrb[96].mxu1 }
 0x20f   :  { %v1393_v19 = vpop.f32.mrb[97].mxu1 }
 0x210   :  { %v1395_v9 = vpop.f32.mrb[98].mxu1 }
 0x211   :  { %v6628_v16 = vpack.c.bf16 %v1395_v9, %v1391_v30  ;;  %v1397_v59 = vpop.f32.mrb[99].mxu1  ;;  %v5298_v9 = vpop.eup %5297 }
 0x212   :  { %v6630_v56 = vpack.c.bf16 %v1397_v59, %v1393_v19  ;;  %v4585_v59 = vmul.f32 -1.442695, %v7043_v52 }
 0x214   :  { %5313 = vpow2.f32 %v4585_v59  ;;  %v7034_v59 = vunpack.c.l.bf16 %v6609_v36 }
 0x216   :  { %v1401_v51 = vpop.f32.mrb[100].mxu1 }
 0x217   :  { %v1403_v7 = vpop.f32.mrb[101].mxu1 }
 0x218   :  { %v1405_v57 = vpop.f32.mrb[102].mxu1 }
 0x219   :  { %v6632_v49 = vpack.c.bf16 %v1405_v57, %v1401_v51  ;;  %v1407_v40 = vpop.f32.mrb[103].mxu1  ;;  %v4589_v57 = vmul.f32 -1.442695, %v7042_v20 }
 0x21a   :  { %v6634_v14 = vpack.c.bf16 %v1407_v40, %v1403_v7  ;;  %v5300_v7 = vpop.eup %5299  ;;  %v7039_v40 = vunpack.c.h.bf16 %v6579_v38 }
 0x21b   :  { %5315 = vpow2.f32 %v4589_v57  ;;  %v7037_v57 = vunpack.c.h.bf16 %v6609_v36 }
 0x21e   :  { %v1411_v60 = vpop.f32.mrb[104].mxu1 }
 0x21f   :  { %v1413_v13 = vpop.f32.mrb[105].mxu1 }
 0x220   :  { %v1415_v50 = vpop.f32.mrb[106].mxu1 }
 0x221   :  { %v6641_v42 = vpack.c.bf16 %v1415_v50, %v1411_v60  ;;  %v1417_v25 = vpop.f32.mrb[107].mxu1  ;;  %v4586_v60 = vmul.f32 -1.442695, %v7040_v55  ;;  %v5302_v50 = vpop.eup %5301 }
 0x222   :  { %v6643_v33 = vpack.c.bf16 %v1417_v25, %v1413_v13  ;;  %v2502_v13 = vadd.f32 1.0, %v5298_v9  ;;  %v2499_v25 = vadd.f32 1.0, %v5300_v7  ;;  %v5304_v54 = vpop.eup %5303  ;;  %v2503_v24 = vadd.f32 1.0, %v5302_v50 }
 0x223   :  { %5317 = vpow2.f32 %v4586_v60 }
 0x224   :  { %5319 = vrcp.f32 %v2502_v13  ;;  %v4594_v13 = vmul.f32 -1.442695, %v7033_v53 }
 0x225   :  { %5321 = vrcp.f32 %v2499_v25 }
 0x226   :  { %v1421_v28 = vpop.f32.mrb[108].mxu1 }
 0x227   :  { %v1423_v34 = vpop.f32.mrb[109].mxu1 }
 0x228   :  { %v1425_v61 = vpop.f32.mrb[110].mxu1 }
 0x229   :  { %v6657_v18 = vpack.c.bf16 %v1425_v61, %v1421_v28  ;;  %v1427_v0 = vpop.f32.mrb[111].mxu1  ;;  %v4590_v28 = vmul.f32 -1.442695, %v7039_v40  ;;  %v4593_v61 = vmul.f32 -1.442695, %v7036_v58 }
 0x22a   :  { %v6659_v11 = vpack.c.bf16 %v1427_v0, %v1423_v34  ;;  %v7035_v34 = vunpack.c.h.bf16 %v6593_v29  ;;  %v5306_v0 = vpop.eup %5305 }
 0x22b   :  { %5323 = vpow2.f32 %v4590_v28  ;;  %v2510_v9 = vadd.f32 1.0, %v5306_v0  ;;  %v4605_v0 = vmul.f32 -1.442695, %v7037_v57 }
 0x22c   :  { %v4597_v2 = vmul.f32 -1.442695, %v7035_v34  ;;  %5325 = vpow2.f32 %v4593_v61 }
 0x22d   :  { %5327 = vrcp.f32 %v2503_v24 }
 0x22e   :  { %v1431_v10 = vpop.f32.mrb[112].mxu1 }
 0x22f   :  { %v1433_v1 = vpop.f32.mrb[113].mxu1 }
 0x230   :  { %v1435_v43 = vpop.f32.mrb[114].mxu1 }
 0x231   :  { %v6671_v30 = vpack.c.bf16 %v1435_v43, %v1431_v10  ;;  %v1437_v19 = vpop.f32.mrb[115].mxu1  ;;  %v5308_v10 = vpop.eup %5307 }
 0x232   :  { %v6675_v51 = vpack.c.bf16 %v1437_v19, %v1433_v1  ;;  %v2506_v1 = vadd.f32 1.0, %v5304_v54  ;;  %v7032_v19 = vunpack.c.h.bf16 %v6597_v62  ;;  %v2507_v7 = vadd.f32 1.0, %v5308_v10  ;;  %v5310_v60 = vpop.eup %5309 }
 0x233   :  { %v5312_v25 = vpop.eup %5311 }
 0x234   :  { %5329 = vrcp.f32 %v2506_v1  ;;  %v5314_v28 = vpop.eup %5313  ;;  %v2511_v1 = vadd.f32 1.0, %v5312_v25  ;;  %v7047_v25 = vunpack.c.l.bf16 %v6616_v21 }
 0x235   :  { %5331 = vpow2.f32 %v4597_v2  ;;  %v7038_v2 = vunpack.c.l.bf16 %v6611_v41  ;;  %v2514_v53 = vadd.f32 1.0, %v5314_v28  ;;  %v7046_v28 = vunpack.c.h.bf16 %v6616_v21 }
 0x236   :  { %v1441_v46 = vpop.f32.mrb[116].mxu1  ;;  %5333 = vrcp.f32 %v2510_v9  ;;  %v4609_v52 = vmul.f32 -1.442695, %v7047_v25 }
 0x237   :  { %v1443_v39 = vpop.f32.mrb[117].mxu1  ;;  %5335 = vrcp.f32 %v2507_v7 }
 0x238   :  { %v1445_v8 = vpop.f32.mrb[118].mxu1  ;;  %5337 = vpow2.f32 %v4594_v13  ;;  %v4602_v13 = vmul.f32 -1.442695, %v7038_v2 }
 0x239   :  { %v6688_v47 = vpack.c.bf16 %v1445_v8, %v1441_v46  ;;  %v1447_v15 = vpop.f32.mrb[119].mxu1  ;;  %v4598_v46 = vmul.f32 -1.442695, %v7032_v19  ;;  %v5316_v8 = vpop.eup %5315 }
 0x23a   :  { %v6691_v43 = vpack.c.bf16 %v1447_v15, %v1443_v39  ;;  %v4601_v39 = vmul.f32 -1.442695, %v7034_v59  ;;  %v5318_v10 = vpop.eup %5317  ;;  %v7041_v59 = vunpack.c.h.bf16 %v6611_v41  ;;  %v2518_v7 = vadd.f32 1.0, %v5316_v8 }
 0x23b   :  { %v5320_v9 = vpop.eup %5319  ;;  %5339 = vpow2.f32 %v4598_v46  ;;  %v2515_v57 = vadd.f32 1.0, %v5318_v10 }
 0x23c   :  { %v5322_v34 = vpop.eup %5321  ;;  %5341 = vpow2.f32 %v4601_v39  ;;  %v4606_v46 = vmul.f32 -1.442695, %v7041_v59 }
 0x23d   :  { %v5324_v58 = vpop.eup %5323  ;;  %5343 = vpow2.f32 %v4605_v0  ;;  %v2882_v0 = vmul.f32 %v5310_v60, %v1986_v3  ;;  %v7044_v3 = vunpack.c.h.bf16 %v6618_v23  ;;  %v2883_v60 = vmul.f32 %v5322_v34, %v1987_v48 }
 0x23e   :  { %v1451_v50 = vpop.f32.mrb[120].mxu1  ;;  %5345 = vrcp.f32 %v2511_v1  ;;  %v2519_v10 = vadd.f32 1.0, %v5324_v58  ;;  %v4613_v58 = vmul.f32 -1.442695, %v7046_v28 }
 0x23f   :  { %v1453_v54 = vpop.f32.mrb[121].mxu1  ;;  %5347 = vrcp.f32 %v2514_v53  ;;  %v7045_v53 = vunpack.c.l.bf16 %v6618_v23 }
 0x240   :  { %v1455_v61 = vpop.f32.mrb[122].mxu1  ;;  %5349 = vrcp.f32 %v2518_v7 }
 0x241   :  { %v6706_v24 = vpack.c.bf16 %v1455_v61, %v1451_v50  ;;  %v1457_v15 = vpop.f32.mrb[123].mxu1  ;;  %v5326_v50 = vpop.eup %5325  ;;  %5351 = vrcp.f32 %v2515_v57 }
 0x242   :  { %v6709_v19 = vpack.c.bf16 %v1457_v15, %v1453_v54  ;;  %v5328_v61 = vpop.eup %5327  ;;  %v2886_v15 = vmul.f32 %v5320_v9, %v1990_v17  ;;  %v2522_v40 = vadd.f32 1.0, %v5326_v50  ;;  %5353 = vpow2.f32 %v4602_v13 }
 0x243   :  { %v5330_v39 = vpop.eup %5329  ;;  %5355 = vpow2.f32 %v4606_v46  ;;  %v2887_v9 = vmul.f32 %v5328_v61, %v1991_v27  ;;  %v2034_v27 = vunpack.c.l.bf16 %v6620_v4 }
 0x244   :  { %v5332_v2 = vpop.eup %5331  ;;  %5357 = vrcp.f32 %v2519_v10  ;;  %v6742_v48 = vmul.f32 %v5330_v39, %v1994_v31 }
 0x245   :  { %v5334_v20 = vpop.eup %5333  ;;  %v2526_v7 = vadd.f32 1.0, %v5332_v2  ;;  %5359 = vrcp.f32 %v2522_v40  ;;  %v3011_v10 = vpack.c.bf16 %v2887_v9, %v2883_v60  ;;  %v4617_v60 = vmul.f32 -1.442695, %v2034_v27 }
 0x246   :  { %v1461_v54 = vpop.f32.mrb[124].mxu1  ;;  %v5336_v17 = vpop.eup %5335  ;;  %5361 = vpow2.f32 %v4609_v52  ;;  %v2038_v52 = vunpack.c.h.bf16 %v6620_v4 }
 0x247   :  { %v1463_v8 = vpop.f32.mrb[125].mxu1  ;;  %v5338_v57 = vpop.eup %5337  ;;  %5363 = vpow2.f32 %v4613_v58  ;;  %v7049_v58 = vunpack.c.h.bf16 %v6622_v35 }
 0x248   :  { %v1465_v1 = vpop.f32.mrb[126].mxu1  ;;  %v5340_v50 = vpop.eup %5339  ;;  %v2523_v32 = vadd.f32 1.0, %v5338_v57  ;;  %5365 = vrcp.f32 %v2526_v7  ;;  %v2894_v7 = vmul.f32 %v5334_v20, %v1998_v12  ;;  %v2891_v12 = vmul.f32 %v5336_v17, %v1995_v22 }
 0x249   :  { %v6723_v55 = vpack.c.bf16 %v1465_v1, %v1461_v54  ;;  %v1467_v59 = vpop.f32.mrb[127].mxu1  ;;  %v5342_v13 = vpop.eup %5341  ;;  %v4614_v54 = vmul.f32 -1.442695, %v7044_v3  ;;  %v2527_v2 = vadd.f32 1.0, %v5340_v50 }
 0x24a   :  { %v6728_v63 = vpack.c.bf16 %v1467_v59, %v1463_v8  ;;  %v4610_v59 = vmul.f32 -1.442695, %v7045_v53  ;;  %v3010_v8 = vpack.c.bf16 %v2886_v15, %v2882_v0  ;;  %v5344_v1 = vpop.eup %5343  ;;  %v2530_v53 = vadd.f32 1.0, %v5342_v13 }
 0x24b   :  { %v5346_v34 = vpop.eup %5345  ;;  %v2035_v0 = vunpack.c.l.bf16 %v6622_v35  ;;  %v2534_v57 = vadd.f32 1.0, %v5344_v1  ;;  %v7048_v13 = vunpack.c.l.bf16 %v6624_v45  ;;  %v3014_v26 = vpack.c.bf16 %v2894_v7, %v6742_v48 }
 0x24c   :  { %v5348_v3 = vpop.eup %5347  ;;  %5367 = vpow2.f32 %v4610_v59  ;;  %v4621_v59 = vmul.f32 -1.442695, %v2038_v52  ;;  %v2895_v20 = vmul.f32 %v5346_v34, %v1999_v5  ;;  %v2046_v34 = vunpack.c.h.bf16 %v6624_v45 }
 0x24d   :  { %v5350_v39 = vpop.eup %5349  ;;  %5369 = vpow2.f32 %v4614_v54  ;;  %v4618_v1 = vmul.f32 -1.442695, %v2035_v0 }
 0x24e   :  { %v1697_v46 = vpop.f32.mrb[128].mxu1  ;;  %v5352_v25 = vpop.eup %5351  ;;  %5371 = vrcp.f32 %v2523_v32 }
 0x24f   :  { %v1699_v40 = vpop.f32.mrb[129].mxu1  ;;  %v5354_v50 = vpop.eup %5353  ;;  %5373 = vrcp.f32 %v2527_v2 }
 0x250   :  { %v1701_v61 = vpop.f32.mrb[130].mxu1  ;;  %5375 = vrcp.f32 %v2530_v53 }
 0x251   :  { %v1922_v15 = vpack.c.bf16 %v1701_v61, %v1697_v46  ;;  %v1703_v31 = vpop.f32.mrb[131].mxu1  ;;  %v5356_v46 = vpop.eup %5355  ;;  %5377 = vrcp.f32 %v2534_v57  ;;  %v4625_v61 = vmul.f32 -1.442695, %v7048_v13  ;;  %v7088_v57 = vunpack.c.l.bf16 %v6577_v44 }
 0x252   :  { %v1923_v28 = vpack.c.bf16 %v1703_v31, %v1699_v40  ;;  %v5358_v37 = vpop.eup %5357  ;;  %5379 = vpow2.f32 %v4617_v60  ;;  %v2535_v17 = vadd.f32 1.0, %v5356_v46 }
 0x253   :  { %v3074_v9 = vmul.bf16 %v3010_v8, %v1922_v15  ;;  %v4622_v8 = vmul.f32 -1.442695, %v7049_v58  ;;  %v5360_v40 = vpop.eup %5359  ;;  %5381 = vpow2.f32 %v4621_v59  ;;  %v2898_v60 = vmul.f32 %v5348_v3, %v7088_v57 }
 0x254   :  { %v3075_v54 = vmul.bf16 %v3011_v10, %v1923_v28  ;;  %v2531_v28 = vadd.f32 1.0, %v5354_v50  ;;  %v5362_v2 = vpop.eup %5361  ;;  %5383 = vpow2.f32 %v4618_v1  ;;  %v3015_v50 = vpack.c.bf16 %v2895_v20, %v2891_v12 }
 0x255   :  { %v5364_v5 = vpop.eup %5363  ;;  %5385 = vpow2.f32 %v4622_v8  ;;  %v2538_v48 = vadd.f32 1.0, %v5362_v2  ;;  %v4629_v3 = vmul.f32 -1.442695, %v2046_v34  ;;  %v7090_v12 = vunpack.c.l.bf16 %v6579_v38 }
 0x256   :  { %v1707_v32 = vpop.f32.mrb[132].mxu1  ;;  %3809 = vmatprep.mubr.bf16.mxu0 %v3075_v54  ;;  %v5366_v31 = vpop.eup %5365  ;;  %v7089_v54 = vunpack.c.h.bf16 %v6577_v44  ;;  %5387 = vrcp.f32 %v2531_v28  ;;  %v2542_v1 = vadd.f32 1.0, %v5364_v5  ;;  %v7091_v44 = vunpack.c.h.bf16 %v6579_v38 }
 0x257   :  { %v1709_v53 = vpop.f32.mrb[133].mxu1  ;;  %3810 = vmatmul.mubr.bf16.vlgmr.msra.gmra.mrb[64].mxu0 %v3074_v9  ;;  %v5368_v59 = vpop.eup %5367  ;;  %5389 = vpow2.f32 %v4625_v61  ;;  %v2899_v20 = vmul.f32 %v5352_v25, %v7090_v12  ;;  %v2050_v5 = vunpack.c.l.bf16 %v6628_v16  ;;  %v7092_v57 = vunpack.c.l.bf16 %v6593_v29 }
 0x258   :  { %v1711_v22 = vpop.f32.mrb[134].mxu1  ;;  %v2902_v13 = vmul.f32 %v5350_v39, %v7089_v54  ;;  %v5370_v46 = vpop.eup %5369  ;;  %5391 = vrcp.f32 %v2535_v17  ;;  %v2903_v39 = vmul.f32 %v5358_v37, %v7091_v44  ;;  %v2539_v28 = vadd.f32 1.0, %v5368_v59 }
 0x259   :  { %v1926_v10 = vpack.c.bf16 %v1711_v22, %v1707_v32  ;;  %v1713_v15 = vpop.f32.mrb[135].mxu1  ;;  %v2043_v32 = vunpack.c.l.bf16 %v6626_v6  ;;  %v5372_v58 = vpop.eup %5371  ;;  %5393 = vrcp.f32 %v2538_v48  ;;  %v6782_v25 = vmul.f32 %v5360_v40, %v7092_v57 }
 0x25a   :  { %v1927_v9 = vpack.c.bf16 %v1713_v15, %v1709_v53  ;;  %v5374_v8 = vpop.eup %5373  ;;  %v2047_v53 = vunpack.c.h.bf16 %v6626_v6  ;;  %v7093_v38 = vunpack.c.h.bf16 %v6593_v29  ;;  %5395 = vrcp.f32 %v2542_v1 }
 0x25b   :  { %v3078_v7 = vmul.bf16 %v3014_v26, %v1926_v10  ;;  %v5376_v61 = vpop.eup %5375  ;;  %v2543_v26 = vadd.f32 1.0, %v5370_v46  ;;  %v3018_v10 = vpack.c.bf16 %v2902_v13, %v2898_v60  ;;  %v7094_v54 = vunpack.c.l.bf16 %v6597_v62 }
 0x25c   :  { %v3079_v22 = vmul.bf16 %v3015_v50, %v1927_v9  ;;  %v5378_v15 = vpop.eup %5377  ;;  %v2910_v37 = vmul.f32 %v5366_v31, %v7093_v38  ;;  %v4626_v9 = vmul.f32 -1.442695, %v2043_v32  ;;  %5397 = vpow2.f32 %v4629_v3 }
 0x25d   :  { %v5380_v59 = vpop.eup %5379  ;;  %v2907_v48 = vmul.f32 %v5372_v58, %v7094_v54  ;;  %5399 = vrcp.f32 %v2539_v28  ;;  %v4630_v29 = vmul.f32 -1.442695, %v2047_v53  ;;  %v3019_v1 = vpack.c.bf16 %v2903_v39, %v2899_v20 }
 0x25e   :  { %v1717_v2 = vpop.f32.mrb[136].mxu1  ;;  %3819 = vmatprep.mubr.bf16.mxu0 %v3079_v22  ;;  %v5382_v40 = vpop.eup %5381  ;;  %5401 = vrcp.f32 %v2543_v26  ;;  %v4633_v12 = vmul.f32 -1.442695, %v2050_v5  ;;  %v2546_v57 = vadd.f32 1.0, %v5380_v59  ;;  %v3022_v28 = vpack.c.bf16 %v2910_v37, %v6782_v25 }
 0x25f   :  { %v1719_v17 = vpop.f32.mrb[137].mxu1  ;;  %3820 = vmatmul.mubr.bf16.gmra.mrb[68].mxu0 %v3078_v7  ;;  %v7095_v7 = vunpack.c.h.bf16 %v6597_v62  ;;  %v5384_v22 = vpop.eup %5383  ;;  %5403 = vpow2.f32 %v4626_v9  ;;  %v2054_v62 = vunpack.c.h.bf16 %v6628_v16  ;;  %v2051_v20 = vunpack.c.l.bf16 %v6630_v56 }
 0x260   :  { %v1721_v50 = vpop.f32.mrb[138].mxu1  ;;  %v5386_v58 = vpop.eup %5385  ;;  %5405 = vpow2.f32 %v4630_v29  ;;  %v2055_v54 = vunpack.c.h.bf16 %v6630_v56  ;;  %v7097_v25 = vunpack.c.h.bf16 %v6609_v36 }
 0x261   :  { %v2911_v13 = vmul.f32 %v5374_v8, %v7095_v7  ;;  %v1930_v60 = vpack.c.bf16 %v1721_v50, %v1717_v2  ;;  %v1723_v46 = vpop.f32.mrb[139].mxu1  ;;  %v5388_v8 = vpop.eup %5387  ;;  %v2550_v2 = vadd.f32 1.0, %v5382_v40  ;;  %v2547_v50 = vadd.f32 1.0, %v5384_v22 }
 0x262   :  { %v1931_v31 = vpack.c.bf16 %v1723_v46, %v1719_v17  ;;  %v5390_v38 = vpop.eup %5389  ;;  %v2551_v9 = vadd.f32 1.0, %v5386_v58  ;;  %5407 = vpow2.f32 %v4633_v12  ;;  %v2918_v37 = vmul.f32 %v5378_v15, %v7097_v25 }
 0x263   :  { %v3082_v44 = vmul.bf16 %v3018_v10, %v1930_v60  ;;  %v3023_v26 = vpack.c.bf16 %v2911_v13, %v2907_v48  ;;  %v5392_v17 = vpop.eup %5391  ;;  %v7096_v10 = vunpack.c.l.bf16 %v6609_v36  ;;  %5409 = vrcp.f32 %v2546_v57 }
 0x264   :  { %v3083_v3 = vmul.bf16 %v3019_v1, %v1931_v31  ;;  %v4637_v60 = vmul.f32 -1.442695, %v2054_v62  ;;  %v2058_v48 = vunpack.c.l.bf16 %v6632_v49  ;;  %v5394_v46 = vpop.eup %5393  ;;  %5411 = vrcp.f32 %v2550_v2 }
 0x265   :  { %v6801_v59 = vmul.f32 %v5376_v61, %v7096_v10  ;;  %v7098_v61 = vunpack.c.l.bf16 %v6611_v41  ;;  %v2554_v29 = vadd.f32 1.0, %v5390_v38  ;;  %v5396_v22 = vpop.eup %5395  ;;  %v7099_v12 = vunpack.c.h.bf16 %v6611_v41 }
 0x266   :  { %v1727_v39 = vpop.f32.mrb[140].mxu1  ;;  %3829 = vmatprep.mubr.bf16.mxu0 %v3083_v3  ;;  %5413 = vrcp.f32 %v2547_v50  ;;  %v4634_v15 = vmul.f32 -1.442695, %v2051_v20  ;;  %v5398_v58 = vpop.eup %5397  ;;  %v4638_v57 = vmul.f32 -1.442695, %v2055_v54  ;;  %v2062_v3 = vunpack.c.h.bf16 %v6632_v49 }
 0x267   :  { %v1729_v7 = vpop.f32.mrb[141].mxu1  ;;  %3830 = vmatmul.mubr.bf16.gmra.mrb[72].mxu0 %v3082_v44  ;;  %v2915_v40 = vmul.f32 %v5388_v8, %v7098_v61  ;;  %v2919_v36 = vmul.f32 %v5392_v17, %v7099_v12  ;;  %5415 = vrcp.f32 %v2551_v9  ;;  %v5400_v2 = vpop.eup %5399  ;;  %v4641_v38 = vmul.f32 -1.442695, %v2058_v48 }
 0x268   :  { %v1731_v13 = vpop.f32.mrb[142].mxu1  ;;  %5417 = vpow2.f32 %v4637_v60  ;;  %v2059_v41 = vunpack.c.l.bf16 %v6634_v14  ;;  %v2558_v10 = vadd.f32 1.0, %v5398_v58  ;;  %v2063_v9 = vunpack.c.h.bf16 %v6634_v14 }
 0x269   :  { %v1934_v31 = vpack.c.bf16 %v1731_v13, %v1727_v39  ;;  %v1733_v1 = vpop.f32.mrb[143].mxu1  ;;  %v5402_v39 = vpop.eup %5401  ;;  %5419 = vrcp.f32 %v2554_v29  ;;  %v3026_v60 = vpack.c.bf16 %v2918_v37, %v6801_v59  ;;  %v3027_v13 = vpack.c.bf16 %v2919_v36, %v2915_v40 }
 0x26a   :  { %v1935_v44 = vpack.c.bf16 %v1733_v1, %v1729_v7  ;;  %v5404_v17 = vpop.eup %5403  ;;  %5421 = vpow2.f32 %v4634_v15  ;;  %v4642_v12 = vmul.f32 -1.442695, %v2059_v41  ;;  %v7102_v58 = vunpack.c.l.bf16 %v6618_v23 }
 0x26b   :  { %v3086_v8 = vmul.bf16 %v3022_v28, %v1934_v31  ;;  %5423 = vpow2.f32 %v4638_v57  ;;  %v4645_v28 = vmul.f32 -1.442695, %v2062_v3  ;;  %v5406_v61 = vpop.eup %5405  ;;  %v7101_v31 = vunpack.c.h.bf16 %v6616_v21 }
 0x26c   :  { %v3087_v50 = vmul.bf16 %v3023_v26, %v1935_v44  ;;  %v7100_v26 = vunpack.c.l.bf16 %v6616_v21  ;;  %5425 = vpow2.f32 %v4641_v38  ;;  %v5408_v44 = vpop.eup %5407  ;;  %v2923_v57 = vmul.f32 %v5400_v2, %v7102_v58 }
 0x26d   :  { %v2926_v1 = vmul.f32 %v5396_v22, %v7101_v31  ;;  %v2555_v37 = vadd.f32 1.0, %v5404_v17  ;;  %5427 = vrcp.f32 %v2558_v10  ;;  %v4646_v21 = vmul.f32 -1.442695, %v2063_v9 }
 0x26e   :  { %v1737_v7 = vpop.f32.mrb[144].mxu1  ;;  %3839 = vmatprep.mubr.bf16.mxu0 %v3087_v50  ;;  %v2922_v29 = vmul.f32 %v5394_v46, %v7100_v26  ;;  %v5410_v50 = vpop.eup %5409  ;;  %v2066_v46 = vunpack.c.l.bf16 %v6641_v42  ;;  %v2559_v26 = vadd.f32 1.0, %v5406_v61  ;;  %5429 = vpow2.f32 %v4645_v28 }
 0x26f   :  { %v1739_v25 = vpop.f32.mrb[145].mxu1  ;;  %3840 = vmatmul.mubr.bf16.gmra.mrb[76].mxu0 %v3086_v8  ;;  %v7103_v8 = vunpack.c.h.bf16 %v6618_v23  ;;  %v5412_v38 = vpop.eup %5411  ;;  %v2070_v31 = vunpack.c.h.bf16 %v6641_v42  ;;  %v2562_v23 = vadd.f32 1.0, %v5408_v44  ;;  %5431 = vpow2.f32 %v4642_v12 }
 0x270   :  { %v1741_v15 = vpop.f32.mrb[146].mxu1  ;;  %v5414_v58 = vpop.eup %5413  ;;  %5433 = vrcp.f32 %v2555_v37  ;;  %v3030_v44 = vpack.c.bf16 %v2926_v1, %v2922_v29  ;;  %v2930_v37 = vmul.f32 %v5410_v50, %v2034_v27  ;;  %v2074_v27 = vunpack.c.l.bf16 %v6657_v18 }
 0x271   :  { %v2927_v59 = vmul.f32 %v5402_v39, %v7103_v8  ;;  %v1938_v40 = vpack.c.bf16 %v1741_v15, %v1737_v7  ;;  %v1743_v36 = vpop.f32.mrb[147].mxu1  ;;  %v2067_v39 = vunpack.c.l.bf16 %v6643_v33  ;;  %v5416_v7 = vpop.eup %5415  ;;  %5435 = vpow2.f32 %v4646_v21 }
 0x272   :  { %v1939_v22 = vpack.c.bf16 %v1743_v36, %v1739_v25  ;;  %v5418_v10 = vpop.eup %5417  ;;  %v4649_v15 = vmul.f32 -1.442695, %v2066_v46  ;;  %v2071_v25 = vunpack.c.h.bf16 %v6643_v33  ;;  %5437 = vrcp.f32 %v2559_v26 }
 0x273   :  { %v3090_v2 = vmul.bf16 %v3026_v60, %v1938_v40  ;;  %v5420_v28 = vpop.eup %5419  ;;  %v4653_v60 = vmul.f32 -1.442695, %v2070_v31  ;;  %v2934_v40 = vmul.f32 %v5412_v38, %v2038_v52  ;;  %5439 = vrcp.f32 %v2562_v23 }
 0x274   :  { %v3091_v17 = vmul.bf16 %v3027_v13, %v1939_v22  ;;  %v3031_v13 = vpack.c.bf16 %v2927_v59, %v2923_v57  ;;  %v5422_v8 = vpop.eup %5421  ;;  %v4650_v36 = vmul.f32 -1.442695, %v2067_v39  ;;  %v2931_v26 = vmul.f32 %v5414_v58, %v2035_v0 }
 0x275   :  { %v5424_v22 = vpop.eup %5423  ;;  %v2566_v1 = vadd.f32 1.0, %v5418_v10  ;;  %5441 = vpow2.f32 %v4649_v15  ;;  %v4654_v4 = vmul.f32 -1.442695, %v2071_v25  ;;  %v2563_v50 = vadd.f32 1.0, %v5422_v8 }
 0x276   :  { %v1747_v61 = vpop.f32.mrb[148].mxu1  ;;  %3849 = vmatprep.mubr.bf16.mxu0 %v3091_v17  ;;  %v5426_v17 = vpop.eup %5425  ;;  %5443 = vpow2.f32 %v4653_v60  ;;  %v7050_v38 = vunpack.c.h.bf16 %v6657_v18  ;;  %v2567_v58 = vadd.f32 1.0, %v5424_v22  ;;  %v7105_v15 = vunpack.c.l.bf16 %v6624_v45 }
 0x277   :  { %v1749_v12 = vpop.f32.mrb[149].mxu1  ;;  %3850 = vmatmul.mubr.bf16.gmra.mrb[80].mxu0 %v3090_v2  ;;  %v7104_v2 = vunpack.c.h.bf16 %v6622_v35  ;;  %v5428_v0 = vpop.eup %5427  ;;  %5445 = vpow2.f32 %v4650_v36  ;;  %v2570_v10 = vadd.f32 1.0, %v5426_v17  ;;  %v2075_v60 = vunpack.c.l.bf16 %v6659_v11 }
 0x278   :  { %v1751_v21 = vpop.f32.mrb[150].mxu1  ;;  %5447 = vrcp.f32 %v2566_v1  ;;  %v3034_v22 = vpack.c.bf16 %v2934_v40, %v2930_v37  ;;  %v2086_v45 = vunpack.c.h.bf16 %v6671_v30  ;;  %v2110_v42 = vunpack.c.h.bf16 %v6723_v55 }
 0x279   :  { %v2935_v29 = vmul.f32 %v5416_v7, %v7104_v2  ;;  %v1942_v57 = vpack.c.bf16 %v1751_v21, %v1747_v61  ;;  %v1753_v59 = vpop.f32.mrb[151].mxu1  ;;  %v5430_v7 = vpop.eup %5429  ;;  %v6861_v21 = vmul.f32 %v5420_v28, %v7105_v15  ;;  %5449 = vpow2.f32 %v4654_v4 }
 0x27a   :  { %v1943_v52 = vpack.c.bf16 %v1753_v59, %v1749_v12  ;;  %v5432_v61 = vpop.eup %5431  ;;  %v4657_v12 = vmul.f32 -1.442695, %v2074_v27  ;;  %5451 = vrcp.f32 %v2563_v50  ;;  %v2942_v28 = vmul.f32 %v5428_v0, %v2046_v34 }
 0x27b   :  { %v3094_v23 = vmul.bf16 %v3030_v44, %v1942_v57  ;;  %v5434_v44 = vpop.eup %5433  ;;  %v3035_v2 = vpack.c.bf16 %v2935_v29, %v2931_v26  ;;  %5453 = vrcp.f32 %v2567_v58  ;;  %v2574_v57 = vadd.f32 1.0, %v5430_v7 }
 0x27c   :  { %v3095_v35 = vmul.bf16 %v3031_v13, %v1943_v52  ;;  %v4661_v13 = vmul.f32 -1.442695, %v7050_v38  ;;  %v5436_v1 = vpop.eup %5435  ;;  %v2079_v59 = vunpack.c.h.bf16 %v6659_v11  ;;  %5455 = vrcp.f32 %v2570_v10 }
 0x27d   :  { %v5438_v4 = vpop.eup %5437  ;;  %v2571_v52 = vadd.f32 1.0, %v5432_v61  ;;  %v2082_v50 = vunpack.c.l.bf16 %v6671_v30  ;;  %5457 = vpow2.f32 %v4657_v12  ;;  %v4658_v37 = vmul.f32 -1.442695, %v2075_v60 }
 0x27e   :  { %v1757_v8 = vpop.f32.mrb[152].mxu1  ;;  %3859 = vmatprep.mubr.bf16.mxu0 %v3095_v35  ;;  %v5440_v38 = vpop.eup %5439  ;;  %v2939_v40 = vmul.f32 %v5434_v44, %v2043_v32  ;;  %v2575_v26 = vadd.f32 1.0, %v5436_v1  ;;  %5459 = vpow2.f32 %v4661_v13  ;;  %v2943_v0 = vmul.f32 %v5438_v4, %v2047_v53 }
 0x27f   :  { %v1759_v36 = vpop.f32.mrb[153].mxu1  ;;  %3860 = vmatmul.mubr.bf16.gmra.mrb[84].mxu0 %v3094_v23  ;;  %v5442_v23 = vpop.eup %5441  ;;  %5461 = vrcp.f32 %v2574_v57  ;;  %v4662_v58 = vmul.f32 -1.442695, %v2079_v59  ;;  %v4665_v61 = vmul.f32 -1.442695, %v2082_v50  ;;  %v2087_v1 = vunpack.c.h.bf16 %v6675_v51 }
 0x280   :  { %v1761_v17 = vpop.f32.mrb[154].mxu1  ;;  %v5444_v10 = vpop.eup %5443  ;;  %5463 = vrcp.f32 %v2571_v52  ;;  %v4669_v32 = vmul.f32 -1.442695, %v2086_v45  ;;  %v2578_v53 = vadd.f32 1.0, %v5442_v23 }
 0x281   :  { %v1946_v35 = vpack.c.bf16 %v1761_v17, %v1757_v8  ;;  %v1763_v15 = vpop.f32.mrb[155].mxu1  ;;  %v5446_v12 = vpop.eup %5445  ;;  %5465 = vpow2.f32 %v4658_v37  ;;  %v2083_v8 = vunpack.c.l.bf16 %v6675_v51  ;;  %v3039_v17 = vpack.c.bf16 %v2943_v0, %v2939_v40 }
 0x282   :  { %v1947_v34 = vpack.c.bf16 %v1763_v15, %v1759_v36  ;;  %v5448_v6 = vpop.eup %5447  ;;  %5467 = vrcp.f32 %v2575_v26  ;;  %v3038_v36 = vpack.c.bf16 %v2942_v28, %v6861_v21  ;;  %v2579_v52 = vadd.f32 1.0, %v5446_v12 }
 0x283   :  { %v3098_v29 = vmul.bf16 %v3034_v22, %v1946_v35  ;;  %v5450_v22 = vpop.eup %5449  ;;  %5469 = vpow2.f32 %v4662_v58  ;;  %v2090_v35 = vunpack.c.l.bf16 %v6688_v47  ;;  %v4666_v26 = vmul.f32 -1.442695, %v2083_v8 }
 0x284   :  { %v3099_v7 = vmul.bf16 %v3035_v2, %v1947_v34  ;;  %v2582_v2 = vadd.f32 1.0, %v5444_v10  ;;  %v5452_v4 = vpop.eup %5451  ;;  %5471 = vpow2.f32 %v4665_v61  ;;  %v2094_v21 = vunpack.c.h.bf16 %v6688_v47 }
 0x285   :  { %v5454_v34 = vpop.eup %5453  ;;  %5473 = vpow2.f32 %v4669_v32  ;;  %v2583_v23 = vadd.f32 1.0, %v5450_v22  ;;  %v2091_v40 = vunpack.c.l.bf16 %v6691_v43  ;;  %v2946_v12 = vmul.f32 %v5440_v38, %v2050_v5 }
 0x286   :  { %3869 = vmatprep.mubr.bf16.mxu0 %v3099_v7  ;;  %5475 = vrcp.f32 %v2578_v53  ;;  %v4670_v7 = vmul.f32 -1.442695, %v2087_v1  ;;  %v2950_v32 = vmul.f32 %v5448_v6, %v2054_v62  ;;  %v4677_v22 = vmul.f32 -1.442695, %v2094_v21 }
 0x287   :  { %v1767_v44 = vpop.f32.mrb[156].mxu1  ;;  %3870 = vmatmul.mubr.bf16.gmra.mrb[88].mxu0 %v3098_v29  ;;  %v5456_v29 = vpop.eup %5455  ;;  %5477 = vrcp.f32 %v2582_v2  ;;  %v4674_v16 = vmul.f32 -1.442695, %v2091_v40 }
 0x288   :  { %v1769_v13 = vpop.f32.mrb[157].mxu1  ;;  %v5458_v58 = vpop.eup %5457  ;;  %5479 = vrcp.f32 %v2579_v52 }
 0x289   :  { %v1771_v57 = vpop.f32.mrb[158].mxu1  ;;  %v5460_v61 = vpop.eup %5459  ;;  %5481 = vpow2.f32 %v4666_v26 }
 0x28a   :  { %v1950_v15 = vpack.c.bf16 %v1771_v57, %v1767_v44  ;;  %v1773_v37 = vpop.f32.mrb[159].mxu1  ;;  %v4673_v44 = vmul.f32 -1.442695, %v2090_v35  ;;  %v5462_v53 = vpop.eup %5461  ;;  %5483 = vrcp.f32 %v2583_v23 }
 0x28b   :  { %v1951_v28 = vpack.c.bf16 %v1773_v37, %v1769_v13  ;;  %v2947_v13 = vmul.f32 %v5452_v4, %v2051_v20  ;;  %v5464_v5 = vpop.eup %5463  ;;  %5485 = vpow2.f32 %v4670_v7  ;;  %v2095_v20 = vunpack.c.h.bf16 %v6691_v43 }
 0x28c   :  { %v3102_v0 = vmul.bf16 %v3038_v36, %v1950_v15  ;;  %v2951_v36 = vmul.f32 %v5454_v34, %v2055_v54  ;;  %v5466_v38 = vpop.eup %5465  ;;  %v2586_v54 = vadd.f32 1.0, %v5458_v58  ;;  %5487 = vpow2.f32 %v4673_v44 }
 0x28d   :  { %v3103_v10 = vmul.bf16 %v3039_v17, %v1951_v28  ;;  %v5468_v56 = vpop.eup %5467  ;;  %v3042_v17 = vpack.c.bf16 %v2950_v32, %v2946_v12  ;;  %v2590_v15 = vadd.f32 1.0, %v5460_v61  ;;  %5489 = vpow2.f32 %v4677_v22 }
 0x28e   :  { %v5470_v52 = vpop.eup %5469  ;;  %v3043_v34 = vpack.c.bf16 %v2951_v36, %v2947_v13  ;;  %v2954_v28 = vmul.f32 %v5456_v29, %v2058_v48  ;;  %v2587_v23 = vadd.f32 1.0, %v5466_v38  ;;  %5491 = vpow2.f32 %v4674_v16 }
 0x28f   :  { %v1777_v2 = vpop.f32.mrb[160].mxu1  ;;  %3879 = vmatprep.mubr.bf16.mxu0 %v3103_v10  ;;  %v5472_v26 = vpop.eup %5471  ;;  %v2958_v58 = vmul.f32 %v5462_v53, %v2062_v3  ;;  %v4678_v10 = vmul.f32 -1.442695, %v2095_v20  ;;  %v2098_v12 = vunpack.c.l.bf16 %v6706_v24  ;;  %v2955_v44 = vmul.f32 %v5464_v5, %v2059_v41 }
 0x290   :  { %v1779_v62 = vpop.f32.mrb[161].mxu1  ;;  %3880 = vmatmul.mubr.bf16.gmra.mrb[92].mxu0 %v3102_v0  ;;  %v5474_v7 = vpop.eup %5473  ;;  %5493 = vrcp.f32 %v2586_v54  ;;  %v2591_v13 = vadd.f32 1.0, %v5470_v52  ;;  %v2102_v48 = vunpack.c.h.bf16 %v6706_v24  ;;  %v2959_v36 = vmul.f32 %v5468_v56, %v2063_v9 }
 0x291   :  { %v1781_v6 = vpop.f32.mrb[162].mxu1  ;;  %v5476_v32 = vpop.eup %5475  ;;  %5495 = vrcp.f32 %v2590_v15  ;;  %v2594_v49 = vadd.f32 1.0, %v5472_v26  ;;  %v2099_v3 = vunpack.c.l.bf16 %v6709_v19  ;;  %v4681_v5 = vmul.f32 -1.442695, %v2098_v12 }
 0x292   :  { %v1954_v57 = vpack.c.bf16 %v1781_v6, %v1777_v2  ;;  %v1783_v4 = vpop.f32.mrb[163].mxu1  ;;  %v5478_v29 = vpop.eup %5477  ;;  %5497 = vrcp.f32 %v2587_v23  ;;  %v2598_v2 = vadd.f32 1.0, %v5474_v7  ;;  %v4685_v38 = vmul.f32 -1.442695, %v2102_v48 }
 0x293   :  { %v1955_v37 = vpack.c.bf16 %v1783_v4, %v1779_v62  ;;  %v5480_v22 = vpop.eup %5479  ;;  %5499 = vpow2.f32 %v4678_v10  ;;  %v2103_v62 = vunpack.c.h.bf16 %v6709_v19  ;;  %v3046_v56 = vpack.c.bf16 %v2958_v58, %v2954_v28 }
 0x294   :  { %v3106_v0 = vmul.bf16 %v3042_v17, %v1954_v57  ;;  %v5482_v41 = vpop.eup %5481  ;;  %5501 = vrcp.f32 %v2591_v13  ;;  %v4682_v17 = vmul.f32 -1.442695, %v2099_v3  ;;  %v3047_v52 = vpack.c.bf16 %v2959_v36, %v2955_v44 }
 0x295   :  { %v3107_v61 = vmul.bf16 %v3043_v34, %v1955_v37  ;;  %v5484_v9 = vpop.eup %5483  ;;  %5503 = vrcp.f32 %v2594_v49  ;;  %v2962_v37 = vmul.f32 %v5476_v32, %v2066_v46  ;;  %v2595_v34 = vadd.f32 1.0, %v5482_v41 }
 0x296   :  { %v5486_v57 = vpop.eup %5485  ;;  %5505 = vrcp.f32 %v2598_v2  ;;  %v4686_v28 = vmul.f32 -1.442695, %v2103_v62  ;;  %v2963_v10 = vmul.f32 %v5480_v22, %v2067_v39  ;;  %v2106_v46 = vunpack.c.l.bf16 %v6723_v55 }
 0x297   :  { %v1787_v53 = vpop.f32.mrb[164].mxu1  ;;  %3889 = vmatprep.mubr.bf16.mxu0 %v3107_v61  ;;  %v5488_v15 = vpop.eup %5487  ;;  %5507 = vpow2.f32 %v4681_v5  ;;  %v2599_v61 = vadd.f32 1.0, %v5486_v57  ;;  %v2967_v32 = vmul.f32 %v5484_v9, %v2071_v25  ;;  %v2107_v36 = vunpack.c.l.bf16 %v6728_v63 }
 0x298   :  { %v1789_v16 = vpop.f32.mrb[165].mxu1  ;;  %3890 = vmatmul.mubr.bf16.gmra.mrb[96].mxu0 %v3106_v0  ;;  %v5490_v23 = vpop.eup %5489  ;;  %v2966_v0 = vmul.f32 %v5478_v29, %v2070_v31  ;;  %5509 = vpow2.f32 %v4685_v38  ;;  %v2602_v44 = vadd.f32 1.0, %v5488_v15  ;;  %v2111_v22 = vunpack.c.h.bf16 %v6728_v63 }
 0x299   :  { %v1791_v14 = vpop.f32.mrb[166].mxu1  ;;  %v5492_v58 = vpop.eup %5491  ;;  %5511 = vpow2.f32 %v4682_v17  ;;  %v2606_v29 = vadd.f32 1.0, %v5490_v23  ;;  %v4689_v2 = vmul.f32 -1.442695, %v2106_v46  ;;  %v4693_v9 = vmul.f32 -1.442695, %v2110_v42 }
 0x29a   :  { %v1958_v6 = vpack.c.bf16 %v1791_v14, %v1787_v53  ;;  %v1793_v54 = vpop.f32.mrb[167].mxu1  ;;  %v5494_v13 = vpop.eup %5493  ;;  %5513 = vrcp.f32 %v2595_v34  ;;  %v2603_v53 = vadd.f32 1.0, %v5492_v58  ;;  %v3050_v41 = vpack.c.bf16 %v2966_v0, %v2962_v37 }
 0x29b   :  { %v1959_v4 = vpack.c.bf16 %v1793_v54, %v1789_v16  ;;  %v5496_v39 = vpop.eup %5495  ;;  %5515 = vpow2.f32 %v4686_v28  ;;  %v4690_v54 = vmul.f32 -1.442695, %v2107_v36  ;;  %v2970_v37 = vmul.f32 %v5494_v13, %v2074_v27 }
 0x29c   :  { %v3110_v26 = vmul.bf16 %v3046_v56, %v1958_v6  ;;  %v5498_v25 = vpop.eup %5497  ;;  %5517 = vrcp.f32 %v2599_v61  ;;  %v3051_v6 = vpack.c.bf16 %v2967_v32, %v2963_v10  ;;  %v7106_v34 = vunpack.c.h.bf16 %v6657_v18 }
 0x29d   :  { %v3111_v7 = vmul.bf16 %v3047_v52, %v1959_v4  ;;  %v5500_v14 = vpop.eup %5499  ;;  %5519 = vrcp.f32 %v2602_v44  ;;  %v4694_v4 = vmul.f32 -1.442695, %v2111_v22  ;;  %v2971_v28 = vmul.f32 %v5498_v25, %v2075_v60 }
 0x29e   :  { %v5502_v56 = vpop.eup %5501  ;;  %5521 = vrcp.f32 %v2606_v29  ;;  %v2607_v23 = vadd.f32 1.0, %v5500_v14 }
 0x29f   :  { %v1797_v31 = vpop.f32.mrb[168].mxu1  ;;  %3899 = vmatprep.mubr.bf16.mxu0 %v3111_v7  ;;  %v5504_v17 = vpop.eup %5503  ;;  %5523 = vrcp.f32 %v2603_v53  ;;  %v2975_v7 = vmul.f32 %v5502_v56, %v2079_v59 }
 0x2a0   :  { %v1799_v49 = vpop.f32.mrb[169].mxu1  ;;  %3900 = vmatmul.mubr.bf16.gmra.mrb[100].mxu0 %v3110_v26  ;;  %v5506_v15 = vpop.eup %5505  ;;  %v2974_v26 = vmul.f32 %v5496_v39, %v7106_v34  ;;  %5525 = vpow2.f32 %v4689_v2 }
 0x2a1   :  { %v1801_v33 = vpop.f32.mrb[170].mxu1  ;;  %v5508_v0 = vpop.eup %5507  ;;  %5527 = vpow2.f32 %v4693_v9  ;;  %v3055_v11 = vpack.c.bf16 %v2975_v7, %v2971_v28 }
 0x2a2   :  { %v1962_v16 = vpack.c.bf16 %v1801_v33, %v1797_v31  ;;  %v1803_v5 = vpop.f32.mrb[171].mxu1  ;;  %v5510_v10 = vpop.eup %5509  ;;  %5529 = vpow2.f32 %v4690_v54  ;;  %v3054_v31 = vpack.c.bf16 %v2974_v26, %v2970_v37  ;;  %v2610_v60 = vadd.f32 1.0, %v5508_v0 }
 0x2a3   :  { %v1963_v38 = vpack.c.bf16 %v1803_v5, %v1799_v49  ;;  %v5512_v27 = vpop.eup %5511  ;;  %5531 = vpow2.f32 %v4694_v4  ;;  %v2614_v39 = vadd.f32 1.0, %v5510_v10  ;;  %v2982_v5 = vmul.f32 %v5506_v15, %v2086_v45 }
 0x2a4   :  { %v3114_v57 = vmul.bf16 %v3050_v41, %v1962_v16  ;;  %v5514_v32 = vpop.eup %5513  ;;  %5533 = vrcp.f32 %v2607_v23  ;;  %v2611_v25 = vadd.f32 1.0, %v5512_v27  ;;  %v2978_v41 = vmul.f32 %v5504_v17, %v2082_v50 }
 0x2a5   :  { %v3115_v52 = vmul.bf16 %v3051_v6, %v1963_v38  ;;  %v5516_v29 = vpop.eup %5515  ;;  %v2979_v38 = vmul.f32 %v5514_v32, %v2083_v8  ;;  %5535 = vrcp.f32 %v2610_v60 }
 0x2a6   :  { %v5518_v59 = vpop.eup %5517  ;;  %v2615_v14 = vadd.f32 1.0, %v5516_v29  ;;  %5537 = vrcp.f32 %v2614_v39  ;;  %v3058_v17 = vpack.c.bf16 %v2982_v5, %v2978_v41 }
 0x2a7   :  { %v1807_v58 = vpop.f32.mrb[172].mxu1  ;;  %3909 = vmatprep.mubr.bf16.mxu0 %v3115_v52  ;;  %v5520_v33 = vpop.eup %5519  ;;  %v2983_v6 = vmul.f32 %v5518_v59, %v2087_v1  ;;  %5539 = vrcp.f32 %v2611_v25 }
 0x2a8   :  { %v1809_v61 = vpop.f32.mrb[173].mxu1  ;;  %3910 = vmatmul.mubr.bf16.gmra.mrb[104].mxu0 %v3114_v57  ;;  %v5522_v16 = vpop.eup %5521  ;;  %5541 = vrcp.f32 %v2615_v14  ;;  %v2986_v28 = vmul.f32 %v5520_v33, %v2090_v35 }
 0x2a9   :  { %v1811_v18 = vpop.f32.mrb[174].mxu1  ;;  %v5524_v9 = vpop.eup %5523  ;;  %v3059_v51 = vpack.c.bf16 %v2983_v6, %v2979_v38  ;;  %v2990_v7 = vmul.f32 %v5522_v16, %v2094_v21 }
 0x2aa   :  { %v1966_v44 = vpack.c.bf16 %v1811_v18, %v1807_v58  ;;  %v1813_v13 = vpop.f32.mrb[175].mxu1  ;;  %v5526_v54 = vpop.eup %5525  ;;  %v2987_v10 = vmul.f32 %v5524_v9, %v2091_v40 }
 0x2ab   :  { %v1967_v49 = vpack.c.bf16 %v1813_v13, %v1809_v61  ;;  %v5528_v4 = vpop.eup %5527  ;;  %v2618_v8 = vadd.f32 1.0, %v5526_v54  ;;  %v3062_v21 = vpack.c.bf16 %v2990_v7, %v2986_v28 }
 0x2ac   :  { %v3118_v53 = vmul.bf16 %v3054_v31, %v1966_v44  ;;  %v5530_v30 = vpop.eup %5529  ;;  %v2622_v34 = vadd.f32 1.0, %v5528_v4 }
 0x2ad   :  { %v3119_v2 = vmul.bf16 %v3055_v11, %v1967_v49  ;;  %v5532_v15 = vpop.eup %5531  ;;  %v2619_v23 = vadd.f32 1.0, %v5530_v30  ;;  %5543 = vrcp.f32 %v2618_v8 }
 0x2ae   :  { %v5534_v1 = vpop.eup %5533  ;;  %v2623_v58 = vadd.f32 1.0, %v5532_v15  ;;  %5545 = vrcp.f32 %v2622_v34 }
 0x2af   :  { %v1817_v56 = vpop.f32.mrb[176].mxu1  ;;  %3919 = vmatprep.mubr.bf16.mxu0 %v3119_v2  ;;  %v2991_v61 = vmul.f32 %v5534_v1, %v2095_v20  ;;  %v5536_v32 = vpop.eup %5535  ;;  %5547 = vrcp.f32 %v2619_v23 }
 0x2b0   :  { %v1819_v57 = vpop.f32.mrb[177].mxu1  ;;  %3920 = vmatmul.mubr.bf16.gmra.mrb[108].mxu0 %v3118_v53  ;;  %v5538_v35 = vpop.eup %5537  ;;  %5549 = vrcp.f32 %v2623_v58  ;;  %v2994_v49 = vmul.f32 %v5536_v32, %v2098_v12 }
 0x2b1   :  { %v1821_v50 = vpop.f32.mrb[178].mxu1  ;;  %v5540_v13 = vpop.eup %5539  ;;  %v3063_v40 = vpack.c.bf16 %v2991_v61, %v2987_v10  ;;  %v2998_v11 = vmul.f32 %v5538_v35, %v2102_v48 }
 0x2b2   :  { %v1970_v45 = vpack.c.bf16 %v1821_v50, %v1817_v56  ;;  %v1823_v52 = vpop.f32.mrb[179].mxu1  ;;  %v5542_v60 = vpop.eup %5541  ;;  %v2995_v59 = vmul.f32 %v5540_v13, %v2099_v3 }
 0x2b3   :  { %v1971_v37 = vpack.c.bf16 %v1823_v52, %v1819_v57  ;;  %v2999_v39 = vmul.f32 %v5542_v60, %v2103_v62  ;;  %v3066_v5 = vpack.c.bf16 %v2998_v11, %v2994_v49 }
 0x2b4   :  { %v3122_v26 = vmul.bf16 %v3058_v17, %v1970_v45 }
 0x2b5   :  { %v3123_v0 = vmul.bf16 %v3059_v51, %v1971_v37  ;;  %v3067_v24 = vpack.c.bf16 %v2999_v39, %v2995_v59 }
 0x2b7   :  { %v1827_v27 = vpop.f32.mrb[180].mxu1  ;;  %3929 = vmatprep.mubr.bf16.mxu0 %v3123_v0  ;;  %v5544_v25 = vpop.eup %5543 }
 0x2b8   :  { %v1829_v18 = vpop.f32.mrb[181].mxu1  ;;  %3930 = vmatmul.mubr.bf16.gmra.mrb[112].mxu0 %v3122_v26  ;;  %v5546_v16 = vpop.eup %5545  ;;  %v3002_v19 = vmul.f32 %v5544_v25, %v2106_v46 }
 0x2b9   :  { %v1831_v44 = vpop.f32.mrb[182].mxu1  ;;  %v5548_v12 = vpop.eup %5547  ;;  %v3006_v3 = vmul.f32 %v5546_v16, %v2110_v42 }
 0x2ba   :  { %v1974_v47 = vpack.c.bf16 %v1831_v44, %v1827_v27  ;;  %v1833_v31 = vpop.f32.mrb[183].mxu1  ;;  %v5550_v48 = vpop.eup %5549  ;;  %v3003_v62 = vmul.f32 %v5548_v12, %v2107_v36 }
 0x2bb   :  { %v1975_v29 = vpack.c.bf16 %v1833_v31, %v1829_v18  ;;  %v3007_v56 = vmul.f32 %v5550_v48, %v2111_v22  ;;  %v3070_v30 = vpack.c.bf16 %v3006_v3, %v3002_v19 }
 0x2bc   :  { %v3126_v43 = vmul.bf16 %v3062_v21, %v1974_v47 }
 0x2bd   :  { %v3127_v20 = vmul.bf16 %v3063_v40, %v1975_v29  ;;  %v3071_v52 = vpack.c.bf16 %v3007_v56, %v3003_v62 }
 0x2bf   :  { %v1837_v53 = vpop.f32.mrb[184].mxu1  ;;  %3939 = vmatprep.mubr.bf16.mxu0 %v3127_v20 }
 0x2c0   :  { %v1839_v33 = vpop.f32.mrb[185].mxu1  ;;  %3940 = vmatmul.mubr.bf16.gmra.mrb[116].mxu0 %v3126_v43 }
 0x2c1   :  { %v1841_v2 = vpop.f32.mrb[186].mxu1 }
 0x2c2   :  { %v1978_v41 = vpack.c.bf16 %v1841_v2, %v1837_v53  ;;  %v1843_v14 = vpop.f32.mrb[187].mxu1 }
 0x2c3   :  { %v1979_v9 = vpack.c.bf16 %v1843_v14, %v1839_v33 }
 0x2c4   :  { %v3130_v38 = vmul.bf16 %v3066_v5, %v1978_v41 }
 0x2c5   :  { %v3131_v6 = vmul.bf16 %v3067_v24, %v1979_v9 }
 0x2c7   :  { %v1847_v54 = vpop.f32.mrb[188].mxu1  ;;  %3949 = vmatprep.mubr.bf16.mxu0 %v3131_v6 }
 0x2c8   :  { %v1849_v57 = vpop.f32.mrb[189].mxu1  ;;  %3950 = vmatmul.mubr.bf16.gmra.mrb[120].mxu0 %v3130_v38 }
 0x2c9   :  { %v1851_v4 = vpop.f32.mrb[190].mxu1 }
 0x2ca   :  { %v1982_v50 = vpack.c.bf16 %v1851_v4, %v1847_v54  ;;  %v1853_v45 = vpop.f32.mrb[191].mxu1 }
 0x2cb   :  { %v1983_v17 = vpack.c.bf16 %v1853_v45, %v1849_v57 }
 0x2cc   :  { %v3134_v46 = vmul.bf16 %v3070_v30, %v1982_v50 }
 0x2cd   :  { %v3135_v15 = vmul.bf16 %v3071_v52, %v1983_v17 }
 0x2cf   :  { %3959 = vmatprep.mubr.bf16.mxu0 %v3135_v15 }
 0x2d0   :  { %3960 = vmatmul.mubr.bf16.gmra.mrb[124].mxu0 %v3134_v46 }
 0x32a   :  { %v3811_v55 = vpop.f32.mrb[64].mxu0 }
 0x32b   :  { %v3813_v42 = vpop.f32.mrb[65].mxu0 }
 0x32c   :  { %v4791_v36 = vpack.c.bf16 %v3813_v42, %v3811_v55  ;;  %v3815_v8 = vpop.f32.mrb[66].mxu0 }
 0x32d   :  { %v3817_v63 = vpop.f32.mrb[67].mxu0 }
 0x32e   :  { %4357 = vst [vmem:[#allocation9] sm:$0xff] %v4791_v36  ;;  %v4792_v22 = vpack.c.bf16 %v3817_v63, %v3815_v8 }
 0x330   :  { %4358 = vst [vmem:[#allocation9 + $0x8] sm:$0xff] %v4792_v22 }
 0x332   :  { %v3821_v37 = vpop.f32.mrb[68].mxu0 }
 0x333   :  { %v3823_v51 = vpop.f32.mrb[69].mxu0 }
 0x334   :  { %v4793_v1 = vpack.c.bf16 %v3823_v51, %v3821_v37  ;;  %v3825_v34 = vpop.f32.mrb[70].mxu0 }
 0x335   :  { %v3827_v26 = vpop.f32.mrb[71].mxu0 }
 0x336   :  { %4359 = vst [vmem:[#allocation9 + $0x10] sm:$0xff] %v4793_v1  ;;  %v4794_v23 = vpack.c.bf16 %v3827_v26, %v3825_v34 }
 0x338   :  { %4360 = vst [vmem:[#allocation9 + $0x18] sm:$0xff] %v4794_v23 }
 0x33a   :  { %v3831_v0 = vpop.f32.mrb[72].mxu0 }
 0x33b   :  { %v3833_v28 = vpop.f32.mrb[73].mxu0 }
 0x33c   :  { %v4795_v7 = vpack.c.bf16 %v3833_v28, %v3831_v0  ;;  %v3835_v58 = vpop.f32.mrb[74].mxu0 }
 0x33d   :  { %v3837_v10 = vpop.f32.mrb[75].mxu0 }
 0x33e   :  { %4361 = vst [vmem:[#allocation9 + $0x20] sm:$0xff] %v4795_v7  ;;  %v4796_v61 = vpack.c.bf16 %v3837_v10, %v3835_v58 }
 0x340   :  { %4362 = vst [vmem:[#allocation9 + $0x28] sm:$0xff] %v4796_v61 }
 0x342   :  { %v3841_v27 = vpop.f32.mrb[76].mxu0 }
 0x343   :  { %v3843_v18 = vpop.f32.mrb[77].mxu0 }
 0x344   :  { %v4797_v32 = vpack.c.bf16 %v3843_v18, %v3841_v27  ;;  %v3845_v44 = vpop.f32.mrb[78].mxu0 }
 0x345   :  { %v3847_v35 = vpop.f32.mrb[79].mxu0 }
 0x346   :  { %4363 = vst [vmem:[#allocation9 + $0x30] sm:$0xff] %v4797_v32  ;;  %v4798_v47 = vpack.c.bf16 %v3847_v35, %v3845_v44 }
 0x348   :  { %4364 = vst [vmem:[#allocation9 + $0x38] sm:$0xff] %v4798_v47 }
 0x34a   :  { %v3851_v21 = vpop.f32.mrb[80].mxu0 }
 0x34b   :  { %v3853_v31 = vpop.f32.mrb[81].mxu0 }
 0x34c   :  { %v4799_v13 = vpack.c.bf16 %v3853_v31, %v3851_v21  ;;  %v3855_v29 = vpop.f32.mrb[82].mxu0 }
 0x34d   :  { %v3857_v40 = vpop.f32.mrb[83].mxu0 }
 0x34e   :  { %4365 = vst [vmem:[#allocation9 + $0x40] sm:$0xff] %v4799_v13  ;;  %v4800_v60 = vpack.c.bf16 %v3857_v40, %v3855_v29 }
 0x350   :  { %4366 = vst [vmem:[#allocation9 + $0x48] sm:$0xff] %v4800_v60 }
 0x352   :  { %v3861_v43 = vpop.f32.mrb[84].mxu0 }
 0x353   :  { %v3863_v20 = vpop.f32.mrb[85].mxu0 }
 0x354   :  { %v4801_v49 = vpack.c.bf16 %v3863_v20, %v3861_v43  ;;  %v3865_v11 = vpop.f32.mrb[86].mxu0 }
 0x355   :  { %v3867_v59 = vpop.f32.mrb[87].mxu0 }
 0x356   :  { %4367 = vst [vmem:[#allocation9 + $0x50] sm:$0xff] %v4801_v49  ;;  %v4802_v39 = vpack.c.bf16 %v3867_v59, %v3865_v11 }
 0x358   :  { %4368 = vst [vmem:[#allocation9 + $0x58] sm:$0xff] %v4802_v39 }
 0x35a   :  { %v3871_v53 = vpop.f32.mrb[88].mxu0 }
 0x35b   :  { %v3873_v33 = vpop.f32.mrb[89].mxu0 }
 0x35c   :  { %v4803_v25 = vpack.c.bf16 %v3873_v33, %v3871_v53  ;;  %v3875_v2 = vpop.f32.mrb[90].mxu0 }
 0x35d   :  { %v3877_v16 = vpop.f32.mrb[91].mxu0 }
 0x35e   :  { %4369 = vst [vmem:[#allocation9 + $0x60] sm:$0xff] %v4803_v25  ;;  %v4804_v41 = vpack.c.bf16 %v3877_v16, %v3875_v2 }
 0x360   :  { %4370 = vst [vmem:[#allocation9 + $0x68] sm:$0xff] %v4804_v41 }
 0x363   :  { %v3881_v5 = vpop.f32.mrb[92].mxu0 }
 0x364   :  { %v3883_v14 = vpop.f32.mrb[93].mxu0 }
 0x365   :  { %v4805_v12 = vpack.c.bf16 %v3883_v14, %v3881_v5  ;;  %v3885_v9 = vpop.f32.mrb[94].mxu0 }
 0x366   :  { %v3887_v24 = vpop.f32.mrb[95].mxu0 }
 0x367   :  { %4371 = vst [vmem:[#allocation9 + $0x70] sm:$0xff] %v4805_v12  ;;  %v4806_v48 = vpack.c.bf16 %v3887_v24, %v3885_v9 }
 0x369   :  { %4372 = vst [vmem:[#allocation9 + $0x78] sm:$0xff] %v4806_v48 }
 0x36b   :  { %v3891_v38 = vpop.f32.mrb[96].mxu0 }
 0x36c   :  { %v3893_v6 = vpop.f32.mrb[97].mxu0 }
 0x36d   :  { %v4807_v19 = vpack.c.bf16 %v3893_v6, %v3891_v38  ;;  %v3895_v3 = vpop.f32.mrb[98].mxu0 }
 0x36e   :  { %v3897_v62 = vpop.f32.mrb[99].mxu0 }
 0x36f   :  { %4373 = vst [vmem:[#allocation9 + $0x80] sm:$0xff] %v4807_v19  ;;  %v4808_v56 = vpack.c.bf16 %v3897_v62, %v3895_v3 }
 0x371   :  { %4374 = vst [vmem:[#allocation9 + $0x88] sm:$0xff] %v4808_v56 }
 0x373   :  { %v3901_v54 = vpop.f32.mrb[100].mxu0 }
 0x374   :  { %v3903_v57 = vpop.f32.mrb[101].mxu0 }
 0x375   :  { %v4809_v4 = vpack.c.bf16 %v3903_v57, %v3901_v54  ;;  %v3905_v50 = vpop.f32.mrb[102].mxu0 }
 0x376   :  { %v3907_v30 = vpop.f32.mrb[103].mxu0 }
 0x377   :  { %4375 = vst [vmem:[#allocation9 + $0x90] sm:$0xff] %v4809_v4  ;;  %v4810_v45 = vpack.c.bf16 %v3907_v30, %v3905_v50 }
 0x379   :  { %4376 = vst [vmem:[#allocation9 + $0x98] sm:$0xff] %v4810_v45 }
 0x37b   :  { %v3911_v17 = vpop.f32.mrb[104].mxu0 }
 0x37c   :  { %v3913_v52 = vpop.f32.mrb[105].mxu0 }
 0x37d   :  { %v4811_v46 = vpack.c.bf16 %v3913_v52, %v3911_v17  ;;  %v3915_v15 = vpop.f32.mrb[106].mxu0 }
 0x37e   :  { %v3917_v55 = vpop.f32.mrb[107].mxu0 }
 0x37f   :  { %4377 = vst [vmem:[#allocation9 + $0xa0] sm:$0xff] %v4811_v46  ;;  %v4812_v42 = vpack.c.bf16 %v3917_v55, %v3915_v15 }
 0x381   :  { %4378 = vst [vmem:[#allocation9 + $0xa8] sm:$0xff] %v4812_v42 }
 0x383   :  { %v3921_v36 = vpop.f32.mrb[108].mxu0 }
 0x384   :  { %v3923_v8 = vpop.f32.mrb[109].mxu0 }
 0x385   :  { %v4813_v63 = vpack.c.bf16 %v3923_v8, %v3921_v36  ;;  %v3925_v22 = vpop.f32.mrb[110].mxu0 }
 0x386   :  { %v3927_v37 = vpop.f32.mrb[111].mxu0 }
 0x387   :  { %4379 = vst [vmem:[#allocation9 + $0xb0] sm:$0xff] %v4813_v63  ;;  %v4814_v51 = vpack.c.bf16 %v3927_v37, %v3925_v22 }
 0x389   :  { %4380 = vst [vmem:[#allocation9 + $0xb8] sm:$0xff] %v4814_v51 }
 0x38b   :  { %v3931_v1 = vpop.f32.mrb[112].mxu0 }
 0x38c   :  { %v3933_v34 = vpop.f32.mrb[113].mxu0 }
 0x38d   :  { %v4815_v26 = vpack.c.bf16 %v3933_v34, %v3931_v1  ;;  %v3935_v23 = vpop.f32.mrb[114].mxu0 }
 0x38e   :  { %v3937_v0 = vpop.f32.mrb[115].mxu0 }
 0x38f   :  { %4381 = vst [vmem:[#allocation9 + $0xc0] sm:$0xff] %v4815_v26  ;;  %v4816_v28 = vpack.c.bf16 %v3937_v0, %v3935_v23 }
 0x391   :  { %4382 = vst [vmem:[#allocation9 + $0xc8] sm:$0xff] %v4816_v28 }
 0x393   :  { %v3941_v7 = vpop.f32.mrb[116].mxu0 }
 0x394   :  { %v3943_v58 = vpop.f32.mrb[117].mxu0 }
 0x395   :  { %v4817_v10 = vpack.c.bf16 %v3943_v58, %v3941_v7  ;;  %v3945_v61 = vpop.f32.mrb[118].mxu0 }
 0x396   :  { %v3947_v27 = vpop.f32.mrb[119].mxu0 }
 0x397   :  { %4383 = vst [vmem:[#allocation9 + $0xd0] sm:$0xff] %v4817_v10  ;;  %v4818_v18 = vpack.c.bf16 %v3947_v27, %v3945_v61 }
 0x399   :  { %4384 = vst [vmem:[#allocation9 + $0xd8] sm:$0xff] %v4818_v18 }
 0x39b   :  { %v3951_v32 = vpop.f32.mrb[120].mxu0 }
 0x39c   :  { %v3953_v44 = vpop.f32.mrb[121].mxu0 }
 0x39d   :  { %v4819_v35 = vpack.c.bf16 %v3953_v44, %v3951_v32  ;;  %v3955_v47 = vpop.f32.mrb[122].mxu0 }
 0x39e   :  { %v3957_v21 = vpop.f32.mrb[123].mxu0 }
 0x39f   :  { %4385 = vst [vmem:[#allocation9 + $0xe0] sm:$0xff] %v4819_v35  ;;  %v4820_v31 = vpack.c.bf16 %v3957_v21, %v3955_v47 }
 0x3a1   :  { %4386 = vst [vmem:[#allocation9 + $0xe8] sm:$0xff] %v4820_v31 }
 0x3a3   :  { %v3961_v13 = vpop.f32.mrb[124].mxu0 }
 0x3a4   :  { %v3963_v29 = vpop.f32.mrb[125].mxu0 }
 0x3a5   :  { %v4821_v40 = vpack.c.bf16 %v3963_v29, %v3961_v13  ;;  %v3965_v60 = vpop.f32.mrb[126].mxu0 }
 0x3a6   :  { %v3967_v43 = vpop.f32.mrb[127].mxu0 }
 0x3a7   :  { %4387 = vst [vmem:[#allocation9 + $0xf0] sm:$0xff] %v4821_v40  ;;  %v4822_v20 = vpack.c.bf16 %v3967_v43, %v3965_v60 }
 0x3a9   :  { %4388 = vst [vmem:[#allocation9 + $0xf8] sm:$0xff] %v4822_v20 }
 0x3aa   :  { %5660 = shalt.err (!%p5657_p0)
}
 0x3ab   :  { %s5661_s27 = scalar_lea.hbm %s7010_s3, 4096 }
 0x3ac   :  { %p5662_p1 = scmp.ne.s32.totalorder %s7010_s3, %s5661_s27  ;;  %p5665_p2 = scmp.lt.u32.totalorder %s5661_s27, %s7010_s3 }
 0x3ae   :  { %p5667_p3 = pnand %p5665_p2, %p5662_p1 }
 0x3b0   :  { %5670 = shalt.err (!%p5667_p3)
}
 0x3b1   :  { %4400 = dma.vmem_to_hbm [thread:$0]  %s4395_s23, 4096, %s7010_s3, [#allocation5], %s5681_s1, %s5681_s1, %s5682_s9  }
 0x3b2   :  { %5675 = dma.done.wait [#allocation5], 4096  }
 0x3b3   :  { %5676 = vsyncadd [#allocation5], 4294963200 }
 0x3b4   :  { %4404 = vsyncpa [#allocation4], 1 }
 0x3b5   :  { %4405 = vsyncpa [#allocation7], 1 }
 0x3b6   :  { %4406 = vsyncpa [#allocation5], 1 }

</bundles_post_ra>
